<compile_context>
chip_gen: v7x
topology: tpu7x:2x2x1
jax: 0.10.0
libtpu: 0.0.40
codegen_flags: <defaults>
</compile_context>

<pallas_src>
import numpy as np
import jax
import jax.numpy as jnp
from jax.experimental import pallas as pl
from jax.experimental.pallas import tpu as pltpu


def _decoder_block_kernel(x_ref, wconv_ref, b_ref, wkron_ref, o_ref):
    # x_ref     : (1, C_in, H_in*W_in)         VMEM  flattened input feature map
    # wconv_ref : (C_out, C_in)                VMEM  1x1 conv weight (transposed)
    # b_ref     : (C_out, 1)                   VMEM  conv bias
    # wkron_ref : (H_in*W_in, H_out*W_crop)    VMEM  kron(Wh, Ww_crop)^T
    # o_ref     : (1, C_out, H_out*W_crop)     VMEM  flattened (lane-dense) output
    y = jnp.dot(wconv_ref[...], x_ref[0],
                preferred_element_type=jnp.float32)          # (C_out, HW_in)
    y = y + b_ref[...]                                       # exact pre-upsample bias
    o_ref[0] = jnp.dot(y, wkron_ref[...],
                       preferred_element_type=jnp.float32)   # (C_out, HW_out)


def _bilinear_matrix(in_size: int, out_size: int) -> np.ndarray:
    """Interpolation matrix for nn.UpsamplingBilinear2d (align_corners=True)."""
    if out_size == 1:
        src = np.zeros((1,), dtype=np.float64)
    else:
        src = np.arange(out_size, dtype=np.float64) * (in_size - 1) / (out_size - 1)
    i0 = np.clip(np.floor(src).astype(np.int64), 0, in_size - 1)
    i1 = np.clip(i0 + 1, 0, in_size - 1)
    frac = src - i0
    m = np.zeros((out_size, in_size), dtype=np.float32)
    rows = np.arange(out_size)
    np.add.at(m, (rows, i0), (1.0 - frac).astype(np.float32))
    np.add.at(m, (rows, i1), frac.astype(np.float32))
    return m


def segformer_decoder_block(x, wconv, bias, scale_factor):
    """One SegFormerDecoderBlock (+ the decoder's 64->60 crop, fused)."""
    n, c_in, h_in, w_in = x.shape
    c_out = wconv.shape[1]
    h_out = int(np.floor(h_in * scale_factor))
    w_out = int(np.floor(w_in * scale_factor))

    wh = _bilinear_matrix(h_in, h_out)                     # (H_out, H_in)
    ww = _bilinear_matrix(w_in, w_out)                     # (W_out, W_in)
    # Fuse forward()'s `x[:, :, :, :60]` crop into the interpolation matrix.
    w_crop = 60 if w_out == 64 else w_out
    ww = ww[:w_crop]
    # Separable bilinear upsample as one matmul over flattened spatial dims.
    wkron_t = jnp.asarray(np.kron(wh, ww).T)               # (H_in*W_in, H_out*W_crop)

    hw_in = h_in * w_in
    hw_out = h_out * w_crop
    x_flat = x.reshape(n, c_in, hw_in)
    wconv_t = jnp.asarray(wconv).T                         # (C_out, C_in)
    bias2d = jnp.asarray(bias).reshape(c_out, 1)           # (C_out, 1)

    out_flat = pl.pallas_call(
        _decoder_block_kernel,
        out_shape=jax.ShapeDtypeStruct((n, c_out, hw_out), jnp.float32),
        grid=(n,),
        in_specs=[
            pl.BlockSpec((1, c_in, hw_in), lambda i: (i, 0, 0)),
            pl.BlockSpec((c_out, c_in), lambda i: (0, 0)),
            pl.BlockSpec((c_out, 1), lambda i: (0, 0)),
            pl.BlockSpec((hw_in, hw_out), lambda i: (0, 0)),
        ],
        out_specs=pl.BlockSpec((1, c_out, hw_out), lambda i: (i, 0, 0)),
        compiler_params=pltpu.CompilerParams(
            dimension_semantics=("parallel",),
            vmem_limit_bytes=32 * 1024 * 1024,
        ),
    )(x_flat, wconv_t, bias2d, wkron_t)

    # Free metadata reshape: (N, C_out, H_out*W_crop) -> (N, C_out, H_out, W_crop).
    return out_flat.reshape(n, c_out, h_out, w_crop)


def segformer_decoder(features, stage_params, scale_factors):
    """SegFormerDecoder.forward: per-stage block; crop (when W==64) is fused."""
    new_features = []
    for x, (wconv, bias), s in zip(features, stage_params, scale_factors):
        new_features.append(segformer_decoder_block(x, wconv, bias, s))
    return new_features


def _ref_block_np(x, wconv, bias, scale_factor):
    """Pure numpy reference: upsample (align_corners=True) then 1x1 conv."""
    x = np.asarray(x, dtype=np.float64)
    n, c_in, h, w = x.shape
    wh = _bilinear_matrix(h, int(np.floor(h * scale_factor))).astype(np.float64)
    ww = _bilinear_matrix(w, int(np.floor(w * scale_factor))).astype(np.float64)
    up = np.einsum("ah,nchw->ncaw", wh, x)
    up = np.einsum("bw,ncaw->ncab", ww, up)
    out = np.einsum("ncab,co->noab", up, np.asarray(wconv, dtype=np.float64))
    out = out + np.asarray(bias, dtype=np.float64)[None, :, None, None]
    return out.astype(np.float32)


if __name__ == "__main__":
    batch = 2
    out_channels = 8
    widths = [4, 8]          # per-stage input channels
    spatial = [16, 8]        # per-stage input H=W
    scale_factors = [4, 2]   # stage 0: 16 -> 64 (triggers the 64->60 crop), stage 1: 8 -> 16

    key = jax.random.PRNGKey(0)
    keys = jax.random.split(key, 3 * len(widths))

    features = []
    stage_params = []
    for i, (c_in, sp) in enumerate(zip(widths, spatial)):
        features.append(
            jax.random.normal(keys[3 * i], (batch, c_in, sp, sp), dtype=jnp.float32))
        wconv = jax.random.normal(keys[3 * i + 1], (c_in, out_channels),
                                  dtype=jnp.float32) * (1.0 / np.sqrt(c_in))
        bias = jax.random.normal(keys[3 * i + 2], (out_channels,), dtype=jnp.float32)
        stage_params.append((wconv, bias))

    outs = segformer_decoder(features, stage_params, scale_factors)
    outs = [jax.block_until_ready(o) for o in outs]

    # Correctness check against a numpy reference of the PyTorch math
    # (upsample-then-conv; the kernel uses the exactly-equivalent conv-then-
    # upsample order).  Tolerance accounts for default (bf16-pass) MXU precision.
    for x, (wconv, bias), s, y in zip(features, stage_params, scale_factors, outs):
        ref = _ref_block_np(x, wconv, bias, s)
        if ref.shape[-1] == 64:
            ref = ref[:, :, :, :60]
        assert y.shape == ref.shape, (y.shape, ref.shape)
        np.testing.assert_allclose(np.asarray(y), ref, rtol=3e-2, atol=3e-2)

    print("KERNEL_OK")
</pallas_src>

<mosaic_0001>
module attributes {stable_mosaic.version = 11 : i64} {
  func.func @_decoder_block_kernel(%arg0: i32, %arg1: memref<1x4x256xf32, #tpu.memory_space<vmem>>, %arg2: memref<8x4xf32, #tpu.memory_space<vmem>>, %arg3: memref<8x1xf32, #tpu.memory_space<vmem>>, %arg4: memref<256x3840xf32, #tpu.memory_space<vmem>>, %arg5: memref<1x8x3840xf32, #tpu.memory_space<vmem>>) attributes {dimension_semantics = [#tpu.dimension_semantics<parallel>], iteration_bounds = array<i64: 2>, scalar_prefetch = 0 : i64, scratch_operands = 0 : i64, tpu.core_type = #tpu.core_type<tc>, window_params = [{transform_indices = @transform_0, window_bounds = array<i64: 1, 4, 256>}, {pipeline_mode = #tpu.pipeline_mode<synchronous>, transform_indices = @transform_1, window_bounds = array<i64: 8, 4>}, {pipeline_mode = #tpu.pipeline_mode<synchronous>, transform_indices = @transform_2, window_bounds = array<i64: 8, 1>}, {pipeline_mode = #tpu.pipeline_mode<synchronous>, transform_indices = @transform_3, window_bounds = array<i64: 256, 3840>}, {transform_indices = @transform_4, window_bounds = array<i64: 1, 8, 3840>}]} {
    %c0 = arith.constant 0 : index
    %c0_0 = arith.constant 0 : index
    %0 = vector.load %arg2[%c0, %c0_0] : memref<8x4xf32, #tpu.memory_space<vmem>>, vector<8x4xf32>
    %c0_1 = arith.constant 0 : index
    %c0_2 = arith.constant 0 : index
    %c0_3 = arith.constant 0 : index
    %1 = vector.load %arg1[%c0_1, %c0_2, %c0_3] : memref<1x4x256xf32, #tpu.memory_space<vmem>>, vector<1x4x256xf32>
    %2 = vector.shape_cast %1 : vector<1x4x256xf32> to vector<4x256xf32>
    %cst = arith.constant dense<0.000000e+00> : vector<8x256xf32>
    %3 = tpu.matmul %0, %2, %cst {dimension_numbers = #tpu.dot_dimension_numbers<[1], [0], [0], [1], [0, 0, 1, 1], [], []>} : vector<8x4xf32>, vector<4x256xf32>, vector<8x256xf32> -> vector<8x256xf32>
    %c0_4 = arith.constant 0 : index
    %c0_5 = arith.constant 0 : index
    %4 = vector.load %arg3[%c0_4, %c0_5] : memref<8x1xf32, #tpu.memory_space<vmem>>, vector<8x1xf32>
    %5 = vector.broadcast %4 : vector<8x1xf32> to vector<8x256xf32>
    %6 = arith.addf %3, %5 : vector<8x256xf32>
    %c0_6 = arith.constant 0 : index
    %c0_7 = arith.constant 0 : index
    %7 = vector.load %arg4[%c0_6, %c0_7] : memref<256x3840xf32, #tpu.memory_space<vmem>>, vector<256x3840xf32>
    %cst_8 = arith.constant dense<0.000000e+00> : vector<8x3840xf32>
    %8 = tpu.matmul %6, %7, %cst_8 {dimension_numbers = #tpu.dot_dimension_numbers<[1], [0], [0], [1], [0, 0, 1, 1], [], []>} : vector<8x256xf32>, vector<256x3840xf32>, vector<8x3840xf32> -> vector<8x3840xf32>
    %c0_9 = arith.constant 0 : index
    %c0_10 = arith.constant 0 : index
    %c0_11 = arith.constant 0 : index
    %9 = vector.load %arg5[%c0_9, %c0_10, %c0_11] : memref<1x8x3840xf32, #tpu.memory_space<vmem>>, vector<1x8x3840xf32>
    %10 = vector.shape_cast %9 : vector<1x8x3840xf32> to vector<8x3840xf32>
    %11 = vector.shape_cast %8 : vector<8x3840xf32> to vector<1x8x3840xf32>
    tpu.vector_store %arg5[%c0_9, %c0_10, %c0_11], %11 {strides = array<i32>} : memref<1x8x3840xf32, #tpu.memory_space<vmem>>, vector<1x8x3840xf32>,
    return
  }
  func.func @transform_0(%arg0: i32) -> (i32, i32, i32) {
    %c0_i32 = arith.constant 0 : i32
    %c0_i32_0 = arith.constant 0 : i32
    %c0_i32_1 = arith.constant 0 : i32
    return %arg0, %c0_i32, %c0_i32_0 : i32, i32, i32
  }
  func.func @transform_1(%arg0: i32) -> (i32, i32) {
    %c0_i32 = arith.constant 0 : i32
    %c0_i32_0 = arith.constant 0 : i32
    %c0_i32_1 = arith.constant 0 : i32
    return %c0_i32, %c0_i32_0 : i32, i32
  }
  func.func @transform_2(%arg0: i32) -> (i32, i32) {
    %c0_i32 = arith.constant 0 : i32
    %c0_i32_0 = arith.constant 0 : i32
    %c0_i32_1 = arith.constant 0 : i32
    return %c0_i32, %c0_i32_0 : i32, i32
  }
  func.func @transform_3(%arg0: i32) -> (i32, i32) {
    %c0_i32 = arith.constant 0 : i32
    %c0_i32_0 = arith.constant 0 : i32
    %c0_i32_1 = arith.constant 0 : i32
    return %c0_i32, %c0_i32_0 : i32, i32
  }
  func.func @transform_4(%arg0: i32) -> (i32, i32, i32) {
    %c0_i32 = arith.constant 0 : i32
    %c0_i32_0 = arith.constant 0 : i32
    %c0_i32_1 = arith.constant 0 : i32
    return %arg0, %c0_i32, %c0_i32_0 : i32, i32, i32
  }
}

</mosaic_0001>

<bundles_post_ra>
// kernel: tpu_custom_call.1
= control target key start
LH: loop header
LB: loop body
LE: loop exit
PB: predicated region body
PF: predicated region fallthrough
CT: control target
= control target key end

     0   :  { %9 = vsyncpa [#allocation3], 0  ;;  %s3948_s0 = inlined_call_operand.hbm [shape: f32[2,4,256], index: 0, kind: input, shape index: {}]   ;;  %s3949_s1 = inlined_call_operand.vmem [shape: f32[8,4], index: 1, kind: input, shape index: {}]   ;;  %s3950_s2 = inlined_call_operand.vmem [shape: f32[8,1], index: 2, kind: input, shape index: {}]   ;;  %s3951_s3 = inlined_call_operand.hbm [shape: f32[256,3840], index: 3, kind: input, shape index: {}]   ;;  %s3952_s4 = inlined_call_operand.hbm [shape: f32[2,8,3840], index: 4, kind: output, shape index: {}]  }
   0x1   :  { %11 = vsyncpa [#allocation3 + $0x1], 0 }
   0x2   :  { %12 = vsyncpa [#allocation6], 0 }
   0x3   :  { %13 = vsyncpa [#allocation4], 0 }
   0x4   :  { %15 = vsyncpa [#allocation4 + $0x1], 0  ;;  %s3673_s15 = smov 0   ;;  %s3675_s16 = smov 0  }
   0x5   :  { %s3677_s17 = smov 0   ;;  %s3679_s18 = smov 0  }
   0x6 LB: > { %s3694_s19 = sadd.s32 4294967295, %s3639_s18   ;;  %s2469_s20 = sadd.s32 4294967294, %s3639_s18   ;;  %s3639_s18 = sphi %s3679_s18, %s3972_s18   ;;  %s3635_s17 = sphi %s3677_s17, %s3971_s17   ;;  %s3631_s16 = sphi %s3675_s16, %s3970_s16   ;;  %s3627_s15 = sphi %s3673_s15, %s3969_s15  }
   0x7   : > { %p41_p0 = scmp.ne.s32.totalorder %s3631_s16, %s3627_s15  ;;  %p3953_p1 = scmp.eq.s32.totalorder %s3694_s19, 0 }
   0x8   : > { %p134_p3 = scmp.eq.s32.totalorder %s2469_s20, 1  ;;  %p2470_p5 = scmp.ge.s32.totalorder %s3639_s18, 1 }
   0x9   : > { %p3703_p4 = por %p3953_p1, %p41_p0  ;;  %p141_p7 = scmp.lt.s32.totalorder %s3639_s18, 3 }
   0xa   : > { %p3708_p6 = por %p134_p3, %p41_p0  ;;  %s3641_s24 = smov [#allocation5]  }
   0xb   : > { %s3956_s21 = scalar_select %p3703_p4, 1, 0 }
   0xc   : > { %s3957_s22 = scalar_select %p3708_p6, 1, 0 }
   0xd   : > { %p3713_p8 = pnand %p2470_p5, %p141_p7  ;;  %s159_s25 = sshll.u32 %s3641_s24, 4  ;;  %s3717_s25 = int_to_ptr.vmem [resolvable:$true] %s159_s25 }
   0xe   : > { %s3729_s27 = sadd.s32 1, %s3639_s18   ;;  %s28_s28 = sadd.s32 1, %s3635_s17 }
   0xf   : > { %s3958_s23 = scalar_select %p3713_p8, 1, 0 }
  0x10   : > { %p3456_p9 = pneg %p3713_p8  ;;  %s25_s29 = ssub.s32 %s3639_s18, %s3729_s27 }
  0x11   : > { %s3511_s6 = scalar_lea.hbm %s3951_s3, 122880 }
  0x12   : > { %p3724_p11 = pnand %p3456_p9, %p3953_p1  ;;  %p3512_p12 = scmp.ne.s32.totalorder %s3951_s3, %s3511_s6 }
  0x13   : > { %p3518_p5 = scmp.lt.u32.totalorder %s3511_s6, %s3951_s3 }
  0x14   : > { %p3513_p13 = pneg %p3724_p11 }
  0x16   : > { %p3514_p0 = pnand %p3513_p13, %p3512_p12 }
  0x18   : > { %p3515_p3 = pneg %p3514_p0 }
  0x1a   : > { %p3520_p7 = pnand %p3518_p5, %p3515_p3 }
  0x1c   : > { %3523 = shalt.err (!%p3520_p7)
}
  0x1d   : > { %s3524_s11 = scalar_lea.vmem %s3717_s25, 122880  ;;  %p3532_p2 = scmp.lt.s32.totalorder %s3717_s25, %s3717_s25 }
  0x1e   : > { %p3525_p9 = scmp.ne.s32.totalorder %s3717_s25, %s3524_s11  ;;  %p3533_p6 = scmp.lt.s32.totalorder %s3524_s11, %s3524_s11 }
  0x20   : > { %p3527_p10 = pnand %p3525_p9, %p3513_p13  ;;  %p3534_p4 = por %p3533_p6, %p3532_p2 }
  0x22   : > { %p3528_p1 = pneg %p3527_p10 }
  0x24   : > { %p3535_p8 = pnand %p3534_p4, %p3528_p1 }
  0x26   : > { %3538 = shalt.err (!%p3535_p8)
}
  0x27   : > { %s3642_s12 = smov 3840   ;;  %s3643_s13 = smov 240  }
  0x28   : > { %3459 = dma.hbm_to_vmem [thread:$0]  (!%p3724_p11), %s3951_s3, 122880, %s3717_s25, [#allocation6], %s3642_s12, %s3642_s12, %s3643_s13  }
  0x29   : > { %p26_p2 = scmp.eq.s32.totalorder %s25_s29, 0  ;;  %p35_p1 = scmp.ne.s32.totalorder %s3635_s17, %s3631_s16 }
  0x2a   : > { %p36_p4 = scmp.eq.s32.totalorder %s3639_s18, 0  ;;  %p3469_p6 = scmp.lt.s32.totalorder %s3639_s18, 2 }
  0x2b   : > { %s3760_s24 = scalar_select %p26_p2, %s3635_s17, %s28_s28  }
  0x2c   : > { %p37_p8 = por %p36_p4, %p35_p1  ;;  %p3960_p10 = scmp.eq.s32.totalorder %s3694_s19, 1 }
  0x2d   : > { %s173_s5 = sand.u32 1, %s3635_s17   ;;  %s2485_s6 = sshll.u32 %s3639_s18, 7 }
  0x2e   : > { %p3764_p12 = por %p3960_p10, %p35_p1  ;;  %s2473_s7 = sshll.u32 %s173_s5, 3 }
  0x2f   : > { %s3773_s9 = scalar_lea.hbm %s3948_s0, %s2485_s6  ;;  %s177_s25 = scalar_lea.vmem [#allocation2], %s2473_s7 }
  0x30   : > { %s185_s28 = sshll.u32 %s177_s25, 4  ;;  %p3775_p11 = pnand %p3469_p6, %p37_p8  ;;  %s3779_s28 = int_to_ptr.vmem [resolvable:$true] %s185_s28 }
  0x31   : > { %s174_s10 = scalar_lea.sflag [#allocation3], %s173_s5  ;;  %s3539_s11 = scalar_lea.hbm %s3773_s9, 128 }
  0x32   : > { %p3540_p13 = scmp.ne.s32.totalorder %s3773_s9, %s3539_s11  ;;  %p3541_p0 = pneg %p3775_p11 }
  0x33   : > { %s3544_s14 = scalar_lea.hbm %s3948_s0, 256  ;;  %p3545_p7 = scmp.lt.u32.totalorder %s3773_s9, %s3948_s0 }
  0x34   : > { %p3542_p3 = pnand %p3541_p0, %p3540_p13  ;;  %p3546_p9 = scmp.lt.u32.totalorder %s3544_s14, %s3539_s11 }
  0x35   : > { %p3548_p1 = scmp.lt.u32.totalorder %s3539_s11, %s3773_s9 }
  0x36   : > { %p3543_p5 = pneg %p3542_p3  ;;  %p3547_p2 = por %p3546_p9, %p3545_p7 }
  0x38   : > { %p3549_p4 = por %p3548_p1, %p3547_p2 }
  0x3a   : > { %p3550_p6 = pnand %p3549_p4, %p3543_p5 }
  0x3c   : > { %3553 = shalt.err (!%p3550_p6)
}
  0x3d   : > { %s3554_s5 = scalar_lea.vmem %s3779_s28, 128  ;;  %s3644_s7 = smov [#allocation2]  }
  0x3e   : > { %p3555_p8 = scmp.ne.s32.totalorder %s3779_s28, %s3554_s5  ;;  %s3559_s26 = sshll.u32 %s3644_s7, 4  ;;  %s3560_s26 = int_to_ptr.vmem [resolvable:$false] %s3559_s26 }
  0x3f   : > { %s3561_s8 = scalar_lea.vmem %s3560_s26, 256  ;;  %p3562_p3 = scmp.lt.s32.totalorder %s3779_s28, %s3560_s26 }
  0x40   : > { %p3557_p10 = pnand %p3555_p8, %p3541_p0  ;;  %p3563_p7 = scmp.lt.s32.totalorder %s3561_s8, %s3554_s5 }
  0x42   : > { %p3558_p13 = pneg %p3557_p10  ;;  %p3564_p9 = por %p3563_p7, %p3562_p3 }
  0x44   : > { %p3565_p2 = pnand %p3564_p9, %p3558_p13 }
  0x46   : > { %3568 = shalt.err (!%p3565_p2)
}
  0x47   : > { %3463 = dma.hbm_to_vmem [thread:$0]  (!%p3775_p11), %s3773_s9, 128, %s3779_s28, %s174_s10  }
  0x48   : > { %p3963_p5 = scmp.ne.s32.totalorder %s3958_s23, 0 }
  0x49   : > { %s3809_s25 = sand.u32 (!%p3963_p5), 1, %s3631_s16   ;;  %p3964_p0 = scmp.ne.s32.totalorder (!%p3963_p5), %s3956_s21, 0 }
  0x4a   : > { %194 = sbr.rel (%p3963_p5) target bundleno = 981 (0x3d5), region = 36  ;;  %s2477_s11 = sshll.u32 (!%p3963_p5), %s3809_s25, 3 }
  0x4b   : > { %s197_s12 = scalar_lea.sflag (!%p3963_p5), [#allocation3], %s3809_s25  ;;  %s200_s13 = scalar_lea.vmem (!%p3963_p5), [#allocation2], %s2477_s11 }
  0x51   : > { %3614 = dma.done.wait (%p3964_p0), %s197_s12, 128  }
  0x52   : > { %3616 = vsyncadd (%p3964_p0), %s197_s12, 4294967168  ;;  %p3965_p1 = scmp.eq.s32.totalorder %s3694_s19, 0 }
  0x54   : > { %3618 = dma.done.wait (%p3965_p1), [#allocation6], 122880   ;;  %p3966_p11 = pmov %p3965_p1 }
  0x55   : > { %v3645_v0 = vmov 0.0   ;;  %v3646_v1 = vmov 0   ;;  %v230_v2 = vld [vmem:[%s200_s13] sm:$0xff]  ;;  %vm243_vm0 = vcmask 1043456   ;;  %v320_v6 = vld [vmem:[#allocation5 + $0x8] sm:$0xff]  ;;  %vm239_vm1 = vcmask 31744  }
  0x56   : > { %3620 = vsyncadd (%p3966_p11), [#allocation6], 4294844416  ;;  %312 = vmatprep.mubr.f32.mxu0 %v3645_v0  ;;  %3509 = vset.pattern.permute.xlu0 %v3646_v1  ;;  %v229_v3 = vld [vmem:[%s3949_s1] sm:$0xff]  ;;  %v238_v5 = vcombine.high %v230_v2, %v230_v2  ;;  %v350_v7 = vld [vmem:[#allocation5 + $0xf8] sm:$0xff]  ;;  %s3446_s21 = smul.u32 240, %s3809_s25  ;;  %s2375_s26 = scalar_lea.sflag [#allocation4], %s3809_s25 }
  0x57   : > { %v231_v4 = vld [vmem:[%s3950_s2] sm:$0xff]  ;;  %v322_v8 = vld [vmem:[#allocation5 + $0x18] sm:$0xff]  ;;  %v2486_v9 = vpack.c.bf16 %v350_v7, %v320_v6  ;;  %v352_v10 = vld [vmem:[#allocation5 + $0x108] sm:$0xff]  ;;  %s3447_s14 = smul.u32 3840, %s3694_s19  ;;  %s3647_s19 = smov [#allocation7]  }
  0x58   : > { %234 = vperm.xlu0 %3509, %v231_v4   ;;  %v319_v11 = vld [vmem:[#allocation5] sm:$0xff]  ;;  %v349_v12 = vld [vmem:[#allocation5 + $0xf0] sm:$0xff]  ;;  %2479 = vmatprep.subr.msk.mxu0 %vm243_vm0, %v238_v5  ;;  %v2550_v13 = vpack.c.bf16 %v352_v10, %v322_v8  ;;  %v380_v17 = vld [vmem:[#allocation5 + $0x1e8] sm:$0xff]  ;;  %s3855_s10 = scalar_lea.vmem [#allocation7], %s3446_s21  ;;  %s3573_s11 = sshll.u32 %s3647_s19, 4  ;;  %s3574_s11 = int_to_ptr.vmem [resolvable:$false] %s3573_s11 }
  0x59   : > { %v2488_v14 = vpack.c.bf16 %v349_v12, %v319_v11  ;;  %v321_v15 = vld [vmem:[#allocation5 + $0x10] sm:$0xff]  ;;  %v351_v16 = vld [vmem:[#allocation5 + $0x100] sm:$0xff]  ;;  %2480 = vmatpush1.msk.msra.mxu0 %vm243_vm0, %v230_v2  ;;  %2487 = vmatprep.subr.bf16.mxu1 %v2486_v9  ;;  %v410_v19 = vld [vmem:[#allocation5 + $0x2d8] sm:$0xff]  ;;  %s2389_s20 = sshll.u32 %s3855_s10, 4  ;;  %s3902_s7 = scalar_lea.hbm %s3952_s4, %s3447_s14  ;;  %s3904_s20 = int_to_ptr.vmem [resolvable:$true] %s2389_s20 }
  0x5a   : > { %v2552_v18 = vpack.c.bf16 %v351_v16, %v321_v15  ;;  %v382_v20 = vld [vmem:[#allocation5 + $0x1f8] sm:$0xff]  ;;  %v412_v21 = vld [vmem:[#allocation5 + $0x2e8] sm:$0xff]  ;;  %2481 = vmatmul.mubr.msk.f32.vlgmr.msra.gmra.mrb[0].mxu0 %vm239_vm1, %v229_v3  ;;  %2551 = vmatprep.subr.bf16.mxu0 %v2550_v13  ;;  %v2490_v22 = vpack.c.bf16 %v410_v19, %v380_v17  ;;  %v379_v24 = vld [vmem:[#allocation5 + $0x1e0] sm:$0xff]  ;;  %s3569_s8 = scalar_lea.vmem %s3904_s20, 3840  ;;  %s3575_s12 = scalar_lea.vmem %s3574_s11, 7680 }
  0x5b   : > { %v2554_v23 = vpack.c.bf16 %v412_v21, %v382_v20  ;;  %v409_v25 = vld [vmem:[#allocation5 + $0x2d0] sm:$0xff]  ;;  %2489 = vmatpush1.bf16.msra.mxu1 %v2488_v14  ;;  %v411_v28 = vld [vmem:[#allocation5 + $0x2e0] sm:$0xff]  ;;  %v440_v29 = vld [vmem:[#allocation5 + $0x3c8] sm:$0xff]  ;;  %p3570_p4 = scmp.ne.s32.totalorder %s3904_s20, %s3569_s8  ;;  %p3576_p10 = scmp.lt.s32.totalorder %s3904_s20, %s3574_s11 }
  0x5c   : > { %v381_v26 = vld [vmem:[#allocation5 + $0x1f0] sm:$0xff]  ;;  %2553 = vmatpush1.bf16.msra.mxu0 %v2552_v18  ;;  %v2492_v27 = vpack.c.bf16 %v409_v25, %v379_v24  ;;  %v470_v30 = vld [vmem:[#allocation5 + $0x4b8] sm:$0xff]  ;;  %2491 = vmatprep.subr.bf16.mxu1 %v2490_v22  ;;  %v472_v34 = vld [vmem:[#allocation5 + $0x4c8] sm:$0xff]  ;;  %p3577_p13 = scmp.lt.s32.totalorder %s3575_s12, %s3569_s8 }
  0x5d   : > { %2555 = vmatprep.subr.bf16.mxu0 %v2554_v23  ;;  %v2556_v31 = vpack.c.bf16 %v411_v28, %v381_v26  ;;  %v2494_v32 = vpack.c.bf16 %v470_v30, %v440_v29  ;;  %v442_v33 = vld [vmem:[#allocation5 + $0x3d8] sm:$0xff]  ;;  %v439_v35 = vld [vmem:[#allocation5 + $0x3c0] sm:$0xff]  ;;  %v469_v37 = vld [vmem:[#allocation5 + $0x4b0] sm:$0xff]  ;;  %p3571_p6 = pnand %p3570_p4, %p3764_p12 }
  0x5e   : > { %v2558_v36 = vpack.c.bf16 %v472_v34, %v442_v33  ;;  %v441_v38 = vld [vmem:[#allocation5 + $0x3d0] sm:$0xff]  ;;  %v471_v39 = vld [vmem:[#allocation5 + $0x4c0] sm:$0xff]  ;;  %v500_v40 = vld [vmem:[#allocation5 + $0x5a8] sm:$0xff]  ;;  %v2496_v43 = vpack.c.bf16 %v469_v37, %v439_v35  ;;  %p3578_p3 = por %p3577_p13, %p3576_p10 }
  0x5f   : > { %v530_v41 = vld [vmem:[#allocation5 + $0x698] sm:$0xff]  ;;  %2493 = vmatpush1.bf16.msra.mxu1 %v2492_v27  ;;  %v2560_v44 = vpack.c.bf16 %v471_v39, %v441_v38  ;;  %v532_v45 = vld [vmem:[#allocation5 + $0x6a8] sm:$0xff]  ;;  %v499_v46 = vld [vmem:[#allocation5 + $0x5a0] sm:$0xff]  ;;  %p3572_p8 = pneg %p3571_p6 }
  0x60   : > { %v502_v42 = vld [vmem:[#allocation5 + $0x5b8] sm:$0xff]  ;;  %2557 = vmatpush1.bf16.msra.mxu0 %v2556_v31  ;;  %v529_v47 = vld [vmem:[#allocation5 + $0x690] sm:$0xff]  ;;  %2495 = vmatprep.subr.bf16.mxu1 %v2494_v32  ;;  %v2498_v48 = vpack.c.bf16 %v530_v41, %v500_v40  ;;  %v531_v51 = vld [vmem:[#allocation5 + $0x6a0] sm:$0xff] }
  0x61   : > { %2559 = vmatprep.subr.bf16.mxu0 %v2558_v36  ;;  %v2562_v49 = vpack.c.bf16 %v532_v45, %v502_v42  ;;  %v501_v50 = vld [vmem:[#allocation5 + $0x5b0] sm:$0xff]  ;;  %v560_v52 = vld [vmem:[#allocation5 + $0x788] sm:$0xff]  ;;  %v590_v53 = vld [vmem:[#allocation5 + $0x878] sm:$0xff]  ;;  %v2500_v56 = vpack.c.bf16 %v529_v47, %v499_v46  ;;  %p3579_p7 = pnand %p3578_p3, %p3572_p8 }
  0x62   : > { %v562_v54 = vld [vmem:[#allocation5 + $0x798] sm:$0xff]  ;;  %v592_v55 = vld [vmem:[#allocation5 + $0x888] sm:$0xff]  ;;  %v2564_v57 = vpack.c.bf16 %v531_v51, %v501_v50  ;;  %v559_v58 = vld [vmem:[#allocation5 + $0x780] sm:$0xff]  ;;  %v2502_v60 = vpack.c.bf16 %v590_v53, %v560_v52 }
  0x63   : > { %2497 = vmatpush1.bf16.msra.mxu1 %v2496_v43  ;;  %v589_v59 = vld [vmem:[#allocation5 + $0x870] sm:$0xff]  ;;  %v2566_v61 = vpack.c.bf16 %v592_v55, %v562_v54  ;;  %v591_v63 = vld [vmem:[#allocation5 + $0x880] sm:$0xff]  ;;  %v620_v0 = vld [vmem:[#allocation5 + $0x968] sm:$0xff] }
  0x64   : > { %2561 = vmatpush1.bf16.msra.mxu0 %v2560_v44  ;;  %2499 = vmatprep.subr.bf16.mxu1 %v2498_v48  ;;  %v561_v62 = vld [vmem:[#allocation5 + $0x790] sm:$0xff]  ;;  %v650_v1 = vld [vmem:[#allocation5 + $0xa58] sm:$0xff]  ;;  %v652_v3 = vld [vmem:[#allocation5 + $0xa68] sm:$0xff]  ;;  %v2504_v4 = vpack.c.bf16 %v589_v59, %v559_v58 }
  0x65   : > { %2563 = vmatprep.subr.bf16.mxu0 %v2562_v49  ;;  %v622_v2 = vld [vmem:[#allocation5 + $0x978] sm:$0xff]  ;;  %v2568_v5 = vpack.c.bf16 %v591_v63, %v561_v62  ;;  %v619_v6 = vld [vmem:[#allocation5 + $0x960] sm:$0xff]  ;;  %v649_v7 = vld [vmem:[#allocation5 + $0xa50] sm:$0xff]  ;;  %v2506_v8 = vpack.c.bf16 %v650_v1, %v620_v0 }
  0x66   : > { %v2570_v9 = vpack.c.bf16 %v652_v3, %v622_v2  ;;  %v621_v10 = vld [vmem:[#allocation5 + $0x970] sm:$0xff]  ;;  %v651_v11 = vld [vmem:[#allocation5 + $0xa60] sm:$0xff]  ;;  %v680_v12 = vld [vmem:[#allocation5 + $0xb48] sm:$0xff]  ;;  %v2508_v16 = vpack.c.bf16 %v649_v7, %v619_v6 }
  0x67   : > { %2501 = vmatpush1.bf16.msra.mxu1 %v2500_v56  ;;  %v710_v13 = vld [vmem:[#allocation5 + $0xc38] sm:$0xff]  ;;  %v712_v15 = vld [vmem:[#allocation5 + $0xc48] sm:$0xff]  ;;  %v2572_v17 = vpack.c.bf16 %v651_v11, %v621_v10  ;;  %v679_v18 = vld [vmem:[#allocation5 + $0xb40] sm:$0xff] }
  0x68   : > { %2565 = vmatpush1.bf16.msra.mxu0 %v2564_v57  ;;  %2503 = vmatprep.subr.bf16.mxu1 %v2502_v60  ;;  %v682_v14 = vld [vmem:[#allocation5 + $0xb58] sm:$0xff]  ;;  %v709_v19 = vld [vmem:[#allocation5 + $0xc30] sm:$0xff]  ;;  %v2510_v20 = vpack.c.bf16 %v710_v13, %v680_v12  ;;  %v711_v23 = vld [vmem:[#allocation5 + $0xc40] sm:$0xff] }
  0x69   : > { %2567 = vmatprep.subr.bf16.mxu0 %v2566_v61  ;;  %v2574_v21 = vpack.c.bf16 %v712_v15, %v682_v14  ;;  %v681_v22 = vld [vmem:[#allocation5 + $0xb50] sm:$0xff]  ;;  %v740_v24 = vld [vmem:[#allocation5 + $0xd28] sm:$0xff]  ;;  %v770_v25 = vld [vmem:[#allocation5 + $0xe18] sm:$0xff]  ;;  %v2512_v28 = vpack.c.bf16 %v709_v19, %v679_v18 }
  0x6a   : > { %v742_v26 = vld [vmem:[#allocation5 + $0xd38] sm:$0xff]  ;;  %v772_v27 = vld [vmem:[#allocation5 + $0xe28] sm:$0xff]  ;;  %v2576_v29 = vpack.c.bf16 %v711_v23, %v681_v22  ;;  %v739_v30 = vld [vmem:[#allocation5 + $0xd20] sm:$0xff]  ;;  %v2514_v32 = vpack.c.bf16 %v770_v25, %v740_v24 }
  0x6b   : > { %2505 = vmatpush1.bf16.msra.mxu1 %v2504_v4  ;;  %v769_v31 = vld [vmem:[#allocation5 + $0xe10] sm:$0xff]  ;;  %v2578_v33 = vpack.c.bf16 %v772_v27, %v742_v26  ;;  %v771_v35 = vld [vmem:[#allocation5 + $0xe20] sm:$0xff]  ;;  %v800_v36 = vld [vmem:[#allocation5 + $0xf08] sm:$0xff] }
  0x6c   : > { %2569 = vmatpush1.bf16.msra.mxu0 %v2568_v5  ;;  %2507 = vmatprep.subr.bf16.mxu1 %v2506_v8  ;;  %v741_v34 = vld [vmem:[#allocation5 + $0xd30] sm:$0xff]  ;;  %v830_v37 = vld [vmem:[#allocation5 + $0xff8] sm:$0xff]  ;;  %v832_v39 = vld [vmem:[#allocation5 + $0x1008] sm:$0xff]  ;;  %v2516_v40 = vpack.c.bf16 %v769_v31, %v739_v30 }
  0x6d   : > { %2571 = vmatprep.subr.bf16.mxu0 %v2570_v9  ;;  %v802_v38 = vld [vmem:[#allocation5 + $0xf18] sm:$0xff]  ;;  %v2580_v41 = vpack.c.bf16 %v771_v35, %v741_v34  ;;  %v799_v42 = vld [vmem:[#allocation5 + $0xf00] sm:$0xff]  ;;  %v829_v43 = vld [vmem:[#allocation5 + $0xff0] sm:$0xff]  ;;  %v2518_v44 = vpack.c.bf16 %v830_v37, %v800_v36 }
  0x6e   : > { %v2582_v45 = vpack.c.bf16 %v832_v39, %v802_v38  ;;  %v801_v46 = vld [vmem:[#allocation5 + $0xf10] sm:$0xff]  ;;  %v831_v47 = vld [vmem:[#allocation5 + $0x1000] sm:$0xff]  ;;  %v860_v48 = vld [vmem:[#allocation5 + $0x10e8] sm:$0xff]  ;;  %v2520_v52 = vpack.c.bf16 %v829_v43, %v799_v42 }
  0x6f   : > { %2509 = vmatpush1.bf16.msra.mxu1 %v2508_v16  ;;  %v890_v49 = vld [vmem:[#allocation5 + $0x11d8] sm:$0xff]  ;;  %v892_v51 = vld [vmem:[#allocation5 + $0x11e8] sm:$0xff]  ;;  %v2584_v53 = vpack.c.bf16 %v831_v47, %v801_v46  ;;  %v859_v54 = vld [vmem:[#allocation5 + $0x10e0] sm:$0xff] }
  0x70   : > { %2573 = vmatpush1.bf16.msra.mxu0 %v2572_v17  ;;  %2511 = vmatprep.subr.bf16.mxu1 %v2510_v20  ;;  %v862_v50 = vld [vmem:[#allocation5 + $0x10f8] sm:$0xff]  ;;  %v889_v55 = vld [vmem:[#allocation5 + $0x11d0] sm:$0xff]  ;;  %v2522_v56 = vpack.c.bf16 %v890_v49, %v860_v48  ;;  %v891_v59 = vld [vmem:[#allocation5 + $0x11e0] sm:$0xff] }
  0x71   : > { %2575 = vmatprep.subr.bf16.mxu0 %v2574_v21  ;;  %v2586_v57 = vpack.c.bf16 %v892_v51, %v862_v50  ;;  %v861_v58 = vld [vmem:[#allocation5 + $0x10f0] sm:$0xff]  ;;  %v920_v60 = vld [vmem:[#allocation5 + $0x12c8] sm:$0xff]  ;;  %v950_v61 = vld [vmem:[#allocation5 + $0x13b8] sm:$0xff]  ;;  %v2524_v0 = vpack.c.bf16 %v889_v55, %v859_v54 }
  0x72   : > { %v922_v62 = vld [vmem:[#allocation5 + $0x12d8] sm:$0xff]  ;;  %v952_v63 = vld [vmem:[#allocation5 + $0x13c8] sm:$0xff]  ;;  %v2588_v1 = vpack.c.bf16 %v891_v59, %v861_v58  ;;  %v919_v2 = vld [vmem:[#allocation5 + $0x12c0] sm:$0xff]  ;;  %v2526_v4 = vpack.c.bf16 %v950_v61, %v920_v60 }
  0x73   : > { %2513 = vmatpush1.bf16.msra.mxu1 %v2512_v28  ;;  %v949_v3 = vld [vmem:[#allocation5 + $0x13b0] sm:$0xff]  ;;  %v2590_v5 = vpack.c.bf16 %v952_v63, %v922_v62  ;;  %v951_v7 = vld [vmem:[#allocation5 + $0x13c0] sm:$0xff]  ;;  %v980_v8 = vld [vmem:[#allocation5 + $0x14a8] sm:$0xff] }
  0x74   : > { %2577 = vmatpush1.bf16.msra.mxu0 %v2576_v29  ;;  %2515 = vmatprep.subr.bf16.mxu1 %v2514_v32  ;;  %v921_v6 = vld [vmem:[#allocation5 + $0x12d0] sm:$0xff]  ;;  %v1010_v9 = vld [vmem:[#allocation5 + $0x1598] sm:$0xff]  ;;  %v1012_v11 = vld [vmem:[#allocation5 + $0x15a8] sm:$0xff]  ;;  %v2528_v12 = vpack.c.bf16 %v949_v3, %v919_v2 }
  0x75   : > { %2579 = vmatprep.subr.bf16.mxu0 %v2578_v33  ;;  %v982_v10 = vld [vmem:[#allocation5 + $0x14b8] sm:$0xff]  ;;  %v2592_v13 = vpack.c.bf16 %v951_v7, %v921_v6  ;;  %v979_v14 = vld [vmem:[#allocation5 + $0x14a0] sm:$0xff]  ;;  %v1009_v15 = vld [vmem:[#allocation5 + $0x1590] sm:$0xff]  ;;  %v2530_v16 = vpack.c.bf16 %v1010_v9, %v980_v8 }
  0x76   : > { %v2594_v17 = vpack.c.bf16 %v1012_v11, %v982_v10  ;;  %v981_v18 = vld [vmem:[#allocation5 + $0x14b0] sm:$0xff]  ;;  %v1011_v19 = vld [vmem:[#allocation5 + $0x15a0] sm:$0xff]  ;;  %v1040_v20 = vld [vmem:[#allocation5 + $0x1688] sm:$0xff]  ;;  %v2532_v24 = vpack.c.bf16 %v1009_v15, %v979_v14 }
  0x77   : > { %2517 = vmatpush1.bf16.msra.mxu1 %v2516_v40  ;;  %v1070_v21 = vld [vmem:[#allocation5 + $0x1778] sm:$0xff]  ;;  %v1072_v23 = vld [vmem:[#allocation5 + $0x1788] sm:$0xff]  ;;  %v2596_v25 = vpack.c.bf16 %v1011_v19, %v981_v18  ;;  %v1039_v26 = vld [vmem:[#allocation5 + $0x1680] sm:$0xff] }
  0x78   : > { %2581 = vmatpush1.bf16.msra.mxu0 %v2580_v41  ;;  %2519 = vmatprep.subr.bf16.mxu1 %v2518_v44  ;;  %v1042_v22 = vld [vmem:[#allocation5 + $0x1698] sm:$0xff]  ;;  %v1069_v27 = vld [vmem:[#allocation5 + $0x1770] sm:$0xff]  ;;  %v2534_v28 = vpack.c.bf16 %v1070_v21, %v1040_v20  ;;  %v1071_v31 = vld [vmem:[#allocation5 + $0x1780] sm:$0xff] }
  0x79   : > { %2583 = vmatprep.subr.bf16.mxu0 %v2582_v45  ;;  %v2598_v29 = vpack.c.bf16 %v1072_v23, %v1042_v22  ;;  %v1041_v30 = vld [vmem:[#allocation5 + $0x1690] sm:$0xff]  ;;  %v1100_v32 = vld [vmem:[#allocation5 + $0x1868] sm:$0xff]  ;;  %v1130_v33 = vld [vmem:[#allocation5 + $0x1958] sm:$0xff]  ;;  %v2536_v36 = vpack.c.bf16 %v1069_v27, %v1039_v26 }
  0x7a   : > { %v1102_v34 = vld [vmem:[#allocation5 + $0x1878] sm:$0xff]  ;;  %v1132_v35 = vld [vmem:[#allocation5 + $0x1968] sm:$0xff]  ;;  %v2600_v37 = vpack.c.bf16 %v1071_v31, %v1041_v30  ;;  %v1099_v38 = vld [vmem:[#allocation5 + $0x1860] sm:$0xff]  ;;  %v2538_v40 = vpack.c.bf16 %v1130_v33, %v1100_v32 }
  0x7b   : > { %2521 = vmatpush1.bf16.msra.mxu1 %v2520_v52  ;;  %v1129_v39 = vld [vmem:[#allocation5 + $0x1950] sm:$0xff]  ;;  %v2602_v41 = vpack.c.bf16 %v1132_v35, %v1102_v34  ;;  %v1131_v43 = vld [vmem:[#allocation5 + $0x1960] sm:$0xff]  ;;  %v1160_v44 = vld [vmem:[#allocation5 + $0x1a48] sm:$0xff] }
  0x7c   : > { %2585 = vmatpush1.bf16.msra.mxu0 %v2584_v53  ;;  %2523 = vmatprep.subr.bf16.mxu1 %v2522_v56  ;;  %v1101_v42 = vld [vmem:[#allocation5 + $0x1870] sm:$0xff]  ;;  %v1190_v45 = vld [vmem:[#allocation5 + $0x1b38] sm:$0xff]  ;;  %v1192_v47 = vld [vmem:[#allocation5 + $0x1b48] sm:$0xff]  ;;  %v2540_v48 = vpack.c.bf16 %v1129_v39, %v1099_v38 }
  0x7d   : > { %2587 = vmatprep.subr.bf16.mxu0 %v2586_v57  ;;  %v1162_v46 = vld [vmem:[#allocation5 + $0x1a58] sm:$0xff]  ;;  %v2604_v49 = vpack.c.bf16 %v1131_v43, %v1101_v42  ;;  %v1159_v50 = vld [vmem:[#allocation5 + $0x1a40] sm:$0xff]  ;;  %v2542_v51 = vpack.c.bf16 %v1190_v45, %v1160_v44  ;;  %v1189_v53 = vld [vmem:[#allocation5 + $0x1b30] sm:$0xff] }
  0x7e   : > { %v2606_v52 = vpack.c.bf16 %v1192_v47, %v1162_v46  ;;  %v1161_v54 = vld [vmem:[#allocation5 + $0x1a50] sm:$0xff]  ;;  %v1191_v55 = vld [vmem:[#allocation5 + $0x1b40] sm:$0xff]  ;;  %v1220_v56 = vld [vmem:[#allocation5 + $0x1c28] sm:$0xff]  ;;  %v2544_v58 = vpack.c.bf16 %v1189_v53, %v1159_v50 }
  0x7f   : > { %2525 = vmatpush1.bf16.msra.mxu1 %v2524_v0  ;;  %v1250_v57 = vld [vmem:[#allocation5 + $0x1d18] sm:$0xff]  ;;  %v2608_v59 = vpack.c.bf16 %v1191_v55, %v1161_v54  ;;  %v1252_v62 = vld [vmem:[#allocation5 + $0x1d28] sm:$0xff]  ;;  %v1219_v0 = vld [vmem:[#allocation5 + $0x1c20] sm:$0xff] }
  0x80   : > { %2589 = vmatpush1.bf16.msra.mxu0 %v2588_v1  ;;  %2527 = vmatprep.subr.bf16.mxu1 %v2526_v4  ;;  %v2546_v60 = vpack.c.bf16 %v1250_v57, %v1220_v56  ;;  %v1222_v61 = vld [vmem:[#allocation5 + $0x1c38] sm:$0xff]  ;;  %v1249_v1 = vld [vmem:[#allocation5 + $0x1d10] sm:$0xff]  ;;  %v1251_v4 = vld [vmem:[#allocation5 + $0x1d20] sm:$0xff] }
  0x81   : > { %2591 = vmatprep.subr.bf16.mxu0 %v2590_v5  ;;  %v2610_v63 = vpack.c.bf16 %v1252_v62, %v1222_v61  ;;  %v1221_v2 = vld [vmem:[#allocation5 + $0x1c30] sm:$0xff]  ;;  %v2548_v3 = vpack.c.bf16 %v1249_v1, %v1219_v0  ;;  %v324_v6 = vld [vmem:[#allocation5 + $0x28] sm:$0xff]  ;;  %v354_v7 = vld [vmem:[#allocation5 + $0x118] sm:$0xff] }
  0x82   : > { %v2612_v5 = vpack.c.bf16 %v1251_v4, %v1221_v2  ;;  %v326_v8 = vld [vmem:[#allocation5 + $0x38] sm:$0xff]  ;;  %v2614_v9 = vpack.c.bf16 %v354_v7, %v324_v6  ;;  %v356_v10 = vld [vmem:[#allocation5 + $0x128] sm:$0xff]  ;;  %v353_v14 = vld [vmem:[#allocation5 + $0x110] sm:$0xff] }
  0x83   : > { %2529 = vmatpush1.bf16.msra.mxu1 %v2528_v12  ;;  %v2678_v11 = vpack.c.bf16 %v356_v10, %v326_v8  ;;  %v323_v12 = vld [vmem:[#allocation5 + $0x20] sm:$0xff]  ;;  %v325_v15 = vld [vmem:[#allocation5 + $0x30] sm:$0xff]  ;;  %v384_v18 = vld [vmem:[#allocation5 + $0x208] sm:$0xff] }
  0x84   : > { %2593 = vmatpush1.bf16.msra.mxu0 %v2592_v13  ;;  %2531 = vmatprep.subr.bf16.mxu1 %v2530_v16  ;;  %v355_v16 = vld [vmem:[#allocation5 + $0x120] sm:$0xff]  ;;  %v414_v20 = vld [vmem:[#allocation5 + $0x2f8] sm:$0xff]  ;;  %v416_v22 = vld [vmem:[#allocation5 + $0x308] sm:$0xff] }
  0x85   : > { %2595 = vmatprep.subr.bf16.mxu0 %v2594_v17  ;;  %v386_v21 = vld [vmem:[#allocation5 + $0x218] sm:$0xff]  ;;  %v383_v26 = vld [vmem:[#allocation5 + $0x200] sm:$0xff]  ;;  %v413_v27 = vld [vmem:[#allocation5 + $0x2f0] sm:$0xff]  ;;  %v2618_v32 = vpack.c.bf16 %v414_v20, %v384_v18 }
  0x86   : > { %v415_v30 = vld [vmem:[#allocation5 + $0x300] sm:$0xff]  ;;  %v444_v31 = vld [vmem:[#allocation5 + $0x3e8] sm:$0xff]  ;;  %v2682_v33 = vpack.c.bf16 %v416_v22, %v386_v21  ;;  %v474_v34 = vld [vmem:[#allocation5 + $0x4d8] sm:$0xff] }
  0x87   : > { %2533 = vmatpush1.bf16.msra.mxu1 %v2532_v24  ;;  %v2616_v24 = vpack.c.bf16 %v353_v14, %v323_v12  ;;  %v446_v35 = vld [vmem:[#allocation5 + $0x3f8] sm:$0xff]  ;;  %v443_v39 = vld [vmem:[#allocation5 + $0x3e0] sm:$0xff]  ;;  %v445_v43 = vld [vmem:[#allocation5 + $0x3f0] sm:$0xff] }
  0x88   : > { %2597 = vmatpush1.bf16.msra.mxu0 %v2596_v25  ;;  %2535 = vmatprep.subr.bf16.mxu1 %v2534_v28  ;;  %v2680_v25 = vpack.c.bf16 %v355_v16, %v325_v15  ;;  %v475_v44 = vld [vmem:[#allocation5 + $0x4e0] sm:$0xff]  ;;  %v504_v45 = vld [vmem:[#allocation5 + $0x5c8] sm:$0xff]  ;;  %v534_v46 = vld [vmem:[#allocation5 + $0x6b8] sm:$0xff] }
  0x89   : > { %2599 = vmatprep.subr.bf16.mxu0 %v2598_v29  ;;  %v385_v29 = vld [vmem:[#allocation5 + $0x210] sm:$0xff]  ;;  %v506_v47 = vld [vmem:[#allocation5 + $0x5d8] sm:$0xff]  ;;  %v2688_v50 = vpack.c.bf16 %v475_v44, %v445_v43  ;;  %v2626_v53 = vpack.c.bf16 %v534_v46, %v504_v45  ;;  %v535_v56 = vld [vmem:[#allocation5 + $0x6c0] sm:$0xff] }
  0x8a   : > { %v2684_v38 = vpack.c.bf16 %v415_v30, %v385_v29  ;;  %v505_v55 = vld [vmem:[#allocation5 + $0x5d0] sm:$0xff]  ;;  %v564_v57 = vld [vmem:[#allocation5 + $0x7a8] sm:$0xff]  ;;  %v595_v4 = vld [vmem:[#allocation5 + $0x8a0] sm:$0xff] }
  0x8b   : > { %2537 = vmatpush1.bf16.msra.mxu1 %v2536_v36  ;;  %v476_v36 = vld [vmem:[#allocation5 + $0x4e8] sm:$0xff]  ;;  %v2692_v62 = vpack.c.bf16 %v535_v56, %v505_v55  ;;  %v593_v0 = vld [vmem:[#allocation5 + $0x890] sm:$0xff]  ;;  %v654_v6 = vld [vmem:[#allocation5 + $0xa78] sm:$0xff] }
  0x8c   : > { %2601 = vmatpush1.bf16.msra.mxu0 %v2600_v37  ;;  %2539 = vmatprep.subr.bf16.mxu1 %v2538_v40  ;;  %v2620_v37 = vpack.c.bf16 %v413_v27, %v383_v26  ;;  %v473_v40 = vld [vmem:[#allocation5 + $0x4d0] sm:$0xff]  ;;  %v2686_v42 = vpack.c.bf16 %v476_v36, %v446_v35  ;;  %v626_v7 = vld [vmem:[#allocation5 + $0x998] sm:$0xff]  ;;  %v656_v8 = vld [vmem:[#allocation5 + $0xa88] sm:$0xff] }
  0x8d   : > { %2603 = vmatprep.subr.bf16.mxu0 %v2602_v41  ;;  %v2622_v41 = vpack.c.bf16 %v474_v34, %v444_v31  ;;  %v653_v12 = vld [vmem:[#allocation5 + $0xa70] sm:$0xff]  ;;  %v2698_v14 = vpack.c.bf16 %v656_v8, %v626_v7  ;;  %v655_v16 = vld [vmem:[#allocation5 + $0xa80] sm:$0xff]  ;;  %v714_v18 = vld [vmem:[#allocation5 + $0xc58] sm:$0xff] }
  0x8e   : > { %v625_v15 = vld [vmem:[#allocation5 + $0x990] sm:$0xff]  ;;  %v716_v20 = vld [vmem:[#allocation5 + $0xc68] sm:$0xff]  ;;  %v715_v30 = vld [vmem:[#allocation5 + $0xc60] sm:$0xff] }
  0x8f   : > { %2541 = vmatpush1.bf16.msra.mxu1 %v2540_v48  ;;  %v536_v48 = vld [vmem:[#allocation5 + $0x6c8] sm:$0xff]  ;;  %v2700_v22 = vpack.c.bf16 %v655_v16, %v625_v15  ;;  %v685_v29 = vld [vmem:[#allocation5 + $0xb70] sm:$0xff]  ;;  %v834_v44 = vld [vmem:[#allocation5 + $0x1018] sm:$0xff] }
  0x90   : > { %2605 = vmatpush1.bf16.msra.mxu0 %v2604_v49  ;;  %2543 = vmatprep.subr.bf16.mxu1 %v2542_v51  ;;  %v2624_v49 = vpack.c.bf16 %v473_v40, %v443_v39  ;;  %v503_v51 = vld [vmem:[#allocation5 + $0x5c0] sm:$0xff]  ;;  %v2690_v54 = vpack.c.bf16 %v536_v48, %v506_v47  ;;  %v744_v31 = vld [vmem:[#allocation5 + $0xd48] sm:$0xff]  ;;  %v2704_v36 = vpack.c.bf16 %v715_v30, %v685_v29  ;;  %v806_v45 = vld [vmem:[#allocation5 + $0xf38] sm:$0xff] }
  0x91   : > { %2607 = vmatprep.subr.bf16.mxu0 %v2606_v52  ;;  %v533_v52 = vld [vmem:[#allocation5 + $0x6b0] sm:$0xff]  ;;  %v776_v34 = vld [vmem:[#allocation5 + $0xe48] sm:$0xff]  ;;  %v894_v56 = vld [vmem:[#allocation5 + $0x11f8] sm:$0xff] }
  0x92   : > { %v2628_v61 = vpack.c.bf16 %v533_v52, %v503_v51  ;;  %v804_v43 = vld [vmem:[#allocation5 + $0xf28] sm:$0xff]  ;;  %v1014_v16 = vld [vmem:[#allocation5 + $0x15b8] sm:$0xff] }
  0x93   : > { %2545 = vmatpush1.bf16.msra.mxu1 %v2544_v58  ;;  %v594_v58 = vld [vmem:[#allocation5 + $0x898] sm:$0xff]  ;;  %v836_v46 = vld [vmem:[#allocation5 + $0x1028] sm:$0xff]  ;;  %v2646_v51 = vpack.c.bf16 %v834_v44, %v804_v43 }
  0x94   : > { %2609 = vmatpush1.bf16.msra.mxu0 %v2608_v59  ;;  %2547 = vmatprep.subr.bf16.mxu1 %v2546_v60  ;;  %v566_v59 = vld [vmem:[#allocation5 + $0x7b8] sm:$0xff]  ;;  %v596_v60 = vld [vmem:[#allocation5 + $0x8a8] sm:$0xff]  ;;  %v2630_v1 = vpack.c.bf16 %v594_v58, %v564_v57  ;;  %v2710_v52 = vpack.c.bf16 %v836_v46, %v806_v45 }
  0x95   : > { %2611 = vmatprep.subr.bf16.mxu0 %v2610_v63  ;;  %v563_v63 = vld [vmem:[#allocation5 + $0x7a0] sm:$0xff]  ;;  %v2694_v2 = vpack.c.bf16 %v596_v60, %v566_v59  ;;  %v864_v55 = vld [vmem:[#allocation5 + $0x1108] sm:$0xff]  ;;  %v866_v57 = vld [vmem:[#allocation5 + $0x1118] sm:$0xff] }
  0x96   : > { %v896_v58 = vld [vmem:[#allocation5 + $0x1208] sm:$0xff]  ;;  %v1074_v30 = vld [vmem:[#allocation5 + $0x1798] sm:$0xff] }
  0x97   : > { %2549 = vmatpush1.bf16.msra.mxu1 %v2548_v3  ;;  %v565_v3 = vld [vmem:[#allocation5 + $0x7b0] sm:$0xff]  ;;  %v984_v15 = vld [vmem:[#allocation5 + $0x14c8] sm:$0xff]  ;;  %v1106_v43 = vld [vmem:[#allocation5 + $0x1898] sm:$0xff] }
  0x98   : > { %2613 = vmatpush1.bf16.msra.mxu0 %v2612_v5  ;;  %2615 = vmatprep.subr.bf16.mxu1 %v2614_v9  ;;  %v624_v5 = vld [vmem:[#allocation5 + $0x988] sm:$0xff]  ;;  %v2632_v9 = vpack.c.bf16 %v593_v0, %v563_v63  ;;  %v2696_v10 = vpack.c.bf16 %v595_v4, %v565_v3  ;;  %v2650_v63 = vpack.c.bf16 %v894_v56, %v864_v55  ;;  %v954_v4 = vld [vmem:[#allocation5 + $0x13d8] sm:$0xff] }
  0x99   : > { %2679 = vmatprep.subr.bf16.mxu0 %v2678_v11  ;;  %v623_v11 = vld [vmem:[#allocation5 + $0x980] sm:$0xff]  ;;  %v2714_v0 = vpack.c.bf16 %v896_v58, %v866_v57  ;;  %v924_v3 = vld [vmem:[#allocation5 + $0x12e8] sm:$0xff]  ;;  %v1166_v55 = vld [vmem:[#allocation5 + $0x1a78] sm:$0xff] }
  0x9a   : > { %v2636_v21 = vpack.c.bf16 %v653_v12, %v623_v11  ;;  %v2654_v11 = vpack.c.bf16 %v954_v4, %v924_v3  ;;  %v1044_v29 = vld [vmem:[#allocation5 + $0x16a8] sm:$0xff]  ;;  %v1226_v3 = vld [vmem:[#allocation5 + $0x1c58] sm:$0xff] }
  0x9b   : > { %v1136_v44 = vld [vmem:[#allocation5 + $0x1988] sm:$0xff] }
  0x9c   : > { %v1196_v56 = vld [vmem:[#allocation5 + $0x1b68] sm:$0xff] }
  0x9d   : > { %v1256_v4 = vld [vmem:[#allocation5 + $0x1d48] sm:$0xff] }
  0xd7   : > { %v235_v13 = vpop.permute.xlu0 %234 }
 0x12d   : > { %v314_v17 = vpop.f32.mrb[0].mxu0 }
 0x12e   : > { %v316_v19 = vpop.f32.mrb[1].mxu0  ;;  %v3832_v28 = vadd.f32 %v314_v17, %v235_v13  ;;  %v684_v17 = vld [vmem:[#allocation5 + $0xb68] sm:$0xff] }
 0x12f   : > { %v3830_v23 = vadd.f32 %v316_v19, %v235_v13  ;;  %v2634_v13 = vpack.c.bf16 %v654_v6, %v624_v5  ;;  %v686_v19 = vld [vmem:[#allocation5 + $0xb78] sm:$0xff]  ;;  %v2638_v26 = vpack.c.bf16 %v714_v18, %v684_v17  ;;  %v956_v6 = vld [vmem:[#allocation5 + $0x13e8] sm:$0xff] }
 0x130   : > { %v2702_v27 = vpack.c.bf16 %v716_v20, %v686_v19  ;;  %v926_v5 = vld [vmem:[#allocation5 + $0x12f8] sm:$0xff]  ;;  %v1016_v18 = vld [vmem:[#allocation5 + $0x15c8] sm:$0xff] }
 0x131   : > { %1343 = vmatprep.mubr.f32.mxu1 %v3830_v23  ;;  %1414 = vmatprep.mubr.f32.mxu0 %v3830_v23  ;;  %v2718_v12 = vpack.c.bf16 %v956_v6, %v926_v5  ;;  %v986_v17 = vld [vmem:[#allocation5 + $0x14d8] sm:$0xff] }
 0x132   : > { %1344 = vmatmul.mubr.f32.vlgmr.msra.gmra.mrb[0].mxu1 %v3832_v28  ;;  %1415 = vmatmul.mubr.f32.vlgmr.msra.gmra.mrb[2].mxu0 %v3832_v28 }
 0x133   : > { %2617 = vmatpush1.bf16.msra.mxu1 %v2616_v24  ;;  %2681 = vmatpush1.bf16.msra.mxu0 %v2680_v25  ;;  %v683_v24 = vld [vmem:[#allocation5 + $0xb60] sm:$0xff]  ;;  %v713_v25 = vld [vmem:[#allocation5 + $0xc50] sm:$0xff] }
 0x134   : > { %1485 = vmatprep.mubr.f32.mxu1 %v3830_v23  ;;  %1556 = vmatprep.mubr.f32.mxu0 %v3830_v23  ;;  %v2640_v35 = vpack.c.bf16 %v713_v25, %v683_v24  ;;  %v2658_v24 = vpack.c.bf16 %v1014_v16, %v984_v15  ;;  %v2722_v25 = vpack.c.bf16 %v1016_v18, %v986_v17  ;;  %v330_v15 = vld [vmem:[#allocation5 + $0x58] sm:$0xff]  ;;  %v360_v16 = vld [vmem:[#allocation5 + $0x148] sm:$0xff] }
 0x135   : > { %2619 = vmatprep.subr.bf16.mxu1 %v2618_v32  ;;  %2683 = vmatprep.subr.bf16.mxu0 %v2682_v33  ;;  %v774_v32 = vld [vmem:[#allocation5 + $0xe38] sm:$0xff] }
 0x136   : > { %v746_v33 = vld [vmem:[#allocation5 + $0xd58] sm:$0xff]  ;;  %v2642_v39 = vpack.c.bf16 %v774_v32, %v744_v31  ;;  %v1076_v32 = vld [vmem:[#allocation5 + $0x17a8] sm:$0xff] }
 0x137   : > { %2621 = vmatpush1.bf16.msra.mxu1 %v2620_v37  ;;  %2685 = vmatpush1.bf16.msra.mxu0 %v2684_v38  ;;  %v743_v37 = vld [vmem:[#allocation5 + $0xd40] sm:$0xff]  ;;  %v773_v38 = vld [vmem:[#allocation5 + $0xe30] sm:$0xff]  ;;  %v2706_v40 = vpack.c.bf16 %v776_v34, %v746_v33  ;;  %v1046_v31 = vld [vmem:[#allocation5 + $0x16b8] sm:$0xff] }
 0x138   : > { %2623 = vmatprep.subr.bf16.mxu1 %v2622_v41  ;;  %2687 = vmatprep.subr.bf16.mxu0 %v2686_v42  ;;  %v745_v41 = vld [vmem:[#allocation5 + $0xd50] sm:$0xff]  ;;  %v775_v42 = vld [vmem:[#allocation5 + $0xe40] sm:$0xff]  ;;  %v2644_v47 = vpack.c.bf16 %v773_v38, %v743_v37  ;;  %v2662_v37 = vpack.c.bf16 %v1074_v30, %v1044_v29  ;;  %v2726_v38 = vpack.c.bf16 %v1076_v32, %v1046_v31  ;;  %v390_v29 = vld [vmem:[#allocation5 + $0x238] sm:$0xff] }
 0x139   : > { %v2708_v48 = vpack.c.bf16 %v775_v42, %v745_v41  ;;  %v1104_v41 = vld [vmem:[#allocation5 + $0x1888] sm:$0xff]  ;;  %v1134_v42 = vld [vmem:[#allocation5 + $0x1978] sm:$0xff] }
 0x13a   : > { %v420_v30 = vld [vmem:[#allocation5 + $0x328] sm:$0xff] }
 0x13b   : > { %2625 = vmatpush1.bf16.msra.mxu1 %v2624_v49  ;;  %2689 = vmatpush1.bf16.msra.mxu0 %v2688_v50  ;;  %v803_v49 = vld [vmem:[#allocation5 + $0xf20] sm:$0xff]  ;;  %v833_v50 = vld [vmem:[#allocation5 + $0x1010] sm:$0xff] }
 0x13c   : > { %2627 = vmatprep.subr.bf16.mxu1 %v2626_v53  ;;  %2691 = vmatprep.subr.bf16.mxu0 %v2690_v54  ;;  %v805_v53 = vld [vmem:[#allocation5 + $0xf30] sm:$0xff]  ;;  %v835_v54 = vld [vmem:[#allocation5 + $0x1020] sm:$0xff]  ;;  %v2648_v59 = vpack.c.bf16 %v833_v50, %v803_v49  ;;  %v2666_v49 = vpack.c.bf16 %v1134_v42, %v1104_v41  ;;  %v2730_v50 = vpack.c.bf16 %v1136_v44, %v1106_v43  ;;  %v450_v41 = vld [vmem:[#allocation5 + $0x418] sm:$0xff] }
 0x13d   : > { %v2712_v60 = vpack.c.bf16 %v835_v54, %v805_v53  ;;  %v1164_v53 = vld [vmem:[#allocation5 + $0x1a68] sm:$0xff]  ;;  %v1194_v54 = vld [vmem:[#allocation5 + $0x1b58] sm:$0xff] }
 0x13e   : > { %v480_v42 = vld [vmem:[#allocation5 + $0x508] sm:$0xff] }
 0x13f   : > { %2629 = vmatpush1.bf16.msra.mxu1 %v2628_v61  ;;  %2693 = vmatpush1.bf16.msra.mxu0 %v2692_v62  ;;  %v863_v61 = vld [vmem:[#allocation5 + $0x1100] sm:$0xff]  ;;  %v893_v62 = vld [vmem:[#allocation5 + $0x11f0] sm:$0xff] }
 0x140   : > { %2631 = vmatprep.subr.bf16.mxu1 %v2630_v1  ;;  %2695 = vmatprep.subr.bf16.mxu0 %v2694_v2  ;;  %v865_v1 = vld [vmem:[#allocation5 + $0x1110] sm:$0xff]  ;;  %v895_v2 = vld [vmem:[#allocation5 + $0x1200] sm:$0xff]  ;;  %v2652_v7 = vpack.c.bf16 %v893_v62, %v863_v61  ;;  %v2670_v61 = vpack.c.bf16 %v1194_v54, %v1164_v53  ;;  %v2734_v62 = vpack.c.bf16 %v1196_v56, %v1166_v55  ;;  %v510_v53 = vld [vmem:[#allocation5 + $0x5f8] sm:$0xff] }
 0x141   : > { %v2716_v8 = vpack.c.bf16 %v895_v2, %v865_v1  ;;  %v1224_v1 = vld [vmem:[#allocation5 + $0x1c48] sm:$0xff]  ;;  %v1254_v2 = vld [vmem:[#allocation5 + $0x1d38] sm:$0xff] }
 0x142   : > { %v540_v54 = vld [vmem:[#allocation5 + $0x6e8] sm:$0xff] }
 0x143   : > { %2633 = vmatpush1.bf16.msra.mxu1 %v2632_v9  ;;  %2697 = vmatpush1.bf16.msra.mxu0 %v2696_v10  ;;  %v923_v9 = vld [vmem:[#allocation5 + $0x12e0] sm:$0xff]  ;;  %v953_v10 = vld [vmem:[#allocation5 + $0x13d0] sm:$0xff] }
 0x144   : > { %2635 = vmatprep.subr.bf16.mxu1 %v2634_v13  ;;  %2699 = vmatprep.subr.bf16.mxu0 %v2698_v14  ;;  %v925_v13 = vld [vmem:[#allocation5 + $0x12f0] sm:$0xff]  ;;  %v955_v14 = vld [vmem:[#allocation5 + $0x13e0] sm:$0xff]  ;;  %v2656_v19 = vpack.c.bf16 %v953_v10, %v923_v9  ;;  %v2674_v9 = vpack.c.bf16 %v1254_v2, %v1224_v1  ;;  %v2738_v10 = vpack.c.bf16 %v1256_v4, %v1226_v3  ;;  %v570_v1 = vld [vmem:[#allocation5 + $0x7d8] sm:$0xff] }
 0x145   : > { %v2720_v20 = vpack.c.bf16 %v955_v14, %v925_v13  ;;  %v328_v13 = vld [vmem:[#allocation5 + $0x48] sm:$0xff]  ;;  %v358_v14 = vld [vmem:[#allocation5 + $0x138] sm:$0xff] }
 0x146   : > { %v600_v2 = vld [vmem:[#allocation5 + $0x8c8] sm:$0xff] }
 0x147   : > { %2637 = vmatpush1.bf16.msra.mxu1 %v2636_v21  ;;  %2701 = vmatpush1.bf16.msra.mxu0 %v2700_v22  ;;  %v983_v21 = vld [vmem:[#allocation5 + $0x14c0] sm:$0xff]  ;;  %v1013_v22 = vld [vmem:[#allocation5 + $0x15b0] sm:$0xff] }
 0x148   : > { %2639 = vmatprep.subr.bf16.mxu1 %v2638_v26  ;;  %2703 = vmatprep.subr.bf16.mxu0 %v2702_v27  ;;  %v985_v26 = vld [vmem:[#allocation5 + $0x14d0] sm:$0xff]  ;;  %v1015_v27 = vld [vmem:[#allocation5 + $0x15c0] sm:$0xff]  ;;  %v2660_v33 = vpack.c.bf16 %v1013_v22, %v983_v21 }
 0x149   : > { %v2724_v34 = vpack.c.bf16 %v1015_v27, %v985_v26  ;;  %v327_v21 = vld [vmem:[#allocation5 + $0x40] sm:$0xff]  ;;  %v357_v22 = vld [vmem:[#allocation5 + $0x130] sm:$0xff]  ;;  %v388_v26 = vld [vmem:[#allocation5 + $0x228] sm:$0xff] }
 0x14a   : > { %v418_v27 = vld [vmem:[#allocation5 + $0x318] sm:$0xff]  ;;  %v2744_v31 = vpack.c.bf16 %v357_v22, %v327_v21  ;;  %v659_v22 = vld [vmem:[#allocation5 + $0xaa0] sm:$0xff] }
 0x14b   : > { %2641 = vmatpush1.bf16.msra.mxu1 %v2640_v35  ;;  %2705 = vmatpush1.bf16.msra.mxu0 %v2704_v36  ;;  %v1043_v35 = vld [vmem:[#allocation5 + $0x16a0] sm:$0xff]  ;;  %v1073_v36 = vld [vmem:[#allocation5 + $0x1790] sm:$0xff] }
 0x14c   : > { %2643 = vmatprep.subr.bf16.mxu1 %v2642_v39  ;;  %2707 = vmatprep.subr.bf16.mxu0 %v2706_v40  ;;  %v1045_v39 = vld [vmem:[#allocation5 + $0x16b0] sm:$0xff]  ;;  %v1075_v40 = vld [vmem:[#allocation5 + $0x17a0] sm:$0xff]  ;;  %v2664_v45 = vpack.c.bf16 %v1073_v36, %v1043_v35  ;;  %v2746_v36 = vpack.c.bf16 %v418_v27, %v388_v26  ;;  %v690_v26 = vld [vmem:[#allocation5 + $0xb98] sm:$0xff] }
 0x14d   : > { %v2728_v46 = vpack.c.bf16 %v1075_v40, %v1045_v39  ;;  %v389_v35 = vld [vmem:[#allocation5 + $0x230] sm:$0xff]  ;;  %v448_v39 = vld [vmem:[#allocation5 + $0x408] sm:$0xff]  ;;  %v478_v40 = vld [vmem:[#allocation5 + $0x4f8] sm:$0xff] }
 0x14e   : > { %v720_v27 = vld [vmem:[#allocation5 + $0xc88] sm:$0xff] }
 0x14f   : > { %2645 = vmatpush1.bf16.msra.mxu1 %v2644_v47  ;;  %2709 = vmatpush1.bf16.msra.mxu0 %v2708_v48  ;;  %v1103_v47 = vld [vmem:[#allocation5 + $0x1880] sm:$0xff]  ;;  %v1133_v48 = vld [vmem:[#allocation5 + $0x1970] sm:$0xff] }
 0x150   : > { %2647 = vmatprep.subr.bf16.mxu1 %v2646_v51  ;;  %2711 = vmatprep.subr.bf16.mxu0 %v2710_v52  ;;  %v1105_v51 = vld [vmem:[#allocation5 + $0x1890] sm:$0xff]  ;;  %v1135_v52 = vld [vmem:[#allocation5 + $0x1980] sm:$0xff]  ;;  %v2668_v57 = vpack.c.bf16 %v1133_v48, %v1103_v47 }
 0x151   : > { %v2732_v58 = vpack.c.bf16 %v1135_v52, %v1105_v51  ;;  %v477_v47 = vld [vmem:[#allocation5 + $0x4f0] sm:$0xff]  ;;  %v508_v51 = vld [vmem:[#allocation5 + $0x5e8] sm:$0xff]  ;;  %v538_v52 = vld [vmem:[#allocation5 + $0x6d8] sm:$0xff] }
 0x152   : > { %v449_v48 = vld [vmem:[#allocation5 + $0x410] sm:$0xff] }
 0x153   : > { %2649 = vmatpush1.bf16.msra.mxu1 %v2648_v59  ;;  %2713 = vmatpush1.bf16.msra.mxu0 %v2712_v60  ;;  %v1163_v59 = vld [vmem:[#allocation5 + $0x1a60] sm:$0xff]  ;;  %v1193_v60 = vld [vmem:[#allocation5 + $0x1b50] sm:$0xff] }
 0x154   : > { %2651 = vmatprep.subr.bf16.mxu1 %v2650_v63  ;;  %2715 = vmatprep.subr.bf16.mxu0 %v2714_v0  ;;  %v1165_v63 = vld [vmem:[#allocation5 + $0x1a70] sm:$0xff]  ;;  %v1195_v0 = vld [vmem:[#allocation5 + $0x1b60] sm:$0xff]  ;;  %v2672_v5 = vpack.c.bf16 %v1193_v60, %v1163_v59 }
 0x155   : > { %v2736_v6 = vpack.c.bf16 %v1195_v0, %v1165_v63  ;;  %v537_v59 = vld [vmem:[#allocation5 + $0x6d0] sm:$0xff]  ;;  %v568_v63 = vld [vmem:[#allocation5 + $0x7c8] sm:$0xff]  ;;  %v598_v0 = vld [vmem:[#allocation5 + $0x8b8] sm:$0xff] }
 0x156   : > { %v509_v60 = vld [vmem:[#allocation5 + $0x5f0] sm:$0xff] }
 0x157   : > { %2653 = vmatpush1.bf16.msra.mxu1 %v2652_v7  ;;  %2717 = vmatpush1.bf16.msra.mxu0 %v2716_v8  ;;  %v1223_v7 = vld [vmem:[#allocation5 + $0x1c40] sm:$0xff]  ;;  %v1253_v8 = vld [vmem:[#allocation5 + $0x1d30] sm:$0xff] }
 0x158   : > { %2655 = vmatprep.subr.bf16.mxu1 %v2654_v11  ;;  %2719 = vmatprep.subr.bf16.mxu0 %v2718_v12  ;;  %v1225_v11 = vld [vmem:[#allocation5 + $0x1c50] sm:$0xff]  ;;  %v1255_v12 = vld [vmem:[#allocation5 + $0x1d40] sm:$0xff]  ;;  %v2676_v17 = vpack.c.bf16 %v1253_v8, %v1223_v7 }
 0x159   : > { %v2740_v18 = vpack.c.bf16 %v1255_v12, %v1225_v11  ;;  %v597_v7 = vld [vmem:[#allocation5 + $0x8b0] sm:$0xff]  ;;  %v628_v11 = vld [vmem:[#allocation5 + $0x9a8] sm:$0xff]  ;;  %v658_v12 = vld [vmem:[#allocation5 + $0xa98] sm:$0xff] }
 0x15a   : > { %v569_v8 = vld [vmem:[#allocation5 + $0x7d0] sm:$0xff] }
 0x15b   : > { %2657 = vmatpush1.bf16.msra.mxu1 %v2656_v19  ;;  %2721 = vmatpush1.bf16.msra.mxu0 %v2720_v20  ;;  %v2742_v19 = vpack.c.bf16 %v358_v14, %v328_v13  ;;  %v2806_v20 = vpack.c.bf16 %v360_v16, %v330_v15  ;;  %v630_v13 = vld [vmem:[#allocation5 + $0x9b8] sm:$0xff]  ;;  %v660_v14 = vld [vmem:[#allocation5 + $0xaa8] sm:$0xff] }
 0x15c   : > { %2659 = vmatprep.subr.bf16.mxu1 %v2658_v24  ;;  %2723 = vmatprep.subr.bf16.mxu0 %v2722_v25  ;;  %v329_v24 = vld [vmem:[#allocation5 + $0x50] sm:$0xff]  ;;  %v359_v25 = vld [vmem:[#allocation5 + $0x140] sm:$0xff]  ;;  %v2826_v21 = vpack.c.bf16 %v660_v14, %v630_v13 }
 0x15d   : > { %v2808_v32 = vpack.c.bf16 %v359_v25, %v329_v24  ;;  %v688_v24 = vld [vmem:[#allocation5 + $0xb88] sm:$0xff]  ;;  %v718_v25 = vld [vmem:[#allocation5 + $0xc78] sm:$0xff] }
 0x15f   : > { %2661 = vmatpush1.bf16.msra.mxu1 %v2660_v33  ;;  %2725 = vmatpush1.bf16.msra.mxu0 %v2724_v34  ;;  %v387_v33 = vld [vmem:[#allocation5 + $0x220] sm:$0xff]  ;;  %v417_v34 = vld [vmem:[#allocation5 + $0x310] sm:$0xff] }
 0x160   : > { %2663 = vmatprep.subr.bf16.mxu1 %v2662_v37  ;;  %2727 = vmatprep.subr.bf16.mxu0 %v2726_v38  ;;  %v2810_v37 = vpack.c.bf16 %v420_v30, %v390_v29  ;;  %v419_v38 = vld [vmem:[#allocation5 + $0x320] sm:$0xff]  ;;  %v2748_v43 = vpack.c.bf16 %v417_v34, %v387_v33  ;;  %v717_v33 = vld [vmem:[#allocation5 + $0xc70] sm:$0xff] }
 0x161   : > { %v2812_v44 = vpack.c.bf16 %v419_v38, %v389_v35  ;;  %v689_v34 = vld [vmem:[#allocation5 + $0xb90] sm:$0xff]  ;;  %v2830_v35 = vpack.c.bf16 %v720_v27, %v690_v26  ;;  %v778_v38 = vld [vmem:[#allocation5 + $0xe58] sm:$0xff] }
 0x163   : > { %2665 = vmatpush1.bf16.msra.mxu1 %v2664_v45  ;;  %2729 = vmatpush1.bf16.msra.mxu0 %v2728_v46  ;;  %v2750_v45 = vpack.c.bf16 %v478_v40, %v448_v39  ;;  %v447_v46 = vld [vmem:[#allocation5 + $0x400] sm:$0xff]  ;;  %v750_v39 = vld [vmem:[#allocation5 + $0xd78] sm:$0xff]  ;;  %v780_v40 = vld [vmem:[#allocation5 + $0xe68] sm:$0xff] }
 0x164   : > { %2667 = vmatprep.subr.bf16.mxu1 %v2666_v49  ;;  %2731 = vmatprep.subr.bf16.mxu0 %v2730_v50  ;;  %v2814_v49 = vpack.c.bf16 %v480_v42, %v450_v41  ;;  %v479_v50 = vld [vmem:[#allocation5 + $0x500] sm:$0xff]  ;;  %v2752_v55 = vpack.c.bf16 %v477_v47, %v447_v46  ;;  %v749_v46 = vld [vmem:[#allocation5 + $0xd70] sm:$0xff]  ;;  %v2834_v47 = vpack.c.bf16 %v780_v40, %v750_v39 }
 0x165   : > { %v2816_v56 = vpack.c.bf16 %v479_v50, %v449_v48  ;;  %v779_v48 = vld [vmem:[#allocation5 + $0xe60] sm:$0xff]  ;;  %v838_v50 = vld [vmem:[#allocation5 + $0x1038] sm:$0xff] }
 0x167   : > { %2669 = vmatpush1.bf16.msra.mxu1 %v2668_v57  ;;  %2733 = vmatpush1.bf16.msra.mxu0 %v2732_v58  ;;  %v2754_v57 = vpack.c.bf16 %v538_v52, %v508_v51  ;;  %v507_v58 = vld [vmem:[#allocation5 + $0x5e0] sm:$0xff]  ;;  %v810_v51 = vld [vmem:[#allocation5 + $0xf58] sm:$0xff]  ;;  %v840_v52 = vld [vmem:[#allocation5 + $0x1048] sm:$0xff] }
 0x168   : > { %2671 = vmatprep.subr.bf16.mxu1 %v2670_v61  ;;  %2735 = vmatprep.subr.bf16.mxu0 %v2734_v62  ;;  %v2818_v61 = vpack.c.bf16 %v540_v54, %v510_v53  ;;  %v539_v62 = vld [vmem:[#allocation5 + $0x6e0] sm:$0xff]  ;;  %v2756_v3 = vpack.c.bf16 %v537_v59, %v507_v58  ;;  %v2836_v54 = vpack.c.bf16 %v779_v48, %v749_v46  ;;  %v809_v58 = vld [vmem:[#allocation5 + $0xf50] sm:$0xff]  ;;  %v1138_v48 = vld [vmem:[#allocation5 + $0x1998] sm:$0xff] }
 0x169   : > { %v2820_v4 = vpack.c.bf16 %v539_v62, %v509_v60  ;;  %v2838_v59 = vpack.c.bf16 %v840_v52, %v810_v51  ;;  %v839_v60 = vld [vmem:[#allocation5 + $0x1040] sm:$0xff]  ;;  %v898_v62 = vld [vmem:[#allocation5 + $0x1218] sm:$0xff] }
 0x16a   : > { %v1079_v46 = vld [vmem:[#allocation5 + $0x17c0] sm:$0xff] }
 0x16b   : > { %2673 = vmatpush1.bf16.msra.mxu1 %v2672_v5  ;;  %2737 = vmatpush1.bf16.msra.mxu0 %v2736_v6  ;;  %v2758_v5 = vpack.c.bf16 %v598_v0, %v568_v63  ;;  %v567_v6 = vld [vmem:[#allocation5 + $0x7c0] sm:$0xff]  ;;  %v870_v63 = vld [vmem:[#allocation5 + $0x1138] sm:$0xff]  ;;  %v900_v0 = vld [vmem:[#allocation5 + $0x1228] sm:$0xff] }
 0x16c   : > { %2675 = vmatprep.subr.bf16.mxu1 %v2674_v9  ;;  %2739 = vmatprep.subr.bf16.mxu0 %v2738_v10  ;;  %v2822_v9 = vpack.c.bf16 %v600_v2, %v570_v1  ;;  %v599_v10 = vld [vmem:[#allocation5 + $0x8c0] sm:$0xff]  ;;  %v2760_v15 = vpack.c.bf16 %v597_v7, %v567_v6  ;;  %v2840_v2 = vpack.c.bf16 %v839_v60, %v809_v58  ;;  %v869_v6 = vld [vmem:[#allocation5 + $0x1130] sm:$0xff]  ;;  %v1198_v60 = vld [vmem:[#allocation5 + $0x1b78] sm:$0xff] }
 0x16d   : > { %v2824_v16 = vpack.c.bf16 %v599_v10, %v569_v8  ;;  %v2842_v7 = vpack.c.bf16 %v900_v0, %v870_v63  ;;  %v899_v8 = vld [vmem:[#allocation5 + $0x1220] sm:$0xff]  ;;  %v958_v10 = vld [vmem:[#allocation5 + $0x13f8] sm:$0xff] }
 0x16e   : > { %v2844_v14 = vpack.c.bf16 %v899_v8, %v869_v6  ;;  %v1139_v58 = vld [vmem:[#allocation5 + $0x19a0] sm:$0xff]  ;;  %v1258_v8 = vld [vmem:[#allocation5 + $0x1d58] sm:$0xff] }
 0x16f   : > { %2677 = vmatpush1.bf16.msra.mxu1 %v2676_v17  ;;  %2741 = vmatpush1.bf16.msra.mxu0 %v2740_v18  ;;  %v2762_v17 = vpack.c.bf16 %v658_v12, %v628_v11  ;;  %v627_v18 = vld [vmem:[#allocation5 + $0x9a0] sm:$0xff]  ;;  %v930_v11 = vld [vmem:[#allocation5 + $0x1318] sm:$0xff]  ;;  %v960_v12 = vld [vmem:[#allocation5 + $0x1408] sm:$0xff] }
 0x170   : > { %2743 = vmatprep.subr.bf16.mxu1 %v2742_v19  ;;  %2807 = vmatprep.subr.bf16.mxu0 %v2806_v20  ;;  %v657_v19 = vld [vmem:[#allocation5 + $0xa90] sm:$0xff]  ;;  %v1199_v6 = vld [vmem:[#allocation5 + $0x1b80] sm:$0xff] }
 0x171   : > { %v629_v20 = vld [vmem:[#allocation5 + $0x9b0] sm:$0xff]  ;;  %v2764_v29 = vpack.c.bf16 %v657_v19, %v627_v18  ;;  %v2846_v19 = vpack.c.bf16 %v960_v12, %v930_v11 }
 0x172   : > { %1486 = vmatmul.mubr.f32.vlgmr.msra.gmra.mrb[2].mxu1 %v3832_v28  ;;  %1557 = vmatmul.mubr.f32.vlgmr.msra.gmra.mrb[4].mxu0 %v3832_v28  ;;  %v2828_v30 = vpack.c.bf16 %v659_v22, %v629_v20  ;;  %v929_v18 = vld [vmem:[#allocation5 + $0x1310] sm:$0xff]  ;;  %v959_v20 = vld [vmem:[#allocation5 + $0x1400] sm:$0xff]  ;;  %v1018_v22 = vld [vmem:[#allocation5 + $0x15d8] sm:$0xff] }
 0x173   : > { %2745 = vmatpush1.bf16.msra.mxu1 %v2744_v31  ;;  %1627 = vmatprep.mubr.f32.mxu1 %v3830_v23  ;;  %v2766_v31 = vpack.c.bf16 %v718_v25, %v688_v24  ;;  %v990_v24 = vld [vmem:[#allocation5 + $0x14f8] sm:$0xff]  ;;  %v1020_v25 = vld [vmem:[#allocation5 + $0x15e8] sm:$0xff]  ;;  %v2848_v27 = vpack.c.bf16 %v959_v20, %v929_v18  ;;  %v1259_v18 = vld [vmem:[#allocation5 + $0x1d60] sm:$0xff] }
 0x174   : > { %2809 = vmatpush1.bf16.msra.mxu0 %v2808_v32  ;;  %1698 = vmatprep.mubr.f32.mxu0 %v3830_v23  ;;  %v687_v32 = vld [vmem:[#allocation5 + $0xb80] sm:$0xff]  ;;  %v362_v20 = vld [vmem:[#allocation5 + $0x158] sm:$0xff] }
 0x175   : > { %2747 = vmatprep.subr.bf16.mxu1 %v2746_v36  ;;  %2811 = vmatprep.subr.bf16.mxu0 %v2810_v37  ;;  %v719_v36 = vld [vmem:[#allocation5 + $0xc80] sm:$0xff]  ;;  %v748_v37 = vld [vmem:[#allocation5 + $0xd68] sm:$0xff]  ;;  %v2768_v41 = vpack.c.bf16 %v717_v33, %v687_v32  ;;  %v989_v32 = vld [vmem:[#allocation5 + $0x14f0] sm:$0xff]  ;;  %v2850_v33 = vpack.c.bf16 %v1020_v25, %v990_v24 }
 0x176   : > { %v2832_v42 = vpack.c.bf16 %v719_v36, %v689_v34  ;;  %v1019_v34 = vld [vmem:[#allocation5 + $0x15e0] sm:$0xff]  ;;  %v1078_v36 = vld [vmem:[#allocation5 + $0x17b8] sm:$0xff] }
 0x177   : > { %2749 = vmatpush1.bf16.msra.mxu1 %v2748_v43  ;;  %v2770_v43 = vpack.c.bf16 %v778_v38, %v748_v37  ;;  %v1050_v37 = vld [vmem:[#allocation5 + $0x16d8] sm:$0xff]  ;;  %v1080_v38 = vld [vmem:[#allocation5 + $0x17c8] sm:$0xff]  ;;  %v2852_v40 = vpack.c.bf16 %v1019_v34, %v989_v32  ;;  %v363_v32 = vld [vmem:[#allocation5 + $0x160] sm:$0xff] }
 0x178   : > { %2813 = vmatpush1.bf16.msra.mxu0 %v2812_v44  ;;  %2751 = vmatprep.subr.bf16.mxu1 %v2750_v45  ;;  %v747_v44 = vld [vmem:[#allocation5 + $0xd60] sm:$0xff]  ;;  %v777_v45 = vld [vmem:[#allocation5 + $0xe50] sm:$0xff]  ;;  %v422_v34 = vld [vmem:[#allocation5 + $0x338] sm:$0xff] }
 0x179   : > { %2815 = vmatprep.subr.bf16.mxu0 %v2814_v49  ;;  %v808_v49 = vld [vmem:[#allocation5 + $0xf48] sm:$0xff]  ;;  %v2772_v53 = vpack.c.bf16 %v777_v45, %v747_v44  ;;  %v1049_v44 = vld [vmem:[#allocation5 + $0x16d0] sm:$0xff]  ;;  %v2854_v45 = vpack.c.bf16 %v1080_v38, %v1050_v37 }
 0x17a   : > { %v2856_v52 = vpack.c.bf16 %v1079_v46, %v1049_v44  ;;  %v424_v37 = vld [vmem:[#allocation5 + $0x348] sm:$0xff] }
 0x17b   : > { %2753 = vmatpush1.bf16.msra.mxu1 %v2752_v55  ;;  %v2774_v55 = vpack.c.bf16 %v838_v50, %v808_v49  ;;  %v1110_v49 = vld [vmem:[#allocation5 + $0x18b8] sm:$0xff]  ;;  %v1140_v50 = vld [vmem:[#allocation5 + $0x19a8] sm:$0xff] }
 0x17c   : > { %2817 = vmatpush1.bf16.msra.mxu0 %v2816_v56  ;;  %2755 = vmatprep.subr.bf16.mxu1 %v2754_v57  ;;  %v807_v56 = vld [vmem:[#allocation5 + $0xf40] sm:$0xff]  ;;  %v837_v57 = vld [vmem:[#allocation5 + $0x1030] sm:$0xff]  ;;  %v452_v44 = vld [vmem:[#allocation5 + $0x428] sm:$0xff] }
 0x17d   : > { %2819 = vmatprep.subr.bf16.mxu0 %v2818_v61  ;;  %v868_v61 = vld [vmem:[#allocation5 + $0x1128] sm:$0xff]  ;;  %v2776_v1 = vpack.c.bf16 %v837_v57, %v807_v56  ;;  %v1109_v56 = vld [vmem:[#allocation5 + $0x18b0] sm:$0xff]  ;;  %v2858_v57 = vpack.c.bf16 %v1140_v50, %v1110_v49 }
 0x17e   : > { %v2860_v0 = vpack.c.bf16 %v1139_v58, %v1109_v56  ;;  %v483_v56 = vld [vmem:[#allocation5 + $0x520] sm:$0xff]  ;;  %v542_v58 = vld [vmem:[#allocation5 + $0x6f8] sm:$0xff] }
 0x17f   : > { %2757 = vmatpush1.bf16.msra.mxu1 %v2756_v3  ;;  %v2778_v3 = vpack.c.bf16 %v898_v62, %v868_v61  ;;  %v1170_v61 = vld [vmem:[#allocation5 + $0x1a98] sm:$0xff]  ;;  %v1200_v62 = vld [vmem:[#allocation5 + $0x1b88] sm:$0xff] }
 0x180   : > { %2821 = vmatpush1.bf16.msra.mxu0 %v2820_v4  ;;  %2759 = vmatprep.subr.bf16.mxu1 %v2758_v5  ;;  %v867_v4 = vld [vmem:[#allocation5 + $0x1120] sm:$0xff]  ;;  %v897_v5 = vld [vmem:[#allocation5 + $0x1210] sm:$0xff] }
 0x181   : > { %2823 = vmatprep.subr.bf16.mxu0 %v2822_v9  ;;  %v928_v9 = vld [vmem:[#allocation5 + $0x1308] sm:$0xff]  ;;  %v2780_v13 = vpack.c.bf16 %v897_v5, %v867_v4  ;;  %v1169_v4 = vld [vmem:[#allocation5 + $0x1a90] sm:$0xff]  ;;  %v2862_v5 = vpack.c.bf16 %v1200_v62, %v1170_v61 }
 0x182   : > { %v2864_v12 = vpack.c.bf16 %v1199_v6, %v1169_v4  ;;  %v543_v4 = vld [vmem:[#allocation5 + $0x700] sm:$0xff]  ;;  %v602_v6 = vld [vmem:[#allocation5 + $0x8d8] sm:$0xff] }
 0x183   : > { %2761 = vmatpush1.bf16.msra.mxu1 %v2760_v15  ;;  %v2782_v15 = vpack.c.bf16 %v958_v10, %v928_v9  ;;  %v1230_v9 = vld [vmem:[#allocation5 + $0x1c78] sm:$0xff]  ;;  %v1260_v10 = vld [vmem:[#allocation5 + $0x1d68] sm:$0xff] }
 0x184   : > { %2825 = vmatpush1.bf16.msra.mxu0 %v2824_v16  ;;  %2763 = vmatprep.subr.bf16.mxu1 %v2762_v17  ;;  %v927_v16 = vld [vmem:[#allocation5 + $0x1300] sm:$0xff]  ;;  %v957_v17 = vld [vmem:[#allocation5 + $0x13f0] sm:$0xff] }
 0x185   : > { %2827 = vmatprep.subr.bf16.mxu0 %v2826_v21  ;;  %v988_v21 = vld [vmem:[#allocation5 + $0x14e8] sm:$0xff]  ;;  %v2784_v26 = vpack.c.bf16 %v957_v17, %v927_v16  ;;  %v1229_v16 = vld [vmem:[#allocation5 + $0x1c70] sm:$0xff]  ;;  %v2866_v17 = vpack.c.bf16 %v1260_v10, %v1230_v9 }
 0x186   : > { %v2868_v25 = vpack.c.bf16 %v1259_v18, %v1229_v16  ;;  %v603_v16 = vld [vmem:[#allocation5 + $0x8e0] sm:$0xff]  ;;  %v662_v18 = vld [vmem:[#allocation5 + $0xab8] sm:$0xff] }
 0x187   : > { %2765 = vmatpush1.bf16.msra.mxu1 %v2764_v29  ;;  %v2786_v29 = vpack.c.bf16 %v1018_v22, %v988_v21  ;;  %v334_v21 = vld [vmem:[#allocation5 + $0x78] sm:$0xff]  ;;  %v364_v22 = vld [vmem:[#allocation5 + $0x168] sm:$0xff] }
 0x188   : > { %2829 = vmatpush1.bf16.msra.mxu0 %v2828_v30  ;;  %2767 = vmatprep.subr.bf16.mxu1 %v2766_v31  ;;  %v987_v30 = vld [vmem:[#allocation5 + $0x14e0] sm:$0xff]  ;;  %v1017_v31 = vld [vmem:[#allocation5 + $0x15d0] sm:$0xff] }
 0x189   : > { %2831 = vmatprep.subr.bf16.mxu0 %v2830_v35  ;;  %v1048_v35 = vld [vmem:[#allocation5 + $0x16c8] sm:$0xff]  ;;  %v2788_v39 = vpack.c.bf16 %v1017_v31, %v987_v30  ;;  %v2934_v30 = vpack.c.bf16 %v364_v22, %v334_v21  ;;  %v333_v31 = vld [vmem:[#allocation5 + $0x70] sm:$0xff] }
 0x18a   : > { %v2936_v38 = vpack.c.bf16 %v363_v32, %v333_v31  ;;  %v692_v31 = vld [vmem:[#allocation5 + $0xba8] sm:$0xff]  ;;  %v722_v32 = vld [vmem:[#allocation5 + $0xc98] sm:$0xff] }
 0x18b   : > { %2769 = vmatpush1.bf16.msra.mxu1 %v2768_v41  ;;  %v2790_v41 = vpack.c.bf16 %v1078_v36, %v1048_v35  ;;  %v394_v36 = vld [vmem:[#allocation5 + $0x258] sm:$0xff] }
 0x18c   : > { %2833 = vmatpush1.bf16.msra.mxu0 %v2832_v42  ;;  %2771 = vmatprep.subr.bf16.mxu1 %v2770_v43  ;;  %v1047_v42 = vld [vmem:[#allocation5 + $0x16c0] sm:$0xff]  ;;  %v1077_v43 = vld [vmem:[#allocation5 + $0x17b0] sm:$0xff]  ;;  %v2938_v46 = vpack.c.bf16 %v424_v37, %v394_v36  ;;  %v2894_v37 = vpack.c.bf16 %v722_v32, %v692_v31  ;;  %v994_v31 = vld [vmem:[#allocation5 + $0x1518] sm:$0xff] }
 0x18d   : > { %2835 = vmatprep.subr.bf16.mxu0 %v2834_v47  ;;  %v1108_v47 = vld [vmem:[#allocation5 + $0x18a8] sm:$0xff]  ;;  %v2792_v51 = vpack.c.bf16 %v1077_v43, %v1047_v42  ;;  %v423_v43 = vld [vmem:[#allocation5 + $0x340] sm:$0xff] }
 0x18e   : > { %v1024_v32 = vld [vmem:[#allocation5 + $0x1608] sm:$0xff] }
 0x18f   : > { %2773 = vmatpush1.bf16.msra.mxu1 %v2772_v53  ;;  %v2794_v53 = vpack.c.bf16 %v1138_v48, %v1108_v47  ;;  %v454_v47 = vld [vmem:[#allocation5 + $0x438] sm:$0xff]  ;;  %v484_v48 = vld [vmem:[#allocation5 + $0x528] sm:$0xff] }
 0x190   : > { %2837 = vmatpush1.bf16.msra.mxu0 %v2836_v54  ;;  %2775 = vmatprep.subr.bf16.mxu1 %v2774_v55  ;;  %v1107_v54 = vld [vmem:[#allocation5 + $0x18a0] sm:$0xff]  ;;  %v1137_v55 = vld [vmem:[#allocation5 + $0x1990] sm:$0xff] }
 0x191   : > { %2839 = vmatprep.subr.bf16.mxu0 %v2838_v59  ;;  %v1168_v59 = vld [vmem:[#allocation5 + $0x1a88] sm:$0xff]  ;;  %v2796_v63 = vpack.c.bf16 %v1137_v55, %v1107_v54  ;;  %v453_v54 = vld [vmem:[#allocation5 + $0x430] sm:$0xff]  ;;  %v2942_v55 = vpack.c.bf16 %v484_v48, %v454_v47 }
 0x192   : > { %v2944_v62 = vpack.c.bf16 %v483_v56, %v453_v54  ;;  %v783_v54 = vld [vmem:[#allocation5 + $0xe80] sm:$0xff]  ;;  %v842_v56 = vld [vmem:[#allocation5 + $0x1058] sm:$0xff] }
 0x193   : > { %2777 = vmatpush1.bf16.msra.mxu1 %v2776_v1  ;;  %v2798_v1 = vpack.c.bf16 %v1198_v60, %v1168_v59  ;;  %v514_v59 = vld [vmem:[#allocation5 + $0x618] sm:$0xff]  ;;  %v544_v60 = vld [vmem:[#allocation5 + $0x708] sm:$0xff] }
 0x194   : > { %2841 = vmatpush1.bf16.msra.mxu0 %v2840_v2  ;;  %2779 = vmatprep.subr.bf16.mxu1 %v2778_v3  ;;  %v1167_v2 = vld [vmem:[#allocation5 + $0x1a80] sm:$0xff]  ;;  %v1197_v3 = vld [vmem:[#allocation5 + $0x1b70] sm:$0xff] }
 0x195   : > { %2843 = vmatprep.subr.bf16.mxu0 %v2842_v7  ;;  %v1228_v7 = vld [vmem:[#allocation5 + $0x1c68] sm:$0xff]  ;;  %v2800_v11 = vpack.c.bf16 %v1197_v3, %v1167_v2  ;;  %v513_v2 = vld [vmem:[#allocation5 + $0x610] sm:$0xff]  ;;  %v2946_v3 = vpack.c.bf16 %v544_v60, %v514_v59 }
 0x196   : > { %v2948_v10 = vpack.c.bf16 %v543_v4, %v513_v2  ;;  %v843_v2 = vld [vmem:[#allocation5 + $0x1060] sm:$0xff]  ;;  %v902_v4 = vld [vmem:[#allocation5 + $0x1238] sm:$0xff] }
 0x197   : > { %2781 = vmatpush1.bf16.msra.mxu1 %v2780_v13  ;;  %v2802_v13 = vpack.c.bf16 %v1258_v8, %v1228_v7  ;;  %v574_v7 = vld [vmem:[#allocation5 + $0x7f8] sm:$0xff]  ;;  %v604_v8 = vld [vmem:[#allocation5 + $0x8e8] sm:$0xff] }
 0x198   : > { %2845 = vmatpush1.bf16.msra.mxu0 %v2844_v14  ;;  %2783 = vmatprep.subr.bf16.mxu1 %v2782_v15  ;;  %v1227_v14 = vld [vmem:[#allocation5 + $0x1c60] sm:$0xff]  ;;  %v1257_v15 = vld [vmem:[#allocation5 + $0x1d50] sm:$0xff] }
 0x199   : > { %2847 = vmatprep.subr.bf16.mxu0 %v2846_v19  ;;  %v332_v19 = vld [vmem:[#allocation5 + $0x68] sm:$0xff]  ;;  %v2804_v24 = vpack.c.bf16 %v1257_v15, %v1227_v14  ;;  %v573_v14 = vld [vmem:[#allocation5 + $0x7f0] sm:$0xff]  ;;  %v2950_v15 = vpack.c.bf16 %v604_v8, %v574_v7 }
 0x19a   : > { %v2952_v22 = vpack.c.bf16 %v603_v16, %v573_v14  ;;  %v903_v14 = vld [vmem:[#allocation5 + $0x1240] sm:$0xff]  ;;  %v962_v16 = vld [vmem:[#allocation5 + $0x1418] sm:$0xff] }
 0x19b   : > { %2785 = vmatpush1.bf16.msra.mxu1 %v2784_v26  ;;  %v2870_v26 = vpack.c.bf16 %v362_v20, %v332_v19  ;;  %v634_v19 = vld [vmem:[#allocation5 + $0x9d8] sm:$0xff]  ;;  %v664_v20 = vld [vmem:[#allocation5 + $0xac8] sm:$0xff] }
 0x19c   : > { %2849 = vmatpush1.bf16.msra.mxu0 %v2848_v27  ;;  %2787 = vmatprep.subr.bf16.mxu1 %v2786_v29  ;;  %v331_v27 = vld [vmem:[#allocation5 + $0x60] sm:$0xff]  ;;  %v361_v29 = vld [vmem:[#allocation5 + $0x150] sm:$0xff] }
 0x19d   : > { %2851 = vmatprep.subr.bf16.mxu0 %v2850_v33  ;;  %v392_v33 = vld [vmem:[#allocation5 + $0x248] sm:$0xff]  ;;  %v2872_v35 = vpack.c.bf16 %v361_v29, %v331_v27  ;;  %v633_v27 = vld [vmem:[#allocation5 + $0x9d0] sm:$0xff]  ;;  %v2954_v29 = vpack.c.bf16 %v664_v20, %v634_v19 }
 0x19e   : > { %v2874_v42 = vpack.c.bf16 %v422_v34, %v392_v33  ;;  %v694_v33 = vld [vmem:[#allocation5 + $0xbb8] sm:$0xff]  ;;  %v724_v34 = vld [vmem:[#allocation5 + $0xca8] sm:$0xff] }
 0x19f   : > { %2789 = vmatpush1.bf16.msra.mxu1 %v2788_v39  ;;  %v391_v39 = vld [vmem:[#allocation5 + $0x240] sm:$0xff] }
 0x1a0   : > { %2853 = vmatpush1.bf16.msra.mxu0 %v2852_v40  ;;  %2791 = vmatprep.subr.bf16.mxu1 %v2790_v41  ;;  %v421_v40 = vld [vmem:[#allocation5 + $0x330] sm:$0xff] }
 0x1a1   : > { %2855 = vmatprep.subr.bf16.mxu0 %v2854_v45  ;;  %v393_v41 = vld [vmem:[#allocation5 + $0x250] sm:$0xff]  ;;  %v482_v45 = vld [vmem:[#allocation5 + $0x518] sm:$0xff]  ;;  %v2876_v49 = vpack.c.bf16 %v421_v40, %v391_v39 }
 0x1a2   : > { %v2940_v50 = vpack.c.bf16 %v423_v43, %v393_v41  ;;  %v721_v39 = vld [vmem:[#allocation5 + $0xc90] sm:$0xff]  ;;  %v2958_v41 = vpack.c.bf16 %v724_v34, %v694_v33  ;;  %v752_v43 = vld [vmem:[#allocation5 + $0xd88] sm:$0xff] }
 0x1a3   : > { %2793 = vmatpush1.bf16.msra.mxu1 %v2792_v51  ;;  %v2878_v51 = vpack.c.bf16 %v482_v45, %v452_v44  ;;  %v693_v40 = vld [vmem:[#allocation5 + $0xbb0] sm:$0xff]  ;;  %v782_v44 = vld [vmem:[#allocation5 + $0xe78] sm:$0xff] }
 0x1a4   : > { %2857 = vmatpush1.bf16.msra.mxu0 %v2856_v52  ;;  %2795 = vmatprep.subr.bf16.mxu1 %v2794_v53  ;;  %v451_v52 = vld [vmem:[#allocation5 + $0x420] sm:$0xff]  ;;  %v481_v53 = vld [vmem:[#allocation5 + $0x510] sm:$0xff]  ;;  %v754_v45 = vld [vmem:[#allocation5 + $0xd98] sm:$0xff] }
 0x1a5   : > { %2859 = vmatprep.subr.bf16.mxu0 %v2858_v57  ;;  %v512_v57 = vld [vmem:[#allocation5 + $0x608] sm:$0xff]  ;;  %v2880_v61 = vpack.c.bf16 %v481_v53, %v451_v52  ;;  %v753_v52 = vld [vmem:[#allocation5 + $0xd90] sm:$0xff] }
 0x1a6   : > { %v2964_v60 = vpack.c.bf16 %v783_v54, %v753_v52  ;;  %v1083_v52 = vld [vmem:[#allocation5 + $0x17e0] sm:$0xff]  ;;  %v1142_v54 = vld [vmem:[#allocation5 + $0x19b8] sm:$0xff] }
 0x1a7   : > { %2797 = vmatpush1.bf16.msra.mxu1 %v2796_v63  ;;  %v2882_v63 = vpack.c.bf16 %v542_v58, %v512_v57  ;;  %v814_v57 = vld [vmem:[#allocation5 + $0xf78] sm:$0xff]  ;;  %v844_v58 = vld [vmem:[#allocation5 + $0x1068] sm:$0xff] }
 0x1a8   : > { %2861 = vmatpush1.bf16.msra.mxu0 %v2860_v0  ;;  %2799 = vmatprep.subr.bf16.mxu1 %v2798_v1  ;;  %v511_v0 = vld [vmem:[#allocation5 + $0x600] sm:$0xff]  ;;  %v541_v1 = vld [vmem:[#allocation5 + $0x6f0] sm:$0xff] }
 0x1a9   : > { %2863 = vmatprep.subr.bf16.mxu0 %v2862_v5  ;;  %v572_v5 = vld [vmem:[#allocation5 + $0x7e8] sm:$0xff]  ;;  %v2884_v9 = vpack.c.bf16 %v541_v1, %v511_v0  ;;  %v813_v0 = vld [vmem:[#allocation5 + $0xf70] sm:$0xff]  ;;  %v2966_v1 = vpack.c.bf16 %v844_v58, %v814_v57 }
 0x1aa   : > { %v2968_v8 = vpack.c.bf16 %v843_v2, %v813_v0  ;;  %v1143_v0 = vld [vmem:[#allocation5 + $0x19c0] sm:$0xff]  ;;  %v1202_v2 = vld [vmem:[#allocation5 + $0x1b98] sm:$0xff] }
 0x1ab   : > { %2801 = vmatpush1.bf16.msra.mxu1 %v2800_v11  ;;  %v2886_v11 = vpack.c.bf16 %v602_v6, %v572_v5  ;;  %v874_v5 = vld [vmem:[#allocation5 + $0x1158] sm:$0xff]  ;;  %v904_v6 = vld [vmem:[#allocation5 + $0x1248] sm:$0xff] }
 0x1ac   : > { %2865 = vmatpush1.bf16.msra.mxu0 %v2864_v12  ;;  %2803 = vmatprep.subr.bf16.mxu1 %v2802_v13  ;;  %v571_v12 = vld [vmem:[#allocation5 + $0x7e0] sm:$0xff]  ;;  %v601_v13 = vld [vmem:[#allocation5 + $0x8d0] sm:$0xff] }
 0x1ad   : > { %2867 = vmatprep.subr.bf16.mxu0 %v2866_v17  ;;  %v632_v17 = vld [vmem:[#allocation5 + $0x9c8] sm:$0xff]  ;;  %v2888_v21 = vpack.c.bf16 %v601_v13, %v571_v12  ;;  %v873_v12 = vld [vmem:[#allocation5 + $0x1150] sm:$0xff]  ;;  %v2970_v13 = vpack.c.bf16 %v904_v6, %v874_v5 }
 0x1ae   : > { %v2972_v20 = vpack.c.bf16 %v903_v14, %v873_v12  ;;  %v1203_v12 = vld [vmem:[#allocation5 + $0x1ba0] sm:$0xff]  ;;  %v1262_v14 = vld [vmem:[#allocation5 + $0x1d78] sm:$0xff] }
 0x1af   : > { %2805 = vmatpush1.bf16.msra.mxu1 %v2804_v24  ;;  %v2890_v24 = vpack.c.bf16 %v662_v18, %v632_v17  ;;  %v934_v17 = vld [vmem:[#allocation5 + $0x1338] sm:$0xff]  ;;  %v964_v18 = vld [vmem:[#allocation5 + $0x1428] sm:$0xff] }
 0x1b0   : > { %2869 = vmatpush1.bf16.msra.mxu0 %v2868_v25  ;;  %2871 = vmatprep.subr.bf16.mxu1 %v2870_v26  ;;  %v631_v25 = vld [vmem:[#allocation5 + $0x9c0] sm:$0xff]  ;;  %v661_v26 = vld [vmem:[#allocation5 + $0xab0] sm:$0xff] }
 0x1b1   : > { %2935 = vmatprep.subr.bf16.mxu0 %v2934_v30  ;;  %v663_v30 = vld [vmem:[#allocation5 + $0xac0] sm:$0xff] }
 0x1b2   : > { %1628 = vmatmul.mubr.f32.vlgmr.msra.gmra.mrb[4].mxu1 %v3832_v28  ;;  %v2956_v36 = vpack.c.bf16 %v663_v30, %v633_v27  ;;  %v963_v27 = vld [vmem:[#allocation5 + $0x1420] sm:$0xff]  ;;  %v1022_v30 = vld [vmem:[#allocation5 + $0x15f8] sm:$0xff] }
 0x1b3   : > { %1699 = vmatmul.mubr.f32.vlgmr.msra.gmra.mrb[6].mxu0 %v3832_v28  ;;  %2873 = vmatpush1.bf16.msra.mxu1 %v2872_v35  ;;  %v2892_v35 = vpack.c.bf16 %v661_v26, %v631_v25  ;;  %v933_v25 = vld [vmem:[#allocation5 + $0x1330] sm:$0xff]  ;;  %v2974_v26 = vpack.c.bf16 %v964_v18, %v934_v17 }
 0x1b4   : > { %1769 = vmatprep.mubr.f32.mxu1 %v3830_v23  ;;  %2937 = vmatpush1.bf16.msra.mxu0 %v2936_v38  ;;  %v691_v38 = vld [vmem:[#allocation5 + $0xba0] sm:$0xff]  ;;  %v2976_v34 = vpack.c.bf16 %v963_v27, %v933_v25  ;;  %v366_v27 = vld [vmem:[#allocation5 + $0x178] sm:$0xff] }
 0x1b5   : > { %1840 = vmatprep.mubr.f32.mxu0 %v3830_v23  ;;  %2875 = vmatprep.subr.bf16.mxu1 %v2874_v42  ;;  %v723_v42 = vld [vmem:[#allocation5 + $0xca0] sm:$0xff]  ;;  %v2896_v47 = vpack.c.bf16 %v721_v39, %v691_v38  ;;  %v993_v38 = vld [vmem:[#allocation5 + $0x1510] sm:$0xff]  ;;  %v2978_v39 = vpack.c.bf16 %v1024_v32, %v994_v31 }
 0x1b6   : > { %2939 = vmatprep.subr.bf16.mxu0 %v2938_v46  ;;  %v784_v46 = vld [vmem:[#allocation5 + $0xe88] sm:$0xff]  ;;  %v2960_v48 = vpack.c.bf16 %v723_v42, %v693_v40  ;;  %v1023_v40 = vld [vmem:[#allocation5 + $0x1600] sm:$0xff]  ;;  %v1082_v42 = vld [vmem:[#allocation5 + $0x17d8] sm:$0xff] }
 0x1b7   : > { %2877 = vmatpush1.bf16.msra.mxu1 %v2876_v49  ;;  %v2898_v49 = vpack.c.bf16 %v782_v44, %v752_v43  ;;  %v2962_v53 = vpack.c.bf16 %v784_v46, %v754_v45  ;;  %v1054_v43 = vld [vmem:[#allocation5 + $0x16f8] sm:$0xff]  ;;  %v1084_v44 = vld [vmem:[#allocation5 + $0x17e8] sm:$0xff]  ;;  %v2980_v46 = vpack.c.bf16 %v1023_v40, %v993_v38  ;;  %v1263_v25 = vld [vmem:[#allocation5 + $0x1d80] sm:$0xff] }
 0x1b8   : > { %2941 = vmatpush1.bf16.msra.mxu0 %v2940_v50  ;;  %2879 = vmatprep.subr.bf16.mxu1 %v2878_v51  ;;  %v751_v50 = vld [vmem:[#allocation5 + $0xd80] sm:$0xff]  ;;  %v781_v51 = vld [vmem:[#allocation5 + $0xe70] sm:$0xff]  ;;  %v426_v40 = vld [vmem:[#allocation5 + $0x358] sm:$0xff] }
 0x1b9   : > { %2943 = vmatprep.subr.bf16.mxu0 %v2942_v55  ;;  %v812_v55 = vld [vmem:[#allocation5 + $0xf68] sm:$0xff]  ;;  %v2900_v59 = vpack.c.bf16 %v781_v51, %v751_v50  ;;  %v1053_v50 = vld [vmem:[#allocation5 + $0x16f0] sm:$0xff]  ;;  %v2982_v51 = vpack.c.bf16 %v1084_v44, %v1054_v43  ;;  %v367_v38 = vld [vmem:[#allocation5 + $0x180] sm:$0xff] }
 0x1ba   : > { %v2984_v58 = vpack.c.bf16 %v1083_v52, %v1053_v50  ;;  %v428_v43 = vld [vmem:[#allocation5 + $0x368] sm:$0xff] }
 0x1bb   : > { %2881 = vmatpush1.bf16.msra.mxu1 %v2880_v61  ;;  %v2902_v61 = vpack.c.bf16 %v842_v56, %v812_v55  ;;  %v1114_v55 = vld [vmem:[#allocation5 + $0x18d8] sm:$0xff]  ;;  %v1144_v56 = vld [vmem:[#allocation5 + $0x19c8] sm:$0xff] }
 0x1bc   : > { %2945 = vmatpush1.bf16.msra.mxu0 %v2944_v62  ;;  %2883 = vmatprep.subr.bf16.mxu1 %v2882_v63  ;;  %v811_v62 = vld [vmem:[#allocation5 + $0xf60] sm:$0xff]  ;;  %v841_v63 = vld [vmem:[#allocation5 + $0x1050] sm:$0xff]  ;;  %v456_v50 = vld [vmem:[#allocation5 + $0x448] sm:$0xff] }
 0x1bd   : > { %2947 = vmatprep.subr.bf16.mxu0 %v2946_v3  ;;  %v872_v3 = vld [vmem:[#allocation5 + $0x1148] sm:$0xff]  ;;  %v2904_v7 = vpack.c.bf16 %v841_v63, %v811_v62  ;;  %v1113_v62 = vld [vmem:[#allocation5 + $0x18d0] sm:$0xff]  ;;  %v2986_v63 = vpack.c.bf16 %v1144_v56, %v1114_v55 }
 0x1be   : > { %v2988_v6 = vpack.c.bf16 %v1143_v0, %v1113_v62  ;;  %v487_v62 = vld [vmem:[#allocation5 + $0x540] sm:$0xff]  ;;  %v546_v0 = vld [vmem:[#allocation5 + $0x718] sm:$0xff] }
 0x1bf   : > { %2885 = vmatpush1.bf16.msra.mxu1 %v2884_v9  ;;  %v2906_v9 = vpack.c.bf16 %v902_v4, %v872_v3  ;;  %v1174_v3 = vld [vmem:[#allocation5 + $0x1ab8] sm:$0xff]  ;;  %v1204_v4 = vld [vmem:[#allocation5 + $0x1ba8] sm:$0xff] }
 0x1c0   : > { %2949 = vmatpush1.bf16.msra.mxu0 %v2948_v10  ;;  %2887 = vmatprep.subr.bf16.mxu1 %v2886_v11  ;;  %v871_v10 = vld [vmem:[#allocation5 + $0x1140] sm:$0xff]  ;;  %v901_v11 = vld [vmem:[#allocation5 + $0x1230] sm:$0xff] }
 0x1c1   : > { %2951 = vmatprep.subr.bf16.mxu0 %v2950_v15  ;;  %v932_v15 = vld [vmem:[#allocation5 + $0x1328] sm:$0xff]  ;;  %v2908_v19 = vpack.c.bf16 %v901_v11, %v871_v10  ;;  %v1173_v10 = vld [vmem:[#allocation5 + $0x1ab0] sm:$0xff]  ;;  %v2990_v11 = vpack.c.bf16 %v1204_v4, %v1174_v3 }
 0x1c2   : > { %v2992_v18 = vpack.c.bf16 %v1203_v12, %v1173_v10  ;;  %v547_v10 = vld [vmem:[#allocation5 + $0x720] sm:$0xff]  ;;  %v606_v12 = vld [vmem:[#allocation5 + $0x8f8] sm:$0xff] }
 0x1c3   : > { %2889 = vmatpush1.bf16.msra.mxu1 %v2888_v21  ;;  %v2910_v21 = vpack.c.bf16 %v962_v16, %v932_v15  ;;  %v1234_v15 = vld [vmem:[#allocation5 + $0x1c98] sm:$0xff]  ;;  %v1264_v16 = vld [vmem:[#allocation5 + $0x1d88] sm:$0xff] }
 0x1c4   : > { %2953 = vmatpush1.bf16.msra.mxu0 %v2952_v22  ;;  %2891 = vmatprep.subr.bf16.mxu1 %v2890_v24  ;;  %v931_v22 = vld [vmem:[#allocation5 + $0x1320] sm:$0xff]  ;;  %v961_v24 = vld [vmem:[#allocation5 + $0x1410] sm:$0xff] }
 0x1c5   : > { %2955 = vmatprep.subr.bf16.mxu0 %v2954_v29  ;;  %v992_v29 = vld [vmem:[#allocation5 + $0x1508] sm:$0xff]  ;;  %v2912_v33 = vpack.c.bf16 %v961_v24, %v931_v22  ;;  %v1233_v22 = vld [vmem:[#allocation5 + $0x1c90] sm:$0xff]  ;;  %v2994_v24 = vpack.c.bf16 %v1264_v16, %v1234_v15 }
 0x1c6   : > { %v2996_v32 = vpack.c.bf16 %v1263_v25, %v1233_v22  ;;  %v607_v22 = vld [vmem:[#allocation5 + $0x900] sm:$0xff]  ;;  %v666_v25 = vld [vmem:[#allocation5 + $0xad8] sm:$0xff] }
 0x1c7   : > { %2893 = vmatpush1.bf16.msra.mxu1 %v2892_v35  ;;  %v2914_v35 = vpack.c.bf16 %v1022_v30, %v992_v29  ;;  %v338_v29 = vld [vmem:[#allocation5 + $0x98] sm:$0xff]  ;;  %v368_v30 = vld [vmem:[#allocation5 + $0x188] sm:$0xff] }
 0x1c8   : > { %2957 = vmatpush1.bf16.msra.mxu0 %v2956_v36  ;;  %2895 = vmatprep.subr.bf16.mxu1 %v2894_v37  ;;  %v991_v36 = vld [vmem:[#allocation5 + $0x1500] sm:$0xff]  ;;  %v1021_v37 = vld [vmem:[#allocation5 + $0x15f0] sm:$0xff] }
 0x1c9   : > { %2959 = vmatprep.subr.bf16.mxu0 %v2958_v41  ;;  %v1052_v41 = vld [vmem:[#allocation5 + $0x16e8] sm:$0xff]  ;;  %v2916_v45 = vpack.c.bf16 %v1021_v37, %v991_v36  ;;  %v3062_v36 = vpack.c.bf16 %v368_v30, %v338_v29  ;;  %v337_v37 = vld [vmem:[#allocation5 + $0x90] sm:$0xff] }
 0x1ca   : > { %v3064_v44 = vpack.c.bf16 %v367_v38, %v337_v37  ;;  %v696_v37 = vld [vmem:[#allocation5 + $0xbc8] sm:$0xff]  ;;  %v726_v38 = vld [vmem:[#allocation5 + $0xcb8] sm:$0xff] }
 0x1cb   : > { %2897 = vmatpush1.bf16.msra.mxu1 %v2896_v47  ;;  %v2918_v47 = vpack.c.bf16 %v1082_v42, %v1052_v41  ;;  %v398_v42 = vld [vmem:[#allocation5 + $0x278] sm:$0xff] }
 0x1cc   : > { %2961 = vmatpush1.bf16.msra.mxu0 %v2960_v48  ;;  %2899 = vmatprep.subr.bf16.mxu1 %v2898_v49  ;;  %v1051_v48 = vld [vmem:[#allocation5 + $0x16e0] sm:$0xff]  ;;  %v1081_v49 = vld [vmem:[#allocation5 + $0x17d0] sm:$0xff]  ;;  %v3066_v52 = vpack.c.bf16 %v428_v43, %v398_v42  ;;  %v3022_v43 = vpack.c.bf16 %v726_v38, %v696_v37 }
 0x1cd   : > { %2963 = vmatprep.subr.bf16.mxu0 %v2962_v53  ;;  %v1112_v53 = vld [vmem:[#allocation5 + $0x18c8] sm:$0xff]  ;;  %v2920_v57 = vpack.c.bf16 %v1081_v49, %v1051_v48  ;;  %v427_v49 = vld [vmem:[#allocation5 + $0x360] sm:$0xff] }
 0x1ce   : > { %v967_v38 = vld [vmem:[#allocation5 + $0x1440] sm:$0xff] }
 0x1cf   : > { %2901 = vmatpush1.bf16.msra.mxu1 %v2900_v59  ;;  %v2922_v59 = vpack.c.bf16 %v1142_v54, %v1112_v53  ;;  %v458_v53 = vld [vmem:[#allocation5 + $0x458] sm:$0xff]  ;;  %v488_v54 = vld [vmem:[#allocation5 + $0x548] sm:$0xff] }
 0x1d0   : > { %2965 = vmatpush1.bf16.msra.mxu0 %v2964_v60  ;;  %2903 = vmatprep.subr.bf16.mxu1 %v2902_v61  ;;  %v1111_v60 = vld [vmem:[#allocation5 + $0x18c0] sm:$0xff]  ;;  %v1141_v61 = vld [vmem:[#allocation5 + $0x19b0] sm:$0xff] }
 0x1d1   : > { %2967 = vmatprep.subr.bf16.mxu0 %v2966_v1  ;;  %v1172_v1 = vld [vmem:[#allocation5 + $0x1aa8] sm:$0xff]  ;;  %v2924_v5 = vpack.c.bf16 %v1141_v61, %v1111_v60  ;;  %v457_v60 = vld [vmem:[#allocation5 + $0x450] sm:$0xff]  ;;  %v3070_v61 = vpack.c.bf16 %v488_v54, %v458_v53 }
 0x1d2   : > { %v3072_v4 = vpack.c.bf16 %v487_v62, %v457_v60  ;;  %v755_v60 = vld [vmem:[#allocation5 + $0xda0] sm:$0xff]  ;;  %v757_v62 = vld [vmem:[#allocation5 + $0xdb0] sm:$0xff] }
 0x1d3   : > { %2905 = vmatpush1.bf16.msra.mxu1 %v2904_v7  ;;  %v2926_v7 = vpack.c.bf16 %v1202_v2, %v1172_v1  ;;  %v518_v1 = vld [vmem:[#allocation5 + $0x638] sm:$0xff]  ;;  %v548_v2 = vld [vmem:[#allocation5 + $0x728] sm:$0xff] }
 0x1d4   : > { %2969 = vmatpush1.bf16.msra.mxu0 %v2968_v8  ;;  %2907 = vmatprep.subr.bf16.mxu1 %v2906_v9  ;;  %v1171_v8 = vld [vmem:[#allocation5 + $0x1aa0] sm:$0xff]  ;;  %v1201_v9 = vld [vmem:[#allocation5 + $0x1b90] sm:$0xff] }
 0x1d5   : > { %2971 = vmatprep.subr.bf16.mxu0 %v2970_v13  ;;  %v1232_v13 = vld [vmem:[#allocation5 + $0x1c88] sm:$0xff]  ;;  %v2928_v17 = vpack.c.bf16 %v1201_v9, %v1171_v8  ;;  %v517_v8 = vld [vmem:[#allocation5 + $0x630] sm:$0xff]  ;;  %v3074_v9 = vpack.c.bf16 %v548_v2, %v518_v1  ;;  %v846_v2 = vld [vmem:[#allocation5 + $0x1078] sm:$0xff] }
 0x1d6   : > { %v3076_v16 = vpack.c.bf16 %v547_v10, %v517_v8  ;;  %v816_v1 = vld [vmem:[#allocation5 + $0xf88] sm:$0xff]  ;;  %v815_v8 = vld [vmem:[#allocation5 + $0xf80] sm:$0xff]  ;;  %v817_v10 = vld [vmem:[#allocation5 + $0xf90] sm:$0xff] }
 0x1d7   : > { %2909 = vmatpush1.bf16.msra.mxu1 %v2908_v19  ;;  %v2930_v19 = vpack.c.bf16 %v1262_v14, %v1232_v13  ;;  %v578_v13 = vld [vmem:[#allocation5 + $0x818] sm:$0xff]  ;;  %v608_v14 = vld [vmem:[#allocation5 + $0x908] sm:$0xff] }
 0x1d8   : > { %2973 = vmatpush1.bf16.msra.mxu0 %v2972_v20  ;;  %2911 = vmatprep.subr.bf16.mxu1 %v2910_v21  ;;  %v1231_v20 = vld [vmem:[#allocation5 + $0x1c80] sm:$0xff]  ;;  %v1261_v21 = vld [vmem:[#allocation5 + $0x1d70] sm:$0xff] }
 0x1d9   : > { %2975 = vmatprep.subr.bf16.mxu0 %v2974_v26  ;;  %v336_v26 = vld [vmem:[#allocation5 + $0x88] sm:$0xff]  ;;  %v2932_v31 = vpack.c.bf16 %v1261_v21, %v1231_v20  ;;  %v577_v20 = vld [vmem:[#allocation5 + $0x810] sm:$0xff]  ;;  %v3078_v21 = vpack.c.bf16 %v608_v14, %v578_v13  ;;  %v906_v14 = vld [vmem:[#allocation5 + $0x1258] sm:$0xff] }
 0x1da   : > { %v3080_v30 = vpack.c.bf16 %v607_v22, %v577_v20  ;;  %v876_v13 = vld [vmem:[#allocation5 + $0x1168] sm:$0xff]  ;;  %v875_v20 = vld [vmem:[#allocation5 + $0x1160] sm:$0xff]  ;;  %v877_v22 = vld [vmem:[#allocation5 + $0x1170] sm:$0xff] }
 0x1db   : > { %2913 = vmatpush1.bf16.msra.mxu1 %v2912_v33  ;;  %v2998_v33 = vpack.c.bf16 %v366_v27, %v336_v26  ;;  %v638_v26 = vld [vmem:[#allocation5 + $0x9f8] sm:$0xff]  ;;  %v668_v27 = vld [vmem:[#allocation5 + $0xae8] sm:$0xff] }
 0x1dc   : > { %2977 = vmatpush1.bf16.msra.mxu0 %v2976_v34  ;;  %2915 = vmatprep.subr.bf16.mxu1 %v2914_v35  ;;  %v335_v34 = vld [vmem:[#allocation5 + $0x80] sm:$0xff]  ;;  %v365_v35 = vld [vmem:[#allocation5 + $0x170] sm:$0xff] }
 0x1dd   : > { %2979 = vmatprep.subr.bf16.mxu0 %v2978_v39  ;;  %v396_v39 = vld [vmem:[#allocation5 + $0x268] sm:$0xff]  ;;  %v3000_v41 = vpack.c.bf16 %v365_v35, %v335_v34  ;;  %v637_v34 = vld [vmem:[#allocation5 + $0x9f0] sm:$0xff]  ;;  %v3082_v35 = vpack.c.bf16 %v668_v27, %v638_v26  ;;  %v966_v27 = vld [vmem:[#allocation5 + $0x1438] sm:$0xff] }
 0x1de   : > { %v3002_v48 = vpack.c.bf16 %v426_v40, %v396_v39  ;;  %v698_v39 = vld [vmem:[#allocation5 + $0xbd8] sm:$0xff]  ;;  %v728_v40 = vld [vmem:[#allocation5 + $0xcc8] sm:$0xff] }
 0x1df   : > { %2917 = vmatpush1.bf16.msra.mxu1 %v2916_v45  ;;  %v395_v45 = vld [vmem:[#allocation5 + $0x260] sm:$0xff]  ;;  %v936_v26 = vld [vmem:[#allocation5 + $0x1348] sm:$0xff] }
 0x1e0   : > { %2981 = vmatpush1.bf16.msra.mxu0 %v2980_v46  ;;  %2919 = vmatprep.subr.bf16.mxu1 %v2918_v47  ;;  %v425_v46 = vld [vmem:[#allocation5 + $0x350] sm:$0xff] }
 0x1e1   : > { %2983 = vmatprep.subr.bf16.mxu0 %v2982_v51  ;;  %v397_v47 = vld [vmem:[#allocation5 + $0x270] sm:$0xff]  ;;  %v486_v51 = vld [vmem:[#allocation5 + $0x538] sm:$0xff]  ;;  %v3004_v55 = vpack.c.bf16 %v425_v46, %v395_v45 }
 0x1e2   : > { %v3068_v56 = vpack.c.bf16 %v427_v49, %v397_v47  ;;  %v725_v45 = vld [vmem:[#allocation5 + $0xcb0] sm:$0xff]  ;;  %v3086_v49 = vpack.c.bf16 %v728_v40, %v698_v39  ;;  %v996_v39 = vld [vmem:[#allocation5 + $0x1528] sm:$0xff]  ;;  %v1026_v40 = vld [vmem:[#allocation5 + $0x1618] sm:$0xff] }
 0x1e3   : > { %2921 = vmatpush1.bf16.msra.mxu1 %v2920_v57  ;;  %v3006_v57 = vpack.c.bf16 %v486_v51, %v456_v50  ;;  %v697_v46 = vld [vmem:[#allocation5 + $0xbd0] sm:$0xff]  ;;  %v727_v50 = vld [vmem:[#allocation5 + $0xcc0] sm:$0xff]  ;;  %v756_v51 = vld [vmem:[#allocation5 + $0xda8] sm:$0xff] }
 0x1e4   : > { %2985 = vmatpush1.bf16.msra.mxu0 %v2984_v58  ;;  %2923 = vmatprep.subr.bf16.mxu1 %v2922_v59  ;;  %v455_v58 = vld [vmem:[#allocation5 + $0x440] sm:$0xff]  ;;  %v485_v59 = vld [vmem:[#allocation5 + $0x530] sm:$0xff] }
 0x1e5   : > { %2987 = vmatprep.subr.bf16.mxu0 %v2986_v63  ;;  %v516_v63 = vld [vmem:[#allocation5 + $0x628] sm:$0xff]  ;;  %v3008_v3 = vpack.c.bf16 %v485_v59, %v455_v58  ;;  %v3088_v58 = vpack.c.bf16 %v727_v50, %v697_v46  ;;  %v995_v46 = vld [vmem:[#allocation5 + $0x1520] sm:$0xff] }
 0x1e6   : > { %v1027_v50 = vld [vmem:[#allocation5 + $0x1620] sm:$0xff] }
 0x1e7   : > { %2925 = vmatpush1.bf16.msra.mxu1 %v2924_v5  ;;  %v3010_v5 = vpack.c.bf16 %v546_v0, %v516_v63  ;;  %v787_v0 = vld [vmem:[#allocation5 + $0xea0] sm:$0xff] }
 0x1e8   : > { %2989 = vmatpush1.bf16.msra.mxu0 %v2988_v6  ;;  %2927 = vmatprep.subr.bf16.mxu1 %v2926_v7  ;;  %v515_v6 = vld [vmem:[#allocation5 + $0x620] sm:$0xff]  ;;  %v545_v7 = vld [vmem:[#allocation5 + $0x710] sm:$0xff] }
 0x1e9   : > { %2991 = vmatprep.subr.bf16.mxu0 %v2990_v11  ;;  %v576_v11 = vld [vmem:[#allocation5 + $0x808] sm:$0xff]  ;;  %v3012_v15 = vpack.c.bf16 %v545_v7, %v515_v6  ;;  %v3092_v6 = vpack.c.bf16 %v787_v0, %v757_v62  ;;  %v3030_v7 = vpack.c.bf16 %v846_v2, %v816_v1  ;;  %v1087_v62 = vld [vmem:[#allocation5 + $0x1800] sm:$0xff]  ;;  %v1146_v0 = vld [vmem:[#allocation5 + $0x19d8] sm:$0xff] }
 0x1ea   : > { %v1118_v1 = vld [vmem:[#allocation5 + $0x18f8] sm:$0xff]  ;;  %v1148_v2 = vld [vmem:[#allocation5 + $0x19e8] sm:$0xff] }
 0x1eb   : > { %2929 = vmatpush1.bf16.msra.mxu1 %v2928_v17  ;;  %v3014_v17 = vpack.c.bf16 %v606_v12, %v576_v11  ;;  %v847_v12 = vld [vmem:[#allocation5 + $0x1080] sm:$0xff] }
 0x1ec   : > { %2993 = vmatpush1.bf16.msra.mxu0 %v2992_v18  ;;  %2931 = vmatprep.subr.bf16.mxu1 %v2930_v19  ;;  %v575_v18 = vld [vmem:[#allocation5 + $0x800] sm:$0xff]  ;;  %v605_v19 = vld [vmem:[#allocation5 + $0x8f0] sm:$0xff] }
 0x1ed   : > { %2995 = vmatprep.subr.bf16.mxu0 %v2994_v24  ;;  %v636_v24 = vld [vmem:[#allocation5 + $0x9e8] sm:$0xff]  ;;  %v3016_v29 = vpack.c.bf16 %v605_v19, %v575_v18  ;;  %v3096_v18 = vpack.c.bf16 %v847_v12, %v817_v10  ;;  %v3034_v19 = vpack.c.bf16 %v906_v14, %v876_v13  ;;  %v1147_v10 = vld [vmem:[#allocation5 + $0x19e0] sm:$0xff]  ;;  %v1206_v12 = vld [vmem:[#allocation5 + $0x1bb8] sm:$0xff] }
 0x1ee   : > { %v1178_v13 = vld [vmem:[#allocation5 + $0x1ad8] sm:$0xff]  ;;  %v1208_v14 = vld [vmem:[#allocation5 + $0x1bc8] sm:$0xff] }
 0x1ef   : > { %2933 = vmatpush1.bf16.msra.mxu1 %v2932_v31  ;;  %v3018_v31 = vpack.c.bf16 %v666_v25, %v636_v24  ;;  %v907_v25 = vld [vmem:[#allocation5 + $0x1260] sm:$0xff] }
 0x1f0   : > { %2997 = vmatpush1.bf16.msra.mxu0 %v2996_v32  ;;  %2999 = vmatprep.subr.bf16.mxu1 %v2998_v33  ;;  %v635_v32 = vld [vmem:[#allocation5 + $0x9e0] sm:$0xff]  ;;  %v665_v33 = vld [vmem:[#allocation5 + $0xad0] sm:$0xff] }
 0x1f1   : > { %3063 = vmatprep.subr.bf16.mxu0 %v3062_v36  ;;  %v667_v36 = vld [vmem:[#allocation5 + $0xae0] sm:$0xff] }
 0x1f2   : > { %1770 = vmatmul.mubr.f32.vlgmr.msra.gmra.mrb[6].mxu1 %v3832_v28  ;;  %v3084_v42 = vpack.c.bf16 %v667_v36, %v637_v34  ;;  %v935_v34 = vld [vmem:[#allocation5 + $0x1340] sm:$0xff]  ;;  %v937_v36 = vld [vmem:[#allocation5 + $0x1350] sm:$0xff] }
 0x1f3   : > { %1841 = vmatmul.mubr.f32.vlgmr.msra.gmra.mrb[8].mxu0 %v3832_v28  ;;  %3001 = vmatpush1.bf16.msra.mxu1 %v3000_v41  ;;  %v3020_v41 = vpack.c.bf16 %v665_v33, %v635_v32  ;;  %v3100_v32 = vpack.c.bf16 %v907_v25, %v877_v22  ;;  %v3038_v33 = vpack.c.bf16 %v966_v27, %v936_v26  ;;  %v1207_v22 = vld [vmem:[#allocation5 + $0x1bc0] sm:$0xff]  ;;  %v1266_v25 = vld [vmem:[#allocation5 + $0x1d98] sm:$0xff]  ;;  %v1268_v27 = vld [vmem:[#allocation5 + $0x1da8] sm:$0xff] }
 0x1f4   : > { %1911 = vmatprep.mubr.f32.mxu1 %v3830_v23  ;;  %3065 = vmatpush1.bf16.msra.mxu0 %v3064_v44  ;;  %v695_v44 = vld [vmem:[#allocation5 + $0xbc0] sm:$0xff]  ;;  %v1238_v26 = vld [vmem:[#allocation5 + $0x1cb8] sm:$0xff] }
 0x1f5   : > { %1982 = vmatprep.mubr.f32.mxu0 %v3830_v23  ;;  %3003 = vmatprep.subr.bf16.mxu1 %v3002_v48 }
 0x1f6   : > { %3067 = vmatprep.subr.bf16.mxu0 %v3066_v52  ;;  %v786_v52 = vld [vmem:[#allocation5 + $0xe98] sm:$0xff] }
 0x1f7   : > { %3005 = vmatpush1.bf16.msra.mxu1 %v3004_v55  ;;  %v758_v55 = vld [vmem:[#allocation5 + $0xdb8] sm:$0xff]  ;;  %v3026_v59 = vpack.c.bf16 %v786_v52, %v756_v51  ;;  %v1056_v51 = vld [vmem:[#allocation5 + $0x1708] sm:$0xff] }
 0x1f8   : > { %3069 = vmatpush1.bf16.msra.mxu0 %v3068_v56  ;;  %3007 = vmatprep.subr.bf16.mxu1 %v3006_v57  ;;  %v788_v56 = vld [vmem:[#allocation5 + $0xea8] sm:$0xff]  ;;  %v3024_v57 = vpack.c.bf16 %v725_v45, %v695_v44  ;;  %v3104_v44 = vpack.c.bf16 %v967_v38, %v937_v36  ;;  %v3042_v45 = vpack.c.bf16 %v1026_v40, %v996_v39  ;;  %v1086_v52 = vld [vmem:[#allocation5 + $0x17f8] sm:$0xff]  ;;  %v1267_v36 = vld [vmem:[#allocation5 + $0x1da0] sm:$0xff] }
 0x1f9   : > { %3071 = vmatprep.subr.bf16.mxu0 %v3070_v61  ;;  %v785_v61 = vld [vmem:[#allocation5 + $0xe90] sm:$0xff]  ;;  %v3090_v63 = vpack.c.bf16 %v788_v56, %v758_v55  ;;  %v370_v38 = vld [vmem:[#allocation5 + $0x198] sm:$0xff]  ;;  %v372_v40 = vld [vmem:[#allocation5 + $0x1a8] sm:$0xff] }
 0x1fa   : > { %v342_v39 = vld [vmem:[#allocation5 + $0xb8] sm:$0xff] }
 0x1fb   : > { %3009 = vmatpush1.bf16.msra.mxu1 %v3008_v3  ;;  %v818_v3 = vld [vmem:[#allocation5 + $0xf98] sm:$0xff] }
 0x1fc   : > { %3073 = vmatpush1.bf16.msra.mxu0 %v3072_v4  ;;  %3011 = vmatprep.subr.bf16.mxu1 %v3010_v5  ;;  %v848_v4 = vld [vmem:[#allocation5 + $0x1088] sm:$0xff]  ;;  %v3028_v5 = vpack.c.bf16 %v785_v61, %v755_v60  ;;  %v1057_v60 = vld [vmem:[#allocation5 + $0x1710] sm:$0xff] }
 0x1fd   : > { %3075 = vmatprep.subr.bf16.mxu0 %v3074_v9  ;;  %v845_v9 = vld [vmem:[#allocation5 + $0x1070] sm:$0xff]  ;;  %v3094_v11 = vpack.c.bf16 %v848_v4, %v818_v3  ;;  %v3112_v4 = vpack.c.bf16 %v1087_v62, %v1057_v60  ;;  %v460_v60 = vld [vmem:[#allocation5 + $0x468] sm:$0xff] }
 0x1ff   : > { %3013 = vmatpush1.bf16.msra.mxu1 %v3012_v15  ;;  %v878_v15 = vld [vmem:[#allocation5 + $0x1178] sm:$0xff] }
 0x200   : > { %3077 = vmatpush1.bf16.msra.mxu0 %v3076_v16  ;;  %3015 = vmatprep.subr.bf16.mxu1 %v3014_v17  ;;  %v908_v16 = vld [vmem:[#allocation5 + $0x1268] sm:$0xff]  ;;  %v3032_v17 = vpack.c.bf16 %v845_v9, %v815_v8  ;;  %v1117_v8 = vld [vmem:[#allocation5 + $0x18f0] sm:$0xff]  ;;  %v3114_v9 = vpack.c.bf16 %v1148_v2, %v1118_v1 }
 0x201   : > { %3079 = vmatprep.subr.bf16.mxu0 %v3078_v21  ;;  %v905_v21 = vld [vmem:[#allocation5 + $0x1250] sm:$0xff]  ;;  %v3098_v24 = vpack.c.bf16 %v908_v16, %v878_v15  ;;  %v3116_v16 = vpack.c.bf16 %v1147_v10, %v1117_v8  ;;  %v491_v8 = vld [vmem:[#allocation5 + $0x560] sm:$0xff]  ;;  %v550_v10 = vld [vmem:[#allocation5 + $0x738] sm:$0xff] }
 0x203   : > { %3017 = vmatpush1.bf16.msra.mxu1 %v3016_v29  ;;  %v938_v29 = vld [vmem:[#allocation5 + $0x1358] sm:$0xff] }
 0x204   : > { %3081 = vmatpush1.bf16.msra.mxu0 %v3080_v30  ;;  %3019 = vmatprep.subr.bf16.mxu1 %v3018_v31  ;;  %v968_v30 = vld [vmem:[#allocation5 + $0x1448] sm:$0xff]  ;;  %v3036_v31 = vpack.c.bf16 %v905_v21, %v875_v20  ;;  %v1177_v20 = vld [vmem:[#allocation5 + $0x1ad0] sm:$0xff]  ;;  %v3118_v21 = vpack.c.bf16 %v1208_v14, %v1178_v13 }
 0x205   : > { %v1345_v47 = vpop.f32.mrb[0].mxu1  ;;  %v1416_v48 = vpop.f32.mrb[2].mxu0  ;;  %3083 = vmatprep.subr.bf16.mxu0 %v3082_v35  ;;  %v965_v35 = vld [vmem:[#allocation5 + $0x1430] sm:$0xff]  ;;  %v3102_v37 = vpack.c.bf16 %v968_v30, %v938_v29  ;;  %v3120_v30 = vpack.c.bf16 %v1207_v22, %v1177_v20  ;;  %v551_v20 = vld [vmem:[#allocation5 + $0x740] sm:$0xff]  ;;  %v610_v22 = vld [vmem:[#allocation5 + $0x918] sm:$0xff] }
 0x206   : > { %2344 = vst [vmem:[%s3855_s10] sm:$0xff] %v1345_v47  ;;  %2346 = vst [vmem:[%s3855_s10 + $0x10] sm:$0xff] %v1416_v48  ;;  %v1347_v53 = vpop.f32.mrb[1].mxu1  ;;  %v1418_v54 = vpop.f32.mrb[3].mxu0  ;;  %v1025_v47 = vld [vmem:[#allocation5 + $0x1610] sm:$0xff] }
 0x207   : > { %2345 = vst [vmem:[%s3855_s10 + $0x8] sm:$0xff] %v1347_v53  ;;  %2347 = vst [vmem:[%s3855_s10 + $0x18] sm:$0xff] %v1418_v54  ;;  %3021 = vmatpush1.bf16.msra.mxu1 %v3020_v41  ;;  %v998_v41 = vld [vmem:[#allocation5 + $0x1538] sm:$0xff]  ;;  %v997_v48 = vld [vmem:[#allocation5 + $0x1530] sm:$0xff]  ;;  %v3044_v55 = vpack.c.bf16 %v1025_v47, %v995_v46  ;;  %v3190_v46 = vpack.c.bf16 %v372_v40, %v342_v39 }
 0x208   : > { %3085 = vmatpush1.bf16.msra.mxu0 %v3084_v42  ;;  %3023 = vmatprep.subr.bf16.mxu1 %v3022_v43  ;;  %v1028_v42 = vld [vmem:[#allocation5 + $0x1628] sm:$0xff]  ;;  %v3040_v43 = vpack.c.bf16 %v965_v35, %v935_v34  ;;  %v1058_v53 = vld [vmem:[#allocation5 + $0x1718] sm:$0xff]  ;;  %v3108_v56 = vpack.c.bf16 %v1027_v50, %v997_v48  ;;  %v1237_v34 = vld [vmem:[#allocation5 + $0x1cb0] sm:$0xff]  ;;  %v3122_v35 = vpack.c.bf16 %v1268_v27, %v1238_v26 }
 0x209   : > { %3087 = vmatprep.subr.bf16.mxu0 %v3086_v49  ;;  %v3106_v49 = vpack.c.bf16 %v1028_v42, %v998_v41  ;;  %v1088_v54 = vld [vmem:[#allocation5 + $0x1808] sm:$0xff]  ;;  %v3124_v42 = vpack.c.bf16 %v1267_v36, %v1237_v34  ;;  %v341_v47 = vld [vmem:[#allocation5 + $0xb0] sm:$0xff]  ;;  %v371_v48 = vld [vmem:[#allocation5 + $0x1a0] sm:$0xff] }
 0x20a   : > { %v3110_v61 = vpack.c.bf16 %v1088_v54, %v1058_v53  ;;  %v430_v50 = vld [vmem:[#allocation5 + $0x378] sm:$0xff]  ;;  %v432_v53 = vld [vmem:[#allocation5 + $0x388] sm:$0xff]  ;;  %v3192_v54 = vpack.c.bf16 %v371_v48, %v341_v47  ;;  %v611_v34 = vld [vmem:[#allocation5 + $0x920] sm:$0xff] }
 0x20b   : > { %3025 = vmatpush1.bf16.msra.mxu1 %v3024_v57  ;;  %v3046_v57 = vpack.c.bf16 %v1086_v52, %v1056_v51  ;;  %v402_v52 = vld [vmem:[#allocation5 + $0x298] sm:$0xff]  ;;  %v700_v47 = vld [vmem:[#allocation5 + $0xbe8] sm:$0xff] }
 0x20c   : > { %3089 = vmatpush1.bf16.msra.mxu0 %v3088_v58  ;;  %3027 = vmatprep.subr.bf16.mxu1 %v3026_v59  ;;  %v1055_v58 = vld [vmem:[#allocation5 + $0x1700] sm:$0xff]  ;;  %v1085_v59 = vld [vmem:[#allocation5 + $0x17f0] sm:$0xff]  ;;  %v3194_v62 = vpack.c.bf16 %v432_v53, %v402_v52  ;;  %v670_v36 = vld [vmem:[#allocation5 + $0xaf8] sm:$0xff] }
 0x20d   : > { %3091 = vmatprep.subr.bf16.mxu0 %v3090_v63  ;;  %v1116_v63 = vld [vmem:[#allocation5 + $0x18e8] sm:$0xff]  ;;  %v3048_v3 = vpack.c.bf16 %v1085_v59, %v1055_v58  ;;  %v431_v59 = vld [vmem:[#allocation5 + $0x380] sm:$0xff]  ;;  %v730_v48 = vld [vmem:[#allocation5 + $0xcd8] sm:$0xff] }
 0x20e   : > { %v3150_v53 = vpack.c.bf16 %v730_v48, %v700_v47  ;;  %v971_v48 = vld [vmem:[#allocation5 + $0x1460] sm:$0xff] }
 0x20f   : > { %3029 = vmatpush1.bf16.msra.mxu1 %v3028_v5  ;;  %v3050_v5 = vpack.c.bf16 %v1146_v0, %v1116_v63  ;;  %v462_v63 = vld [vmem:[#allocation5 + $0x478] sm:$0xff]  ;;  %v492_v0 = vld [vmem:[#allocation5 + $0x568] sm:$0xff] }
 0x210   : > { %3093 = vmatpush1.bf16.msra.mxu0 %v3092_v6  ;;  %3031 = vmatprep.subr.bf16.mxu1 %v3030_v7  ;;  %v1115_v6 = vld [vmem:[#allocation5 + $0x18e0] sm:$0xff]  ;;  %v1145_v7 = vld [vmem:[#allocation5 + $0x19d0] sm:$0xff] }
 0x211   : > { %3095 = vmatprep.subr.bf16.mxu0 %v3094_v11  ;;  %v1176_v11 = vld [vmem:[#allocation5 + $0x1ac8] sm:$0xff]  ;;  %v3052_v15 = vpack.c.bf16 %v1145_v7, %v1115_v6  ;;  %v461_v6 = vld [vmem:[#allocation5 + $0x470] sm:$0xff]  ;;  %v3198_v7 = vpack.c.bf16 %v492_v0, %v462_v63 }
 0x212   : > { %v3200_v14 = vpack.c.bf16 %v491_v8, %v461_v6  ;;  %v759_v6 = vld [vmem:[#allocation5 + $0xdc0] sm:$0xff]  ;;  %v761_v8 = vld [vmem:[#allocation5 + $0xdd0] sm:$0xff] }
 0x213   : > { %3033 = vmatpush1.bf16.msra.mxu1 %v3032_v17  ;;  %v3054_v17 = vpack.c.bf16 %v1206_v12, %v1176_v11  ;;  %v522_v11 = vld [vmem:[#allocation5 + $0x658] sm:$0xff]  ;;  %v552_v12 = vld [vmem:[#allocation5 + $0x748] sm:$0xff] }
 0x214   : > { %3097 = vmatpush1.bf16.msra.mxu0 %v3096_v18  ;;  %3035 = vmatprep.subr.bf16.mxu1 %v3034_v19  ;;  %v1175_v18 = vld [vmem:[#allocation5 + $0x1ac0] sm:$0xff]  ;;  %v1205_v19 = vld [vmem:[#allocation5 + $0x1bb0] sm:$0xff] }
 0x215   : > { %3099 = vmatprep.subr.bf16.mxu0 %v3098_v24  ;;  %v1236_v24 = vld [vmem:[#allocation5 + $0x1ca8] sm:$0xff]  ;;  %v3056_v29 = vpack.c.bf16 %v1205_v19, %v1175_v18  ;;  %v521_v18 = vld [vmem:[#allocation5 + $0x650] sm:$0xff]  ;;  %v3202_v19 = vpack.c.bf16 %v552_v12, %v522_v11  ;;  %v850_v12 = vld [vmem:[#allocation5 + $0x1098] sm:$0xff] }
 0x216   : > { %v3204_v27 = vpack.c.bf16 %v551_v20, %v521_v18  ;;  %v820_v11 = vld [vmem:[#allocation5 + $0xfa8] sm:$0xff]  ;;  %v819_v18 = vld [vmem:[#allocation5 + $0xfa0] sm:$0xff]  ;;  %v821_v20 = vld [vmem:[#allocation5 + $0xfb0] sm:$0xff] }
 0x217   : > { %3037 = vmatpush1.bf16.msra.mxu1 %v3036_v31  ;;  %v3058_v31 = vpack.c.bf16 %v1266_v25, %v1236_v24  ;;  %v582_v24 = vld [vmem:[#allocation5 + $0x838] sm:$0xff]  ;;  %v612_v25 = vld [vmem:[#allocation5 + $0x928] sm:$0xff] }
 0x218   : > { %3101 = vmatpush1.bf16.msra.mxu0 %v3100_v32  ;;  %3039 = vmatprep.subr.bf16.mxu1 %v3038_v33  ;;  %v1235_v32 = vld [vmem:[#allocation5 + $0x1ca0] sm:$0xff]  ;;  %v1265_v33 = vld [vmem:[#allocation5 + $0x1d90] sm:$0xff] }
 0x219   : > { %3103 = vmatprep.subr.bf16.mxu0 %v3102_v37  ;;  %v340_v37 = vld [vmem:[#allocation5 + $0xa8] sm:$0xff]  ;;  %v3060_v41 = vpack.c.bf16 %v1265_v33, %v1235_v32  ;;  %v581_v32 = vld [vmem:[#allocation5 + $0x830] sm:$0xff]  ;;  %v3206_v33 = vpack.c.bf16 %v612_v25, %v582_v24  ;;  %v910_v25 = vld [vmem:[#allocation5 + $0x1278] sm:$0xff] }
 0x21a   : > { %v3208_v40 = vpack.c.bf16 %v611_v34, %v581_v32  ;;  %v880_v24 = vld [vmem:[#allocation5 + $0x1188] sm:$0xff]  ;;  %v879_v32 = vld [vmem:[#allocation5 + $0x1180] sm:$0xff]  ;;  %v881_v34 = vld [vmem:[#allocation5 + $0x1190] sm:$0xff] }
 0x21b   : > { %3041 = vmatpush1.bf16.msra.mxu1 %v3040_v43  ;;  %v3126_v43 = vpack.c.bf16 %v370_v38, %v340_v37  ;;  %v642_v37 = vld [vmem:[#allocation5 + $0xa18] sm:$0xff]  ;;  %v672_v38 = vld [vmem:[#allocation5 + $0xb08] sm:$0xff] }
 0x21c   : > { %3105 = vmatpush1.bf16.msra.mxu0 %v3104_v44  ;;  %3043 = vmatprep.subr.bf16.mxu1 %v3042_v45  ;;  %v339_v44 = vld [vmem:[#allocation5 + $0xa0] sm:$0xff]  ;;  %v369_v45 = vld [vmem:[#allocation5 + $0x190] sm:$0xff] }
 0x21d   : > { %3107 = vmatprep.subr.bf16.mxu0 %v3106_v49  ;;  %v400_v49 = vld [vmem:[#allocation5 + $0x288] sm:$0xff]  ;;  %v3128_v51 = vpack.c.bf16 %v369_v45, %v339_v44  ;;  %v641_v44 = vld [vmem:[#allocation5 + $0xa10] sm:$0xff]  ;;  %v3210_v45 = vpack.c.bf16 %v672_v38, %v642_v37  ;;  %v970_v38 = vld [vmem:[#allocation5 + $0x1458] sm:$0xff] }
 0x21e   : > { %v3130_v58 = vpack.c.bf16 %v430_v50, %v400_v49  ;;  %v702_v49 = vld [vmem:[#allocation5 + $0xbf8] sm:$0xff]  ;;  %v732_v50 = vld [vmem:[#allocation5 + $0xce8] sm:$0xff] }
 0x21f   : > { %3045 = vmatpush1.bf16.msra.mxu1 %v3044_v55  ;;  %v399_v55 = vld [vmem:[#allocation5 + $0x280] sm:$0xff]  ;;  %v940_v37 = vld [vmem:[#allocation5 + $0x1368] sm:$0xff] }
 0x220   : > { %3109 = vmatpush1.bf16.msra.mxu0 %v3108_v56  ;;  %3047 = vmatprep.subr.bf16.mxu1 %v3046_v57  ;;  %v429_v56 = vld [vmem:[#allocation5 + $0x370] sm:$0xff] }
 0x221   : > { %3111 = vmatprep.subr.bf16.mxu0 %v3110_v61  ;;  %v401_v57 = vld [vmem:[#allocation5 + $0x290] sm:$0xff]  ;;  %v490_v61 = vld [vmem:[#allocation5 + $0x558] sm:$0xff]  ;;  %v3132_v1 = vpack.c.bf16 %v429_v56, %v399_v55 }
 0x222   : > { %v3196_v2 = vpack.c.bf16 %v431_v59, %v401_v57  ;;  %v729_v55 = vld [vmem:[#allocation5 + $0xcd0] sm:$0xff]  ;;  %v3214_v59 = vpack.c.bf16 %v732_v50, %v702_v49  ;;  %v1000_v49 = vld [vmem:[#allocation5 + $0x1548] sm:$0xff]  ;;  %v1030_v50 = vld [vmem:[#allocation5 + $0x1638] sm:$0xff] }
 0x223   : > { %3049 = vmatpush1.bf16.msra.mxu1 %v3048_v3  ;;  %v3134_v3 = vpack.c.bf16 %v490_v61, %v460_v60  ;;  %v701_v56 = vld [vmem:[#allocation5 + $0xbf0] sm:$0xff]  ;;  %v731_v60 = vld [vmem:[#allocation5 + $0xce0] sm:$0xff]  ;;  %v760_v61 = vld [vmem:[#allocation5 + $0xdc8] sm:$0xff] }
 0x224   : > { %3113 = vmatpush1.bf16.msra.mxu0 %v3112_v4  ;;  %3051 = vmatprep.subr.bf16.mxu1 %v3050_v5  ;;  %v459_v4 = vld [vmem:[#allocation5 + $0x460] sm:$0xff]  ;;  %v489_v5 = vld [vmem:[#allocation5 + $0x550] sm:$0xff] }
 0x225   : > { %3115 = vmatprep.subr.bf16.mxu0 %v3114_v9  ;;  %v520_v9 = vld [vmem:[#allocation5 + $0x648] sm:$0xff]  ;;  %v3136_v13 = vpack.c.bf16 %v489_v5, %v459_v4  ;;  %v3216_v4 = vpack.c.bf16 %v731_v60, %v701_v56  ;;  %v999_v56 = vld [vmem:[#allocation5 + $0x1540] sm:$0xff] }
 0x226   : > { %v1031_v60 = vld [vmem:[#allocation5 + $0x1640] sm:$0xff] }
 0x227   : > { %3053 = vmatpush1.bf16.msra.mxu1 %v3052_v15  ;;  %v3138_v15 = vpack.c.bf16 %v550_v10, %v520_v9  ;;  %v791_v10 = vld [vmem:[#allocation5 + $0xec0] sm:$0xff] }
 0x228   : > { %3117 = vmatpush1.bf16.msra.mxu0 %v3116_v16  ;;  %3055 = vmatprep.subr.bf16.mxu1 %v3054_v17  ;;  %v519_v16 = vld [vmem:[#allocation5 + $0x640] sm:$0xff]  ;;  %v549_v17 = vld [vmem:[#allocation5 + $0x730] sm:$0xff] }
 0x229   : > { %3119 = vmatprep.subr.bf16.mxu0 %v3118_v21  ;;  %v580_v21 = vld [vmem:[#allocation5 + $0x828] sm:$0xff]  ;;  %v3140_v26 = vpack.c.bf16 %v549_v17, %v519_v16  ;;  %v3220_v16 = vpack.c.bf16 %v791_v10, %v761_v8  ;;  %v3158_v17 = vpack.c.bf16 %v850_v12, %v820_v11  ;;  %v1091_v8 = vld [vmem:[#allocation5 + $0x1820] sm:$0xff]  ;;  %v1150_v10 = vld [vmem:[#allocation5 + $0x19f8] sm:$0xff] }
 0x22a   : > { %v1122_v11 = vld [vmem:[#allocation5 + $0x1918] sm:$0xff]  ;;  %v1152_v12 = vld [vmem:[#allocation5 + $0x1a08] sm:$0xff] }
 0x22b   : > { %3057 = vmatpush1.bf16.msra.mxu1 %v3056_v29  ;;  %v3142_v29 = vpack.c.bf16 %v610_v22, %v580_v21  ;;  %v851_v22 = vld [vmem:[#allocation5 + $0x10a0] sm:$0xff] }
 0x22c   : > { %3121 = vmatpush1.bf16.msra.mxu0 %v3120_v30  ;;  %3059 = vmatprep.subr.bf16.mxu1 %v3058_v31  ;;  %v579_v30 = vld [vmem:[#allocation5 + $0x820] sm:$0xff]  ;;  %v609_v31 = vld [vmem:[#allocation5 + $0x910] sm:$0xff] }
 0x22d   : > { %3123 = vmatprep.subr.bf16.mxu0 %v3122_v35  ;;  %v640_v35 = vld [vmem:[#allocation5 + $0xa08] sm:$0xff]  ;;  %v3144_v39 = vpack.c.bf16 %v609_v31, %v579_v30  ;;  %v3224_v30 = vpack.c.bf16 %v851_v22, %v821_v20  ;;  %v3162_v31 = vpack.c.bf16 %v910_v25, %v880_v24  ;;  %v1151_v20 = vld [vmem:[#allocation5 + $0x1a00] sm:$0xff]  ;;  %v1210_v22 = vld [vmem:[#allocation5 + $0x1bd8] sm:$0xff] }
 0x22e   : > { %v1182_v24 = vld [vmem:[#allocation5 + $0x1af8] sm:$0xff]  ;;  %v1212_v25 = vld [vmem:[#allocation5 + $0x1be8] sm:$0xff] }
 0x22f   : > { %3061 = vmatpush1.bf16.msra.mxu1 %v3060_v41  ;;  %v3146_v41 = vpack.c.bf16 %v670_v36, %v640_v35  ;;  %v911_v36 = vld [vmem:[#allocation5 + $0x1280] sm:$0xff] }
 0x230   : > { %3125 = vmatpush1.bf16.msra.mxu0 %v3124_v42  ;;  %3127 = vmatprep.subr.bf16.mxu1 %v3126_v43  ;;  %v639_v42 = vld [vmem:[#allocation5 + $0xa00] sm:$0xff]  ;;  %v669_v43 = vld [vmem:[#allocation5 + $0xaf0] sm:$0xff] }
 0x231   : > { %3191 = vmatprep.subr.bf16.mxu0 %v3190_v46  ;;  %v671_v46 = vld [vmem:[#allocation5 + $0xb00] sm:$0xff] }
 0x232   : > { %1912 = vmatmul.mubr.f32.vlgmr.msra.gmra.mrb[8].mxu1 %v3832_v28  ;;  %v3212_v52 = vpack.c.bf16 %v671_v46, %v641_v44  ;;  %v939_v44 = vld [vmem:[#allocation5 + $0x1360] sm:$0xff]  ;;  %v941_v46 = vld [vmem:[#allocation5 + $0x1370] sm:$0xff] }
 0x233   : > { %1983 = vmatmul.mubr.f32.vlgmr.msra.gmra.mrb[10].mxu0 %v3832_v28  ;;  %3129 = vmatpush1.bf16.msra.mxu1 %v3128_v51  ;;  %v3148_v51 = vpack.c.bf16 %v669_v43, %v639_v42  ;;  %v3228_v42 = vpack.c.bf16 %v911_v36, %v881_v34  ;;  %v3166_v43 = vpack.c.bf16 %v970_v38, %v940_v37  ;;  %v1211_v34 = vld [vmem:[#allocation5 + $0x1be0] sm:$0xff]  ;;  %v1270_v36 = vld [vmem:[#allocation5 + $0x1db8] sm:$0xff]  ;;  %v1272_v38 = vld [vmem:[#allocation5 + $0x1dc8] sm:$0xff] }
 0x234   : > { %2053 = vmatprep.mubr.f32.mxu1 %v3830_v23  ;;  %3193 = vmatpush1.bf16.msra.mxu0 %v3192_v54  ;;  %v699_v54 = vld [vmem:[#allocation5 + $0xbe0] sm:$0xff]  ;;  %v1242_v37 = vld [vmem:[#allocation5 + $0x1cd8] sm:$0xff] }
 0x235   : > { %2124 = vmatprep.mubr.f32.mxu0 %v3830_v23  ;;  %3131 = vmatprep.subr.bf16.mxu1 %v3130_v58 }
 0x236   : > { %3195 = vmatprep.subr.bf16.mxu0 %v3194_v62  ;;  %v790_v62 = vld [vmem:[#allocation5 + $0xeb8] sm:$0xff] }
 0x237   : > { %3133 = vmatpush1.bf16.msra.mxu1 %v3132_v1  ;;  %v762_v1 = vld [vmem:[#allocation5 + $0xdd8] sm:$0xff]  ;;  %v3154_v5 = vpack.c.bf16 %v790_v62, %v760_v61  ;;  %v1060_v61 = vld [vmem:[#allocation5 + $0x1728] sm:$0xff] }
 0x238   : > { %3197 = vmatpush1.bf16.msra.mxu0 %v3196_v2  ;;  %3135 = vmatprep.subr.bf16.mxu1 %v3134_v3  ;;  %v792_v2 = vld [vmem:[#allocation5 + $0xec8] sm:$0xff]  ;;  %v3152_v3 = vpack.c.bf16 %v729_v55, %v699_v54  ;;  %v3232_v54 = vpack.c.bf16 %v971_v48, %v941_v46  ;;  %v3170_v55 = vpack.c.bf16 %v1030_v50, %v1000_v49  ;;  %v1090_v62 = vld [vmem:[#allocation5 + $0x1818] sm:$0xff]  ;;  %v1271_v46 = vld [vmem:[#allocation5 + $0x1dc0] sm:$0xff] }
 0x239   : > { %3199 = vmatprep.subr.bf16.mxu0 %v3198_v7  ;;  %v789_v7 = vld [vmem:[#allocation5 + $0xeb0] sm:$0xff]  ;;  %v3218_v9 = vpack.c.bf16 %v792_v2, %v762_v1  ;;  %v374_v48 = vld [vmem:[#allocation5 + $0x1b8] sm:$0xff]  ;;  %v376_v50 = vld [vmem:[#allocation5 + $0x1c8] sm:$0xff] }
 0x23a   : > { %v346_v49 = vld [vmem:[#allocation5 + $0xd8] sm:$0xff] }
 0x23b   : > { %3137 = vmatpush1.bf16.msra.mxu1 %v3136_v13  ;;  %v822_v13 = vld [vmem:[#allocation5 + $0xfb8] sm:$0xff] }
 0x23c   : > { %3201 = vmatpush1.bf16.msra.mxu0 %v3200_v14  ;;  %3139 = vmatprep.subr.bf16.mxu1 %v3138_v15  ;;  %v852_v14 = vld [vmem:[#allocation5 + $0x10a8] sm:$0xff]  ;;  %v3156_v15 = vpack.c.bf16 %v789_v7, %v759_v6  ;;  %v1061_v6 = vld [vmem:[#allocation5 + $0x1730] sm:$0xff] }
 0x23d   : > { %3203 = vmatprep.subr.bf16.mxu0 %v3202_v19  ;;  %v849_v19 = vld [vmem:[#allocation5 + $0x1090] sm:$0xff]  ;;  %v3222_v21 = vpack.c.bf16 %v852_v14, %v822_v13  ;;  %v3240_v14 = vpack.c.bf16 %v1091_v8, %v1061_v6  ;;  %v464_v6 = vld [vmem:[#allocation5 + $0x488] sm:$0xff] }
 0x23f   : > { %3141 = vmatpush1.bf16.msra.mxu1 %v3140_v26  ;;  %v882_v26 = vld [vmem:[#allocation5 + $0x1198] sm:$0xff] }
 0x240   : > { %3205 = vmatpush1.bf16.msra.mxu0 %v3204_v27  ;;  %3143 = vmatprep.subr.bf16.mxu1 %v3142_v29  ;;  %v912_v27 = vld [vmem:[#allocation5 + $0x1288] sm:$0xff]  ;;  %v3160_v29 = vpack.c.bf16 %v849_v19, %v819_v18  ;;  %v1121_v18 = vld [vmem:[#allocation5 + $0x1910] sm:$0xff]  ;;  %v3242_v19 = vpack.c.bf16 %v1152_v12, %v1122_v11 }
 0x241   : > { %3207 = vmatprep.subr.bf16.mxu0 %v3206_v33  ;;  %v909_v33 = vld [vmem:[#allocation5 + $0x1270] sm:$0xff]  ;;  %v3226_v35 = vpack.c.bf16 %v912_v27, %v882_v26  ;;  %v3244_v27 = vpack.c.bf16 %v1151_v20, %v1121_v18  ;;  %v495_v18 = vld [vmem:[#allocation5 + $0x580] sm:$0xff]  ;;  %v554_v20 = vld [vmem:[#allocation5 + $0x758] sm:$0xff] }
 0x243   : > { %3145 = vmatpush1.bf16.msra.mxu1 %v3144_v39  ;;  %v942_v39 = vld [vmem:[#allocation5 + $0x1378] sm:$0xff] }
 0x244   : > { %3209 = vmatpush1.bf16.msra.mxu0 %v3208_v40  ;;  %3147 = vmatprep.subr.bf16.mxu1 %v3146_v41  ;;  %v972_v40 = vld [vmem:[#allocation5 + $0x1468] sm:$0xff]  ;;  %v3164_v41 = vpack.c.bf16 %v909_v33, %v879_v32  ;;  %v1181_v32 = vld [vmem:[#allocation5 + $0x1af0] sm:$0xff]  ;;  %v3246_v33 = vpack.c.bf16 %v1212_v25, %v1182_v24 }
 0x245   : > { %v1487_v57 = vpop.f32.mrb[2].mxu1  ;;  %v1558_v58 = vpop.f32.mrb[4].mxu0  ;;  %3211 = vmatprep.subr.bf16.mxu0 %v3210_v45  ;;  %v969_v45 = vld [vmem:[#allocation5 + $0x1450] sm:$0xff]  ;;  %v3230_v47 = vpack.c.bf16 %v972_v40, %v942_v39  ;;  %v3248_v40 = vpack.c.bf16 %v1211_v34, %v1181_v32  ;;  %v555_v32 = vld [vmem:[#allocation5 + $0x760] sm:$0xff]  ;;  %v614_v34 = vld [vmem:[#allocation5 + $0x938] sm:$0xff] }
 0x246   : > { %2348 = vst [vmem:[%s3855_s10 + $0x20] sm:$0xff] %v1487_v57  ;;  %2350 = vst [vmem:[%s3855_s10 + $0x30] sm:$0xff] %v1558_v58  ;;  %v1489_v63 = vpop.f32.mrb[3].mxu1  ;;  %v1560_v0 = vpop.f32.mrb[5].mxu0  ;;  %v1029_v57 = vld [vmem:[#allocation5 + $0x1630] sm:$0xff] }
 0x247   : > { %2349 = vst [vmem:[%s3855_s10 + $0x28] sm:$0xff] %v1489_v63  ;;  %2351 = vst [vmem:[%s3855_s10 + $0x38] sm:$0xff] %v1560_v0  ;;  %3149 = vmatpush1.bf16.msra.mxu1 %v3148_v51  ;;  %v1002_v51 = vld [vmem:[#allocation5 + $0x1558] sm:$0xff]  ;;  %v1001_v58 = vld [vmem:[#allocation5 + $0x1550] sm:$0xff]  ;;  %v3172_v1 = vpack.c.bf16 %v1029_v57, %v999_v56  ;;  %v3318_v56 = vpack.c.bf16 %v376_v50, %v346_v49 }
 0x248   : > { %3213 = vmatpush1.bf16.msra.mxu0 %v3212_v52  ;;  %3151 = vmatprep.subr.bf16.mxu1 %v3150_v53  ;;  %v1032_v52 = vld [vmem:[#allocation5 + $0x1648] sm:$0xff]  ;;  %v3168_v53 = vpack.c.bf16 %v969_v45, %v939_v44  ;;  %v1062_v63 = vld [vmem:[#allocation5 + $0x1738] sm:$0xff]  ;;  %v3236_v2 = vpack.c.bf16 %v1031_v60, %v1001_v58  ;;  %v1241_v44 = vld [vmem:[#allocation5 + $0x1cd0] sm:$0xff]  ;;  %v3250_v45 = vpack.c.bf16 %v1272_v38, %v1242_v37 }
 0x249   : > { %3215 = vmatprep.subr.bf16.mxu0 %v3214_v59  ;;  %v3234_v59 = vpack.c.bf16 %v1032_v52, %v1002_v51  ;;  %v1092_v0 = vld [vmem:[#allocation5 + $0x1828] sm:$0xff]  ;;  %v3252_v52 = vpack.c.bf16 %v1271_v46, %v1241_v44  ;;  %v345_v57 = vld [vmem:[#allocation5 + $0xd0] sm:$0xff]  ;;  %v375_v58 = vld [vmem:[#allocation5 + $0x1c0] sm:$0xff] }
 0x24a   : > { %v3238_v7 = vpack.c.bf16 %v1092_v0, %v1062_v63  ;;  %v434_v60 = vld [vmem:[#allocation5 + $0x398] sm:$0xff]  ;;  %v436_v63 = vld [vmem:[#allocation5 + $0x3a8] sm:$0xff]  ;;  %v3320_v0 = vpack.c.bf16 %v375_v58, %v345_v57  ;;  %v615_v44 = vld [vmem:[#allocation5 + $0x940] sm:$0xff] }
 0x24b   : > { %3153 = vmatpush1.bf16.msra.mxu1 %v3152_v3  ;;  %v3174_v3 = vpack.c.bf16 %v1090_v62, %v1060_v61  ;;  %v406_v62 = vld [vmem:[#allocation5 + $0x2b8] sm:$0xff]  ;;  %v704_v57 = vld [vmem:[#allocation5 + $0xc08] sm:$0xff] }
 0x24c   : > { %3217 = vmatpush1.bf16.msra.mxu0 %v3216_v4  ;;  %3155 = vmatprep.subr.bf16.mxu1 %v3154_v5  ;;  %v1059_v4 = vld [vmem:[#allocation5 + $0x1720] sm:$0xff]  ;;  %v1089_v5 = vld [vmem:[#allocation5 + $0x1810] sm:$0xff]  ;;  %v3322_v8 = vpack.c.bf16 %v436_v63, %v406_v62  ;;  %v674_v46 = vld [vmem:[#allocation5 + $0xb18] sm:$0xff] }
 0x24d   : > { %3219 = vmatprep.subr.bf16.mxu0 %v3218_v9  ;;  %v1120_v9 = vld [vmem:[#allocation5 + $0x1908] sm:$0xff]  ;;  %v3176_v13 = vpack.c.bf16 %v1089_v5, %v1059_v4  ;;  %v435_v5 = vld [vmem:[#allocation5 + $0x3a0] sm:$0xff]  ;;  %v734_v58 = vld [vmem:[#allocation5 + $0xcf8] sm:$0xff] }
 0x24e   : > { %v3278_v63 = vpack.c.bf16 %v734_v58, %v704_v57  ;;  %v975_v58 = vld [vmem:[#allocation5 + $0x1480] sm:$0xff] }
 0x24f   : > { %3157 = vmatpush1.bf16.msra.mxu1 %v3156_v15  ;;  %v3178_v15 = vpack.c.bf16 %v1150_v10, %v1120_v9  ;;  %v466_v9 = vld [vmem:[#allocation5 + $0x498] sm:$0xff]  ;;  %v496_v10 = vld [vmem:[#allocation5 + $0x588] sm:$0xff] }
 0x250   : > { %3221 = vmatpush1.bf16.msra.mxu0 %v3220_v16  ;;  %3159 = vmatprep.subr.bf16.mxu1 %v3158_v17  ;;  %v1119_v16 = vld [vmem:[#allocation5 + $0x1900] sm:$0xff]  ;;  %v1149_v17 = vld [vmem:[#allocation5 + $0x19f0] sm:$0xff] }
 0x251   : > { %3223 = vmatprep.subr.bf16.mxu0 %v3222_v21  ;;  %v1180_v21 = vld [vmem:[#allocation5 + $0x1ae8] sm:$0xff]  ;;  %v3180_v26 = vpack.c.bf16 %v1149_v17, %v1119_v16  ;;  %v465_v16 = vld [vmem:[#allocation5 + $0x490] sm:$0xff]  ;;  %v3326_v17 = vpack.c.bf16 %v496_v10, %v466_v9  ;;  %v766_v10 = vld [vmem:[#allocation5 + $0xdf8] sm:$0xff] }
 0x252   : > { %v3328_v25 = vpack.c.bf16 %v495_v18, %v465_v16  ;;  %v763_v16 = vld [vmem:[#allocation5 + $0xde0] sm:$0xff]  ;;  %v765_v18 = vld [vmem:[#allocation5 + $0xdf0] sm:$0xff] }
 0x253   : > { %3161 = vmatpush1.bf16.msra.mxu1 %v3160_v29  ;;  %v3182_v29 = vpack.c.bf16 %v1210_v22, %v1180_v21  ;;  %v526_v21 = vld [vmem:[#allocation5 + $0x678] sm:$0xff]  ;;  %v556_v22 = vld [vmem:[#allocation5 + $0x768] sm:$0xff] }
 0x254   : > { %3225 = vmatpush1.bf16.msra.mxu0 %v3224_v30  ;;  %3163 = vmatprep.subr.bf16.mxu1 %v3162_v31  ;;  %v1179_v30 = vld [vmem:[#allocation5 + $0x1ae0] sm:$0xff]  ;;  %v1209_v31 = vld [vmem:[#allocation5 + $0x1bd0] sm:$0xff] }
 0x255   : > { %3227 = vmatprep.subr.bf16.mxu0 %v3226_v35  ;;  %v1240_v35 = vld [vmem:[#allocation5 + $0x1cc8] sm:$0xff]  ;;  %v3184_v39 = vpack.c.bf16 %v1209_v31, %v1179_v30  ;;  %v525_v30 = vld [vmem:[#allocation5 + $0x670] sm:$0xff]  ;;  %v3330_v31 = vpack.c.bf16 %v556_v22, %v526_v21  ;;  %v854_v22 = vld [vmem:[#allocation5 + $0x10b8] sm:$0xff] }
 0x256   : > { %v3332_v38 = vpack.c.bf16 %v555_v32, %v525_v30  ;;  %v824_v21 = vld [vmem:[#allocation5 + $0xfc8] sm:$0xff]  ;;  %v823_v30 = vld [vmem:[#allocation5 + $0xfc0] sm:$0xff]  ;;  %v825_v32 = vld [vmem:[#allocation5 + $0xfd0] sm:$0xff] }
 0x257   : > { %3165 = vmatpush1.bf16.msra.mxu1 %v3164_v41  ;;  %v3186_v41 = vpack.c.bf16 %v1270_v36, %v1240_v35  ;;  %v586_v35 = vld [vmem:[#allocation5 + $0x858] sm:$0xff]  ;;  %v616_v36 = vld [vmem:[#allocation5 + $0x948] sm:$0xff] }
 0x258   : > { %3229 = vmatpush1.bf16.msra.mxu0 %v3228_v42  ;;  %3167 = vmatprep.subr.bf16.mxu1 %v3166_v43  ;;  %v1239_v42 = vld [vmem:[#allocation5 + $0x1cc0] sm:$0xff]  ;;  %v1269_v43 = vld [vmem:[#allocation5 + $0x1db0] sm:$0xff] }
 0x259   : > { %3231 = vmatprep.subr.bf16.mxu0 %v3230_v47  ;;  %v344_v47 = vld [vmem:[#allocation5 + $0xc8] sm:$0xff]  ;;  %v3188_v51 = vpack.c.bf16 %v1269_v43, %v1239_v42  ;;  %v585_v42 = vld [vmem:[#allocation5 + $0x850] sm:$0xff]  ;;  %v3334_v43 = vpack.c.bf16 %v616_v36, %v586_v35  ;;  %v914_v36 = vld [vmem:[#allocation5 + $0x1298] sm:$0xff] }
 0x25a   : > { %v3336_v50 = vpack.c.bf16 %v615_v44, %v585_v42  ;;  %v884_v35 = vld [vmem:[#allocation5 + $0x11a8] sm:$0xff]  ;;  %v883_v42 = vld [vmem:[#allocation5 + $0x11a0] sm:$0xff]  ;;  %v885_v44 = vld [vmem:[#allocation5 + $0x11b0] sm:$0xff] }
 0x25b   : > { %3169 = vmatpush1.bf16.msra.mxu1 %v3168_v53  ;;  %v3254_v53 = vpack.c.bf16 %v374_v48, %v344_v47  ;;  %v646_v47 = vld [vmem:[#allocation5 + $0xa38] sm:$0xff]  ;;  %v676_v48 = vld [vmem:[#allocation5 + $0xb28] sm:$0xff] }
 0x25c   : > { %3233 = vmatpush1.bf16.msra.mxu0 %v3232_v54  ;;  %3171 = vmatprep.subr.bf16.mxu1 %v3170_v55  ;;  %v343_v54 = vld [vmem:[#allocation5 + $0xc0] sm:$0xff]  ;;  %v373_v55 = vld [vmem:[#allocation5 + $0x1b0] sm:$0xff] }
 0x25d   : > { %3235 = vmatprep.subr.bf16.mxu0 %v3234_v59  ;;  %v404_v59 = vld [vmem:[#allocation5 + $0x2a8] sm:$0xff]  ;;  %v3256_v61 = vpack.c.bf16 %v373_v55, %v343_v54  ;;  %v645_v54 = vld [vmem:[#allocation5 + $0xa30] sm:$0xff]  ;;  %v3338_v55 = vpack.c.bf16 %v676_v48, %v646_v47  ;;  %v974_v48 = vld [vmem:[#allocation5 + $0x1478] sm:$0xff] }
 0x25e   : > { %v3258_v4 = vpack.c.bf16 %v434_v60, %v404_v59  ;;  %v706_v59 = vld [vmem:[#allocation5 + $0xc18] sm:$0xff]  ;;  %v736_v60 = vld [vmem:[#allocation5 + $0xd08] sm:$0xff] }
 0x25f   : > { %3173 = vmatpush1.bf16.msra.mxu1 %v3172_v1  ;;  %v403_v1 = vld [vmem:[#allocation5 + $0x2a0] sm:$0xff]  ;;  %v944_v47 = vld [vmem:[#allocation5 + $0x1388] sm:$0xff] }
 0x260   : > { %3237 = vmatpush1.bf16.msra.mxu0 %v3236_v2  ;;  %3175 = vmatprep.subr.bf16.mxu1 %v3174_v3  ;;  %v433_v2 = vld [vmem:[#allocation5 + $0x390] sm:$0xff] }
 0x261   : > { %3239 = vmatprep.subr.bf16.mxu0 %v3238_v7  ;;  %v405_v3 = vld [vmem:[#allocation5 + $0x2b0] sm:$0xff]  ;;  %v494_v7 = vld [vmem:[#allocation5 + $0x578] sm:$0xff]  ;;  %v3260_v11 = vpack.c.bf16 %v433_v2, %v403_v1 }
 0x262   : > { %v3324_v12 = vpack.c.bf16 %v435_v5, %v405_v3  ;;  %v733_v1 = vld [vmem:[#allocation5 + $0xcf0] sm:$0xff]  ;;  %v735_v5 = vld [vmem:[#allocation5 + $0xd00] sm:$0xff] }
 0x263   : > { %3177 = vmatpush1.bf16.msra.mxu1 %v3176_v13  ;;  %v3262_v13 = vpack.c.bf16 %v494_v7, %v464_v6  ;;  %v705_v2 = vld [vmem:[#allocation5 + $0xc10] sm:$0xff]  ;;  %v764_v6 = vld [vmem:[#allocation5 + $0xde8] sm:$0xff]  ;;  %v794_v7 = vld [vmem:[#allocation5 + $0xed8] sm:$0xff] }
 0x264   : > { %3241 = vmatpush1.bf16.msra.mxu0 %v3240_v14  ;;  %3179 = vmatprep.subr.bf16.mxu1 %v3178_v15  ;;  %v463_v14 = vld [vmem:[#allocation5 + $0x480] sm:$0xff]  ;;  %v493_v15 = vld [vmem:[#allocation5 + $0x570] sm:$0xff] }
 0x265   : > { %3243 = vmatprep.subr.bf16.mxu0 %v3242_v19  ;;  %v524_v19 = vld [vmem:[#allocation5 + $0x668] sm:$0xff]  ;;  %v3264_v24 = vpack.c.bf16 %v493_v15, %v463_v14  ;;  %v3344_v14 = vpack.c.bf16 %v735_v5, %v705_v2  ;;  %v3282_v15 = vpack.c.bf16 %v794_v7, %v764_v6  ;;  %v1003_v2 = vld [vmem:[#allocation5 + $0x1560] sm:$0xff] }
 0x266   : > { %v1035_v6 = vld [vmem:[#allocation5 + $0x1660] sm:$0xff]  ;;  %v1064_v7 = vld [vmem:[#allocation5 + $0x1748] sm:$0xff] }
 0x267   : > { %3181 = vmatpush1.bf16.msra.mxu1 %v3180_v26  ;;  %v3266_v26 = vpack.c.bf16 %v554_v20, %v524_v19  ;;  %v795_v20 = vld [vmem:[#allocation5 + $0xee0] sm:$0xff] }
 0x268   : > { %3245 = vmatpush1.bf16.msra.mxu0 %v3244_v27  ;;  %3183 = vmatprep.subr.bf16.mxu1 %v3182_v29  ;;  %v523_v27 = vld [vmem:[#allocation5 + $0x660] sm:$0xff]  ;;  %v553_v29 = vld [vmem:[#allocation5 + $0x750] sm:$0xff] }
 0x269   : > { %3247 = vmatprep.subr.bf16.mxu0 %v3246_v33  ;;  %v584_v33 = vld [vmem:[#allocation5 + $0x848] sm:$0xff]  ;;  %v3268_v37 = vpack.c.bf16 %v553_v29, %v523_v27  ;;  %v3348_v27 = vpack.c.bf16 %v795_v20, %v765_v18  ;;  %v3286_v29 = vpack.c.bf16 %v854_v22, %v824_v21  ;;  %v1095_v18 = vld [vmem:[#allocation5 + $0x1840] sm:$0xff]  ;;  %v1154_v20 = vld [vmem:[#allocation5 + $0x1a18] sm:$0xff] }
 0x26a   : > { %v1126_v21 = vld [vmem:[#allocation5 + $0x1938] sm:$0xff]  ;;  %v1156_v22 = vld [vmem:[#allocation5 + $0x1a28] sm:$0xff] }
 0x26b   : > { %3185 = vmatpush1.bf16.msra.mxu1 %v3184_v39  ;;  %v3270_v39 = vpack.c.bf16 %v614_v34, %v584_v33  ;;  %v855_v34 = vld [vmem:[#allocation5 + $0x10c0] sm:$0xff] }
 0x26c   : > { %3249 = vmatpush1.bf16.msra.mxu0 %v3248_v40  ;;  %3187 = vmatprep.subr.bf16.mxu1 %v3186_v41  ;;  %v583_v40 = vld [vmem:[#allocation5 + $0x840] sm:$0xff]  ;;  %v613_v41 = vld [vmem:[#allocation5 + $0x930] sm:$0xff] }
 0x26d   : > { %3251 = vmatprep.subr.bf16.mxu0 %v3250_v45  ;;  %v644_v45 = vld [vmem:[#allocation5 + $0xa28] sm:$0xff]  ;;  %v3272_v49 = vpack.c.bf16 %v613_v41, %v583_v40  ;;  %v3352_v40 = vpack.c.bf16 %v855_v34, %v825_v32  ;;  %v3290_v41 = vpack.c.bf16 %v914_v36, %v884_v35  ;;  %v1155_v32 = vld [vmem:[#allocation5 + $0x1a20] sm:$0xff]  ;;  %v1214_v34 = vld [vmem:[#allocation5 + $0x1bf8] sm:$0xff] }
 0x26e   : > { %v1186_v35 = vld [vmem:[#allocation5 + $0x1b18] sm:$0xff]  ;;  %v1216_v36 = vld [vmem:[#allocation5 + $0x1c08] sm:$0xff] }
 0x26f   : > { %3189 = vmatpush1.bf16.msra.mxu1 %v3188_v51  ;;  %v3274_v51 = vpack.c.bf16 %v674_v46, %v644_v45  ;;  %v915_v46 = vld [vmem:[#allocation5 + $0x12a0] sm:$0xff] }
 0x270   : > { %3253 = vmatpush1.bf16.msra.mxu0 %v3252_v52  ;;  %3255 = vmatprep.subr.bf16.mxu1 %v3254_v53  ;;  %v643_v52 = vld [vmem:[#allocation5 + $0xa20] sm:$0xff]  ;;  %v673_v53 = vld [vmem:[#allocation5 + $0xb10] sm:$0xff] }
 0x271   : > { %3319 = vmatprep.subr.bf16.mxu0 %v3318_v56  ;;  %v675_v56 = vld [vmem:[#allocation5 + $0xb20] sm:$0xff] }
 0x272   : > { %2054 = vmatmul.mubr.f32.vlgmr.msra.gmra.mrb[10].mxu1 %v3832_v28  ;;  %v3340_v62 = vpack.c.bf16 %v675_v56, %v645_v54  ;;  %v943_v54 = vld [vmem:[#allocation5 + $0x1380] sm:$0xff]  ;;  %v945_v56 = vld [vmem:[#allocation5 + $0x1390] sm:$0xff] }
 0x273   : > { %2125 = vmatmul.mubr.f32.vlgmr.msra.gmra.mrb[12].mxu0 %v3832_v28  ;;  %3257 = vmatpush1.bf16.msra.mxu1 %v3256_v61  ;;  %v3276_v61 = vpack.c.bf16 %v673_v53, %v643_v52  ;;  %v3356_v52 = vpack.c.bf16 %v915_v46, %v885_v44  ;;  %v3294_v53 = vpack.c.bf16 %v974_v48, %v944_v47  ;;  %v1215_v44 = vld [vmem:[#allocation5 + $0x1c00] sm:$0xff]  ;;  %v1274_v46 = vld [vmem:[#allocation5 + $0x1dd8] sm:$0xff]  ;;  %v1276_v48 = vld [vmem:[#allocation5 + $0x1de8] sm:$0xff] }
 0x274   : > { %2195 = vmatprep.mubr.f32.mxu1 %v3830_v23  ;;  %3321 = vmatpush1.bf16.msra.mxu0 %v3320_v0  ;;  %v703_v0 = vld [vmem:[#allocation5 + $0xc00] sm:$0xff]  ;;  %v1246_v47 = vld [vmem:[#allocation5 + $0x1cf8] sm:$0xff] }
 0x275   : > { %2266 = vmatprep.mubr.f32.mxu0 %v3830_v23  ;;  %3259 = vmatprep.subr.bf16.mxu1 %v3258_v4  ;;  %v3342_v4 = vpack.c.bf16 %v736_v60, %v706_v59  ;;  %v1004_v59 = vld [vmem:[#allocation5 + $0x1568] sm:$0xff]  ;;  %v1034_v60 = vld [vmem:[#allocation5 + $0x1658] sm:$0xff] }
 0x276   : > { %3323 = vmatprep.subr.bf16.mxu0 %v3322_v8 }
 0x277   : > { %3261 = vmatpush1.bf16.msra.mxu1 %v3260_v11  ;;  %v796_v11 = vld [vmem:[#allocation5 + $0xee8] sm:$0xff] }
 0x278   : > { %3325 = vmatpush1.bf16.msra.mxu0 %v3324_v12  ;;  %3263 = vmatprep.subr.bf16.mxu1 %v3262_v13  ;;  %v3280_v13 = vpack.c.bf16 %v733_v1, %v703_v0  ;;  %v3346_v19 = vpack.c.bf16 %v796_v11, %v766_v10  ;;  %v3360_v0 = vpack.c.bf16 %v975_v58, %v945_v56  ;;  %v1096_v10 = vld [vmem:[#allocation5 + $0x1848] sm:$0xff]  ;;  %v1275_v56 = vld [vmem:[#allocation5 + $0x1de0] sm:$0xff]  ;;  %v378_v58 = vld [vmem:[#allocation5 + $0x1d8] sm:$0xff] }
 0x279   : > { %3327 = vmatprep.subr.bf16.mxu0 %v3326_v17  ;;  %v793_v17 = vld [vmem:[#allocation5 + $0xed0] sm:$0xff]  ;;  %v3298_v1 = vpack.c.bf16 %v1034_v60, %v1004_v59 }
 0x27b   : > { %3265 = vmatpush1.bf16.msra.mxu1 %v3264_v24  ;;  %v826_v24 = vld [vmem:[#allocation5 + $0xfd8] sm:$0xff] }
 0x27c   : > { %3329 = vmatpush1.bf16.msra.mxu0 %v3328_v25  ;;  %3267 = vmatprep.subr.bf16.mxu1 %v3266_v26  ;;  %v856_v25 = vld [vmem:[#allocation5 + $0x10c8] sm:$0xff]  ;;  %v3284_v26 = vpack.c.bf16 %v793_v17, %v763_v16  ;;  %v1065_v16 = vld [vmem:[#allocation5 + $0x1750] sm:$0xff] }
 0x27d   : > { %3331 = vmatprep.subr.bf16.mxu0 %v3330_v31  ;;  %v853_v31 = vld [vmem:[#allocation5 + $0x10b0] sm:$0xff]  ;;  %v3350_v33 = vpack.c.bf16 %v856_v25, %v826_v24  ;;  %v3368_v25 = vpack.c.bf16 %v1095_v18, %v1065_v16  ;;  %v527_v16 = vld [vmem:[#allocation5 + $0x680] sm:$0xff]  ;;  %v588_v18 = vld [vmem:[#allocation5 + $0x868] sm:$0xff] }
 0x27f   : > { %3269 = vmatpush1.bf16.msra.mxu1 %v3268_v37  ;;  %v886_v37 = vld [vmem:[#allocation5 + $0x11b8] sm:$0xff] }
 0x280   : > { %3333 = vmatpush1.bf16.msra.mxu0 %v3332_v38  ;;  %3271 = vmatprep.subr.bf16.mxu1 %v3270_v39  ;;  %v916_v38 = vld [vmem:[#allocation5 + $0x12a8] sm:$0xff]  ;;  %v3288_v39 = vpack.c.bf16 %v853_v31, %v823_v30  ;;  %v1125_v30 = vld [vmem:[#allocation5 + $0x1930] sm:$0xff]  ;;  %v3370_v31 = vpack.c.bf16 %v1156_v22, %v1126_v21  ;;  %v587_v22 = vld [vmem:[#allocation5 + $0x860] sm:$0xff] }
 0x281   : > { %3335 = vmatprep.subr.bf16.mxu0 %v3334_v43  ;;  %v913_v43 = vld [vmem:[#allocation5 + $0x1290] sm:$0xff]  ;;  %v3354_v45 = vpack.c.bf16 %v916_v38, %v886_v37  ;;  %v3372_v38 = vpack.c.bf16 %v1155_v32, %v1125_v30  ;;  %v738_v32 = vld [vmem:[#allocation5 + $0xd18] sm:$0xff] }
 0x282   : > { %v677_v30 = vld [vmem:[#allocation5 + $0xb30] sm:$0xff] }
 0x283   : > { %3273 = vmatpush1.bf16.msra.mxu1 %v3272_v49  ;;  %v946_v49 = vld [vmem:[#allocation5 + $0x1398] sm:$0xff] }
 0x284   : > { %3337 = vmatpush1.bf16.msra.mxu0 %v3336_v50  ;;  %3275 = vmatprep.subr.bf16.mxu1 %v3274_v51  ;;  %v976_v50 = vld [vmem:[#allocation5 + $0x1488] sm:$0xff]  ;;  %v3292_v51 = vpack.c.bf16 %v913_v43, %v883_v42  ;;  %v1185_v42 = vld [vmem:[#allocation5 + $0x1b10] sm:$0xff]  ;;  %v3374_v43 = vpack.c.bf16 %v1216_v36, %v1186_v35  ;;  %v707_v35 = vld [vmem:[#allocation5 + $0xc20] sm:$0xff] }
 0x285   : > { %v1629_v3 = vpop.f32.mrb[4].mxu1  ;;  %3339 = vmatprep.subr.bf16.mxu0 %v3338_v55  ;;  %v973_v55 = vld [vmem:[#allocation5 + $0x1470] sm:$0xff]  ;;  %v3358_v57 = vpack.c.bf16 %v976_v50, %v946_v49  ;;  %v3376_v50 = vpack.c.bf16 %v1215_v44, %v1185_v42 }
 0x286   : > { %2352 = vst [vmem:[%s3855_s10 + $0x40] sm:$0xff] %v1629_v3  ;;  %v1700_v8 = vpop.f32.mrb[6].mxu0  ;;  %v1631_v9 = vpop.f32.mrb[5].mxu1  ;;  %v1033_v3 = vld [vmem:[#allocation5 + $0x1650] sm:$0xff] }
 0x287   : > { %2354 = vst [vmem:[%s3855_s10 + $0x50] sm:$0xff] %v1700_v8  ;;  %2353 = vst [vmem:[%s3855_s10 + $0x48] sm:$0xff] %v1631_v9  ;;  %v1702_v12 = vpop.f32.mrb[7].mxu0  ;;  %3277 = vmatpush1.bf16.msra.mxu1 %v3276_v61  ;;  %v1006_v61 = vld [vmem:[#allocation5 + $0x1578] sm:$0xff]  ;;  %v3300_v11 = vpack.c.bf16 %v1033_v3, %v1003_v2  ;;  %v737_v36 = vld [vmem:[#allocation5 + $0xd10] sm:$0xff] }
 0x288   : > { %2355 = vst [vmem:[%s3855_s10 + $0x58] sm:$0xff] %v1702_v12  ;;  %3341 = vmatpush1.bf16.msra.mxu0 %v3340_v62  ;;  %3279 = vmatprep.subr.bf16.mxu1 %v3278_v63  ;;  %v1036_v62 = vld [vmem:[#allocation5 + $0x1668] sm:$0xff]  ;;  %v3296_v63 = vpack.c.bf16 %v973_v55, %v943_v54  ;;  %v1094_v8 = vld [vmem:[#allocation5 + $0x1838] sm:$0xff]  ;;  %v1245_v54 = vld [vmem:[#allocation5 + $0x1cf0] sm:$0xff]  ;;  %v3378_v55 = vpack.c.bf16 %v1276_v48, %v1246_v47 }
 0x289   : > { %3343 = vmatprep.subr.bf16.mxu0 %v3342_v4  ;;  %v1005_v4 = vld [vmem:[#allocation5 + $0x1570] sm:$0xff]  ;;  %v3362_v5 = vpack.c.bf16 %v1036_v62, %v1006_v61  ;;  %v1066_v9 = vld [vmem:[#allocation5 + $0x1758] sm:$0xff]  ;;  %v3380_v60 = vpack.c.bf16 %v1275_v56, %v1245_v54  ;;  %v347_v62 = vld [vmem:[#allocation5 + $0xe0] sm:$0xff] }
 0x28a   : > { %v3364_v12 = vpack.c.bf16 %v1035_v6, %v1005_v4  ;;  %v3366_v17 = vpack.c.bf16 %v1096_v10, %v1066_v9  ;;  %v407_v4 = vld [vmem:[#allocation5 + $0x2c0] sm:$0xff]  ;;  %v468_v6 = vld [vmem:[#allocation5 + $0x4a8] sm:$0xff]  ;;  %v858_v48 = vld [vmem:[#allocation5 + $0x10d8] sm:$0xff] }
 0x28b   : > { %3281 = vmatpush1.bf16.msra.mxu1 %v3280_v13  ;;  %v3302_v13 = vpack.c.bf16 %v1094_v8, %v1064_v7  ;;  %v498_v7 = vld [vmem:[#allocation5 + $0x598] sm:$0xff]  ;;  %v467_v10 = vld [vmem:[#allocation5 + $0x4a0] sm:$0xff]  ;;  %v828_v47 = vld [vmem:[#allocation5 + $0xfe8] sm:$0xff] }
 0x28c   : > { %3345 = vmatpush1.bf16.msra.mxu0 %v3344_v14  ;;  %3283 = vmatprep.subr.bf16.mxu1 %v3282_v15  ;;  %v1063_v14 = vld [vmem:[#allocation5 + $0x1740] sm:$0xff]  ;;  %v1093_v15 = vld [vmem:[#allocation5 + $0x1830] sm:$0xff]  ;;  %v3390_v9 = vpack.c.bf16 %v498_v7, %v468_v6  ;;  %v918_v54 = vld [vmem:[#allocation5 + $0x12b8] sm:$0xff] }
 0x28d   : > { %3347 = vmatprep.subr.bf16.mxu0 %v3346_v19  ;;  %v1124_v19 = vld [vmem:[#allocation5 + $0x1928] sm:$0xff]  ;;  %v3304_v24 = vpack.c.bf16 %v1093_v15, %v1063_v14  ;;  %v1037_v6 = vld [vmem:[#allocation5 + $0x1670] sm:$0xff] }
 0x28e   : > { %v1068_v7 = vld [vmem:[#allocation5 + $0x1768] sm:$0xff] }
 0x28f   : > { %3285 = vmatpush1.bf16.msra.mxu1 %v3284_v26  ;;  %v3306_v26 = vpack.c.bf16 %v1154_v20, %v1124_v19  ;;  %v618_v19 = vld [vmem:[#allocation5 + $0x958] sm:$0xff] }
 0x290   : > { %3349 = vmatpush1.bf16.msra.mxu0 %v3348_v27  ;;  %3287 = vmatprep.subr.bf16.mxu1 %v3286_v29  ;;  %v1123_v27 = vld [vmem:[#allocation5 + $0x1920] sm:$0xff]  ;;  %v1153_v29 = vld [vmem:[#allocation5 + $0x1a10] sm:$0xff]  ;;  %v3398_v21 = vpack.c.bf16 %v618_v19, %v588_v18  ;;  %v1188_v19 = vld [vmem:[#allocation5 + $0x1b28] sm:$0xff] }
 0x291   : > { %3351 = vmatprep.subr.bf16.mxu0 %v3350_v33  ;;  %v1184_v33 = vld [vmem:[#allocation5 + $0x1b08] sm:$0xff]  ;;  %v3308_v37 = vpack.c.bf16 %v1153_v29, %v1123_v27  ;;  %v647_v29 = vld [vmem:[#allocation5 + $0xa40] sm:$0xff]  ;;  %v1157_v18 = vld [vmem:[#allocation5 + $0x1a30] sm:$0xff] }
 0x293   : > { %3289 = vmatpush1.bf16.msra.mxu1 %v3288_v39  ;;  %v3310_v39 = vpack.c.bf16 %v1214_v34, %v1184_v33  ;;  %v3404_v33 = vpack.c.bf16 %v677_v30, %v647_v29  ;;  %v1247_v30 = vld [vmem:[#allocation5 + $0x1d00] sm:$0xff] }
 0x294   : > { %3353 = vmatpush1.bf16.msra.mxu0 %v3352_v40  ;;  %3291 = vmatprep.subr.bf16.mxu1 %v3290_v41  ;;  %v1183_v40 = vld [vmem:[#allocation5 + $0x1b00] sm:$0xff]  ;;  %v1213_v41 = vld [vmem:[#allocation5 + $0x1bf0] sm:$0xff] }
 0x295   : > { %3355 = vmatprep.subr.bf16.mxu0 %v3354_v45  ;;  %v1244_v45 = vld [vmem:[#allocation5 + $0x1ce8] sm:$0xff]  ;;  %v3312_v49 = vpack.c.bf16 %v1213_v41, %v1183_v40 }
 0x297   : > { %3293 = vmatpush1.bf16.msra.mxu1 %v3292_v51  ;;  %v3314_v51 = vpack.c.bf16 %v1274_v46, %v1244_v45  ;;  %v767_v45 = vld [vmem:[#allocation5 + $0xe00] sm:$0xff]  ;;  %v797_v46 = vld [vmem:[#allocation5 + $0xef0] sm:$0xff] }
 0x298   : > { %3357 = vmatpush1.bf16.msra.mxu0 %v3356_v52  ;;  %3295 = vmatprep.subr.bf16.mxu1 %v3294_v53  ;;  %v1243_v52 = vld [vmem:[#allocation5 + $0x1ce0] sm:$0xff]  ;;  %v1273_v53 = vld [vmem:[#allocation5 + $0x1dd0] sm:$0xff] }
 0x299   : > { %3359 = vmatprep.subr.bf16.mxu0 %v3358_v57  ;;  %v348_v57 = vld [vmem:[#allocation5 + $0xe8] sm:$0xff]  ;;  %v3316_v59 = vpack.c.bf16 %v1273_v53, %v1243_v52  ;;  %v857_v52 = vld [vmem:[#allocation5 + $0x10d0] sm:$0xff] }
 0x29a   : > { %v3382_v61 = vpack.c.bf16 %v378_v58, %v348_v57  ;;  %v888_v53 = vld [vmem:[#allocation5 + $0x11c8] sm:$0xff]  ;;  %v887_v57 = vld [vmem:[#allocation5 + $0x11c0] sm:$0xff]  ;;  %v917_v58 = vld [vmem:[#allocation5 + $0x12b0] sm:$0xff] }
 0x29b   : > { %3297 = vmatpush1.bf16.msra.mxu1 %v3296_v63  ;;  %v377_v63 = vld [vmem:[#allocation5 + $0x1d0] sm:$0xff]  ;;  %v3418_v56 = vpack.c.bf16 %v918_v54, %v888_v53 }
 0x29c   : > { %3361 = vmatpush1.bf16.msra.mxu0 %v3360_v0  ;;  %3299 = vmatprep.subr.bf16.mxu1 %v3298_v1  ;;  %v408_v0 = vld [vmem:[#allocation5 + $0x2c8] sm:$0xff]  ;;  %v438_v1 = vld [vmem:[#allocation5 + $0x3b8] sm:$0xff]  ;;  %v3384_v2 = vpack.c.bf16 %v377_v63, %v347_v62  ;;  %v947_v63 = vld [vmem:[#allocation5 + $0x13a0] sm:$0xff] }
 0x29d   : > { %3363 = vmatprep.subr.bf16.mxu0 %v3362_v5  ;;  %v3386_v3 = vpack.c.bf16 %v438_v1, %v408_v0  ;;  %v437_v5 = vld [vmem:[#allocation5 + $0x3b0] sm:$0xff]  ;;  %v1008_v1 = vld [vmem:[#allocation5 + $0x1588] sm:$0xff] }
 0x29e   : > { %v3388_v8 = vpack.c.bf16 %v437_v5, %v407_v4  ;;  %v977_v0 = vld [vmem:[#allocation5 + $0x1490] sm:$0xff]  ;;  %v1007_v5 = vld [vmem:[#allocation5 + $0x1580] sm:$0xff] }
 0x29f   : > { %3301 = vmatpush1.bf16.msra.mxu1 %v3300_v11  ;;  %v497_v11 = vld [vmem:[#allocation5 + $0x590] sm:$0xff] }
 0x2a0   : > { %3365 = vmatpush1.bf16.msra.mxu0 %v3364_v12  ;;  %3303 = vmatprep.subr.bf16.mxu1 %v3302_v13  ;;  %v528_v12 = vld [vmem:[#allocation5 + $0x688] sm:$0xff]  ;;  %v558_v13 = vld [vmem:[#allocation5 + $0x778] sm:$0xff]  ;;  %v3392_v14 = vpack.c.bf16 %v497_v11, %v467_v10  ;;  %v1067_v11 = vld [vmem:[#allocation5 + $0x1760] sm:$0xff] }
 0x2a1   : > { %3367 = vmatprep.subr.bf16.mxu0 %v3366_v17  ;;  %v3394_v15 = vpack.c.bf16 %v558_v13, %v528_v12  ;;  %v557_v17 = vld [vmem:[#allocation5 + $0x770] sm:$0xff]  ;;  %v1128_v13 = vld [vmem:[#allocation5 + $0x1948] sm:$0xff] }
 0x2a2   : > { %v3396_v20 = vpack.c.bf16 %v557_v17, %v527_v16  ;;  %v1097_v12 = vld [vmem:[#allocation5 + $0x1850] sm:$0xff]  ;;  %v1127_v17 = vld [vmem:[#allocation5 + $0x1940] sm:$0xff] }
 0x2a3   : > { %3305 = vmatpush1.bf16.msra.mxu1 %v3304_v24  ;;  %v648_v24 = vld [vmem:[#allocation5 + $0xa48] sm:$0xff] }
 0x2a4   : > { %3369 = vmatpush1.bf16.msra.mxu0 %v3368_v25  ;;  %3307 = vmatprep.subr.bf16.mxu1 %v3306_v26  ;;  %v678_v25 = vld [vmem:[#allocation5 + $0xb38] sm:$0xff] }
 0x2a5   : > { %3371 = vmatprep.subr.bf16.mxu0 %v3370_v31  ;;  %v3402_v27 = vpack.c.bf16 %v678_v25, %v648_v24  ;;  %v708_v31 = vld [vmem:[#allocation5 + $0xc28] sm:$0xff]  ;;  %v1217_v24 = vld [vmem:[#allocation5 + $0x1c10] sm:$0xff] }
 0x2a6   : > { %v3406_v34 = vpack.c.bf16 %v738_v32, %v708_v31  ;;  %v1248_v25 = vld [vmem:[#allocation5 + $0x1d08] sm:$0xff]  ;;  %v1277_v31 = vld [vmem:[#allocation5 + $0x1df0] sm:$0xff] }
 0x2a7   : > { %3309 = vmatpush1.bf16.msra.mxu1 %v3308_v37  ;;  %v3444_v32 = vpack.c.bf16 %v1277_v31, %v1247_v30 }
 0x2a8   : > { %3373 = vmatpush1.bf16.msra.mxu0 %v3372_v38  ;;  %3311 = vmatprep.subr.bf16.mxu1 %v3310_v39  ;;  %v768_v38 = vld [vmem:[#allocation5 + $0xe08] sm:$0xff]  ;;  %v798_v39 = vld [vmem:[#allocation5 + $0xef8] sm:$0xff] }
 0x2a9   : > { %3375 = vmatprep.subr.bf16.mxu0 %v3374_v43  ;;  %v3408_v43 = vpack.c.bf16 %v737_v36, %v707_v35  ;;  %v3410_v44 = vpack.c.bf16 %v798_v39, %v768_v38 }
 0x2ab   : > { %3313 = vmatpush1.bf16.msra.mxu1 %v3312_v49  ;;  %v3412_v49 = vpack.c.bf16 %v797_v46, %v767_v45 }
 0x2ac   : > { %3377 = vmatpush1.bf16.msra.mxu0 %v3376_v50  ;;  %3315 = vmatprep.subr.bf16.mxu1 %v3314_v51  ;;  %v3414_v50 = vpack.c.bf16 %v858_v48, %v828_v47  ;;  %v827_v51 = vld [vmem:[#allocation5 + $0xfe0] sm:$0xff] }
 0x2ad   : > { %3379 = vmatprep.subr.bf16.mxu0 %v3378_v55  ;;  %v3416_v55 = vpack.c.bf16 %v857_v52, %v827_v51 }
 0x2af   : > { %3317 = vmatpush1.bf16.msra.mxu1 %v3316_v59  ;;  %v948_v59 = vld [vmem:[#allocation5 + $0x13a8] sm:$0xff] }
 0x2b0   : > { %3381 = vmatpush1.bf16.msra.mxu0 %v3380_v60  ;;  %3383 = vmatprep.subr.bf16.mxu1 %v3382_v61  ;;  %v978_v60 = vld [vmem:[#allocation5 + $0x1498] sm:$0xff]  ;;  %v3420_v61 = vpack.c.bf16 %v917_v58, %v887_v57 }
 0x2b1   : > { %v3422_v62 = vpack.c.bf16 %v978_v60, %v948_v59 }
 0x2b2   : > { %2196 = vmatmul.mubr.f32.vlgmr.msra.gmra.mrb[12].mxu1 %v3832_v28 }
 0x2b3   : > { %2267 = vmatmul.mubr.f32.vlgmr.msra.gmra.mrb[14].mxu0 %v3832_v28  ;;  %3385 = vmatpush1.bf16.msra.mxu1 %v3384_v2  ;;  %v1038_v2 = vld [vmem:[#allocation5 + $0x1678] sm:$0xff] }
 0x2b4   : > { %2337 = vmatprep.mubr.f32.mxu1 %v3830_v23  ;;  %3387 = vmatprep.subr.bf16.mxu1 %v3386_v3  ;;  %v617_v23 = vld [vmem:[#allocation5 + $0x950] sm:$0xff]  ;;  %v3424_v3 = vpack.c.bf16 %v977_v0, %v947_v63  ;;  %v3426_v4 = vpack.c.bf16 %v1038_v2, %v1008_v1 }
 0x2b5   : > { %v3400_v26 = vpack.c.bf16 %v617_v23, %v587_v22  ;;  %v1187_v23 = vld [vmem:[#allocation5 + $0x1b20] sm:$0xff] }
 0x2b7   : > { %3389 = vmatpush1.bf16.msra.mxu1 %v3388_v8  ;;  %v1098_v8 = vld [vmem:[#allocation5 + $0x1858] sm:$0xff] }
 0x2b8   : > { %3391 = vmatprep.subr.bf16.mxu1 %v3390_v9  ;;  %v3428_v9 = vpack.c.bf16 %v1037_v6, %v1007_v5  ;;  %v3430_v10 = vpack.c.bf16 %v1098_v8, %v1068_v7 }
 0x2bb   : > { %3393 = vmatpush1.bf16.msra.mxu1 %v3392_v14  ;;  %v1158_v14 = vld [vmem:[#allocation5 + $0x1a38] sm:$0xff] }
 0x2bc   : > { %3395 = vmatprep.subr.bf16.mxu1 %v3394_v15  ;;  %v3432_v15 = vpack.c.bf16 %v1097_v12, %v1067_v11  ;;  %v3434_v16 = vpack.c.bf16 %v1158_v14, %v1128_v13 }
 0x2bf   : > { %3397 = vmatpush1.bf16.msra.mxu1 %v3396_v20  ;;  %v1218_v20 = vld [vmem:[#allocation5 + $0x1c18] sm:$0xff] }
 0x2c0   : > { %3399 = vmatprep.subr.bf16.mxu1 %v3398_v21  ;;  %v3436_v21 = vpack.c.bf16 %v1157_v18, %v1127_v17  ;;  %v3438_v22 = vpack.c.bf16 %v1218_v20, %v1188_v19 }
 0x2c3   : > { %3401 = vmatpush1.bf16.msra.mxu1 %v3400_v26  ;;  %v1278_v26 = vld [vmem:[#allocation5 + $0x1df8] sm:$0xff] }
 0x2c4   : > { %3403 = vmatprep.subr.bf16.mxu1 %v3402_v27  ;;  %v3440_v27 = vpack.c.bf16 %v1217_v24, %v1187_v23  ;;  %v3442_v29 = vpack.c.bf16 %v1278_v26, %v1248_v25 }
 0x2c5   : > { %v1771_v37 = vpop.f32.mrb[6].mxu1 }
 0x2c6   : > { %2356 = vst [vmem:[%s3855_s10 + $0x60] sm:$0xff] %v1771_v37  ;;  %v1842_v40 = vpop.f32.mrb[8].mxu0  ;;  %v1773_v41 = vpop.f32.mrb[7].mxu1 }
 0x2c7   : > { %2358 = vst [vmem:[%s3855_s10 + $0x70] sm:$0xff] %v1842_v40  ;;  %2357 = vst [vmem:[%s3855_s10 + $0x68] sm:$0xff] %v1773_v41  ;;  %v1844_v42 = vpop.f32.mrb[9].mxu0  ;;  %3405 = vmatpush1.bf16.msra.mxu1 %v3404_v33 }
 0x2c8   : > { %2359 = vst [vmem:[%s3855_s10 + $0x78] sm:$0xff] %v1844_v42  ;;  %3407 = vmatprep.subr.bf16.mxu1 %v3406_v34 }
 0x2cb   : > { %3409 = vmatpush1.bf16.msra.mxu1 %v3408_v43 }
 0x2cc   : > { %3411 = vmatprep.subr.bf16.mxu1 %v3410_v44 }
 0x2cf   : > { %3413 = vmatpush1.bf16.msra.mxu1 %v3412_v49 }
 0x2d0   : > { %3415 = vmatprep.subr.bf16.mxu1 %v3414_v50 }
 0x2d3   : > { %3417 = vmatpush1.bf16.msra.mxu1 %v3416_v55 }
 0x2d4   : > { %3419 = vmatprep.subr.bf16.mxu1 %v3418_v56 }
 0x2d7   : > { %3421 = vmatpush1.bf16.msra.mxu1 %v3420_v61 }
 0x2d8   : > { %3423 = vmatprep.subr.bf16.mxu1 %v3422_v62 }
 0x2db   : > { %3425 = vmatpush1.bf16.msra.mxu1 %v3424_v3 }
 0x2dc   : > { %3427 = vmatprep.subr.bf16.mxu1 %v3426_v4 }
 0x2df   : > { %3429 = vmatpush1.bf16.msra.mxu1 %v3428_v9 }
 0x2e0   : > { %3431 = vmatprep.subr.bf16.mxu1 %v3430_v10 }
 0x2e3   : > { %3433 = vmatpush1.bf16.msra.mxu1 %v3432_v15 }
 0x2e4   : > { %3435 = vmatprep.subr.bf16.mxu1 %v3434_v16 }
 0x2e7   : > { %3437 = vmatpush1.bf16.msra.mxu1 %v3436_v21 }
 0x2e8   : > { %3439 = vmatprep.subr.bf16.mxu1 %v3438_v22 }
 0x2eb   : > { %3441 = vmatpush1.bf16.msra.mxu1 %v3440_v27 }
 0x2ec   : > { %3443 = vmatprep.subr.bf16.mxu1 %v3442_v29 }
 0x2ef   : > { %3445 = vmatpush1.bf16.msra.mxu1 %v3444_v32 }
 0x2f2   : > { %2338 = vmatmul.mubr.f32.vlgmr.msra.gmra.mrb[14].mxu1 %v3832_v28 }
 0x305   : > { %v1913_v33 = vpop.f32.mrb[8].mxu1 }
 0x306   : > { %2360 = vst [vmem:[%s3855_s10 + $0x80] sm:$0xff] %v1913_v33  ;;  %v1984_v34 = vpop.f32.mrb[10].mxu0  ;;  %v1915_v35 = vpop.f32.mrb[9].mxu1 }
 0x307   : > { %2362 = vst [vmem:[%s3855_s10 + $0x90] sm:$0xff] %v1984_v34  ;;  %2361 = vst [vmem:[%s3855_s10 + $0x88] sm:$0xff] %v1915_v35  ;;  %v1986_v36 = vpop.f32.mrb[11].mxu0 }
 0x308   : > { %2363 = vst [vmem:[%s3855_s10 + $0x98] sm:$0xff] %v1986_v36 }
 0x345   : > { %v2055_v37 = vpop.f32.mrb[10].mxu1 }
 0x346   : > { %2364 = vst [vmem:[%s3855_s10 + $0xa0] sm:$0xff] %v2055_v37  ;;  %v2126_v38 = vpop.f32.mrb[12].mxu0  ;;  %v2057_v39 = vpop.f32.mrb[11].mxu1 }
 0x347   : > { %2366 = vst [vmem:[%s3855_s10 + $0xb0] sm:$0xff] %v2126_v38  ;;  %2365 = vst [vmem:[%s3855_s10 + $0xa8] sm:$0xff] %v2057_v39  ;;  %v2128_v28 = vpop.f32.mrb[13].mxu0 }
 0x348   : > { %2367 = vst [vmem:[%s3855_s10 + $0xb8] sm:$0xff] %v2128_v28 }
 0x385   : > { %v2197_v40 = vpop.f32.mrb[12].mxu1 }
 0x386   : > { %2368 = vst [vmem:[%s3855_s10 + $0xc0] sm:$0xff] %v2197_v40  ;;  %v2268_v41 = vpop.f32.mrb[14].mxu0  ;;  %v2199_v42 = vpop.f32.mrb[13].mxu1 }
 0x387   : > { %2370 = vst [vmem:[%s3855_s10 + $0xd0] sm:$0xff] %v2268_v41  ;;  %2369 = vst [vmem:[%s3855_s10 + $0xc8] sm:$0xff] %v2199_v42  ;;  %v2270_v43 = vpop.f32.mrb[15].mxu0 }
 0x388   : > { %2371 = vst [vmem:[%s3855_s10 + $0xd8] sm:$0xff] %v2270_v43 }
 0x3c5   : > { %v2339_v44 = vpop.f32.mrb[14].mxu1 }
 0x3c6   : > { %2372 = vst [vmem:[%s3855_s10 + $0xe0] sm:$0xff] %v2339_v44  ;;  %v2341_v45 = vpop.f32.mrb[15].mxu1 }
 0x3c7   : > { %2373 = vst [vmem:[%s3855_s10 + $0xe8] sm:$0xff] %v2341_v45 }
 0x3c8   : > { %3582 = shalt.err (!%p3579_p7)
}
 0x3c9   : > { %s3583_s25 = scalar_lea.hbm %s3902_s7, 3840  ;;  %s3587_s9 = scalar_lea.hbm %s3952_s4, 7680 }
 0x3ca   : > { %p3584_p9 = scmp.ne.s32.totalorder %s3902_s7, %s3583_s25  ;;  %p3588_p0 = scmp.lt.u32.totalorder %s3902_s7, %s3952_s4 }
 0x3cb   : > { %p3589_p1 = scmp.lt.u32.totalorder %s3587_s9, %s3583_s25  ;;  %p3591_p4 = scmp.lt.u32.totalorder %s3583_s25, %s3902_s7 }
 0x3cc   : > { %p3585_p2 = pnand %p3584_p9, %p3764_p12 }
 0x3cd   : > { %p3590_p11 = por %p3589_p1, %p3588_p0 }
 0x3ce   : > { %p3586_p5 = pneg %p3585_p2 }
 0x3cf   : > { %p3592_p6 = por %p3591_p4, %p3590_p11 }
 0x3d1   : > { %p3593_p8 = pnand %p3592_p6, %p3586_p5 }
 0x3d3   : > { %3596 = shalt.err (!%p3593_p8)
}
 0x3d4   : > { %3454 = dma.vmem_to_hbm [thread:$0]  (%p3764_p12), %s3904_s20, 3840, %s3902_s7, %s2375_s26  }
 0x3d5 PF: > { %s2401_s21 = sand.u32 1, %s3627_s15   ;;  %p3967_p10 = scmp.ne.s32.totalorder %s3957_s22, 0 }
 0x3d6   : > { %p3968_p13 = scmp.ge.s32.totalorder %s3639_s18, 2  ;;  %s2402_s10 = scalar_lea.sflag [#allocation4], %s2401_s21 }
 0x3d8   : > { %p3465_p3 = pnand %p3968_p13, %p3967_p10 }
 0x3da   : > { %3622 = dma.done.wait (!%p3465_p3), %s2402_s10, 3840  }
 0x3db   : > { %3624 = vsyncadd (!%p3465_p3), %s2402_s10, 4294963456  ;;  %p18_p7 = scmp.ge.s32.totalorder %s3729_s27, 4   ;;  %s3969_s15 = smov %s3631_s16 }
 0x3dc   : > { %s3970_s16 = smov %s3635_s17  ;;  %s3971_s17 = smov %s3760_s24 }
 0x3dd   : > { %s3972_s18 = smov %s3729_s27  ;;  %20 = sbr.rel (!%p18_p7) target bundleno = 6 (0x6), region = 85 }
 0x3e4   :  { %2407 = vsyncpa [#allocation3], 1 }
 0x3e5   :  { %2409 = vsyncpa [#allocation3 + $0x1], 1 }
 0x3e6   :  { %2410 = vsyncpa [#allocation6], 1 }
 0x3e7   :  { %2411 = vsyncpa [#allocation4], 1 }
 0x3e8   :  { %2413 = vsyncpa [#allocation4 + $0x1], 1 }

</bundles_post_ra>
